<compile_context>
chip_gen: v7x
topology: tpu7x:2x2x1
jax: 0.10.0
libtpu: 0.0.40
codegen_flags: <defaults>
</compile_context>

<pallas_src>
import functools

import jax
import jax.numpy as jnp
from jax.experimental import pallas as pl
from jax.experimental.pallas import tpu as pltpu

# ----------------------------- reduced Llama config --------------------------
# (same fields as LlamaConfig in the PyTorch module, sizes shrunk for the test)
VOCAB = 512
HIDDEN = 128
INTERMEDIATE = 256
N_LAYERS = 2
N_HEADS = 4
HEAD_DIM = HIDDEN // N_HEADS
RMS_EPS = 1e-6
ROPE_BASE = 10000.0

_VMEM_LIMIT = 32 * 1024 * 1024  # scoped VMEM; safe on v5e/v6e (128 MiB) and v7x (64 MiB)


def _rmsnorm_f32(x, w):
    var = jnp.mean(x * x, axis=-1, keepdims=True)
    return x * jax.lax.rsqrt(var + RMS_EPS) * w


# --------------------------- whole-model fused kernel -------------------------
# One grid step == one batch element: the full sequence (S, H) runs through every
# decoder layer and the LM head while staying resident in VMEM / vregs.
def _llama_kernel(h_ref, cos_ref, sin_ref,
                  attn_norm_ref, wqkv_ref, wo_ref,
                  mlp_norm_ref, wgu_ref, wd_ref,
                  final_norm_ref, head_w_ref, head_b_ref,
                  logits_ref, kc_ref, vc_ref, *, scale):
    S = h_ref.shape[0]
    half = HEAD_DIM // 2

    x = h_ref[...].astype(jnp.float32)                      # (S, H) residual stream, f32
    cos = cos_ref[...].astype(jnp.float32)                  # (S, D)
    sin = sin_ref[...].astype(jnp.float32)

    # causal mask (one full sequence per grid step), shared by every layer
    row = jax.lax.broadcasted_iota(jnp.int32, (N_HEADS, S, S), 1)
    col = jax.lax.broadcasted_iota(jnp.int32, (N_HEADS, S, S), 2)
    causal = row >= col

    def rope(xh):                                            # xh: (NH, S, D) f32
        rot = jnp.concatenate([-xh[..., half:], xh[..., :half]], axis=-1)
        return xh * cos + rot * sin                          # cos/sin broadcast over heads

    def split_heads(mat, off):                               # (S, 3H) -> (NH, S, D)
        return jnp.stack(
            [mat[:, off + h * HEAD_DIM: off + (h + 1) * HEAD_DIM]
             for h in range(N_HEADS)], axis=0)

    for l in range(N_LAYERS):                                # static unroll (2 layers)
        # ----------------------- attention sub-block -----------------------
        xn = _rmsnorm_f32(x, attn_norm_ref[l].astype(jnp.float32))
        qkv = jnp.dot(xn.astype(jnp.bfloat16), wqkv_ref[l],
                      preferred_element_type=jnp.float32)    # (S, 3H)

        qh = rope(split_heads(qkv, 0))                       # (NH, S, D)
        kh = rope(split_heads(qkv, HIDDEN))                  # post-RoPE k for cache
        vh = split_heads(qkv, 2 * HIDDEN)

        # KV cache written in HF (heads, S, head_dim) layout; batch handled by out_spec
        kc_ref[l, 0] = kh.astype(kc_ref.dtype)
        vc_ref[l, 0] = vh.astype(vc_ref.dtype)

        s = jnp.einsum('hqd,hkd->hqk',
                       qh.astype(jnp.bfloat16), kh.astype(jnp.bfloat16),
                       preferred_element_type=jnp.float32) * scale
        s = jnp.where(causal, s, jnp.float32(-1e30))
        s = s - jnp.max(s, axis=-1, keepdims=True)
        p = jnp.exp(s)
        p = p / jnp.sum(p, axis=-1, keepdims=True)           # exact divide (parity)
        oh = jnp.einsum('hqk,hkd->hqd',
                        p.astype(jnp.bfloat16), vh.astype(jnp.bfloat16),
                        preferred_element_type=jnp.float32)  # (NH, S, D)
        attn = jnp.concatenate([oh[h] for h in range(N_HEADS)], axis=-1)  # (S, H)
        x = x + jnp.dot(attn.astype(jnp.bfloat16), wo_ref[l],
                        preferred_element_type=jnp.float32)  # residual fused

        # -------------------------- MLP sub-block --------------------------
        xn2 = _rmsnorm_f32(x, mlp_norm_ref[l].astype(jnp.float32))
        gu = jnp.dot(xn2.astype(jnp.bfloat16), wgu_ref[l],
                     preferred_element_type=jnp.float32)     # (S, 2I)
        g = gu[:, :INTERMEDIATE]
        u = gu[:, INTERMEDIATE:]
        act = g * jax.lax.logistic(g) * u                    # SiLU(g) * u
        x = x + jnp.dot(act.astype(jnp.bfloat16), wd_ref[l],
                        preferred_element_type=jnp.float32)  # residual fused

    # -------------- final RMSNorm + LM head (single lane-dense tile) --------------
    xn = _rmsnorm_f32(x, final_norm_ref[...].astype(jnp.float32))
    logits = jnp.dot(xn.astype(jnp.bfloat16), head_w_ref[...],
                     preferred_element_type=jnp.float32)
    logits_ref[...] = (logits + head_b_ref[...].astype(jnp.float32)
                       ).astype(logits_ref.dtype)


# ------------------------------- RoPE tables ----------------------------------
def rope_tables(seq_len):
    inv_freq = 1.0 / (ROPE_BASE ** (jnp.arange(0, HEAD_DIM, 2, dtype=jnp.float32)
                                    / HEAD_DIM))
    t = jnp.arange(seq_len, dtype=jnp.float32)
    freqs = jnp.outer(t, inv_freq)                      # (S, D/2)
    emb = jnp.concatenate([freqs, freqs], axis=-1)      # (S, D)
    return jnp.cos(emb), jnp.sin(emb)


# ------------------------------- parameters -----------------------------------
def init_params(key):
    keys = jax.random.split(key, 3 + N_LAYERS)

    def w(k, shape, scale=0.02):
        return scale * jax.random.normal(k, shape, jnp.float32)

    wqkv, wo, wgu, wd = [], [], [], []
    for l in range(N_LAYERS):
        k = jax.random.split(keys[3 + l], 7)
        wq = w(k[0], (HIDDEN, HIDDEN))
        wk = w(k[1], (HIDDEN, HIDDEN))
        wv = w(k[2], (HIDDEN, HIDDEN))
        wg = w(k[4], (HIDDEN, INTERMEDIATE))
        wu = w(k[5], (HIDDEN, INTERMEDIATE))
        wqkv.append(jnp.concatenate([wq, wk, wv], axis=1))
        wo.append(w(k[3], (HIDDEN, HIDDEN)))
        wgu.append(jnp.concatenate([wg, wu], axis=1))
        wd.append(w(k[6], (INTERMEDIATE, HIDDEN)))

    return {
        "embed": w(keys[0], (VOCAB, HIDDEN)),
        "attn_norm": jnp.ones((N_LAYERS, HIDDEN), jnp.float32),
        "mlp_norm": jnp.ones((N_LAYERS, HIDDEN), jnp.float32),
        "final_norm": jnp.ones((HIDDEN,), jnp.float32),
        "wqkv": jnp.stack(wqkv).astype(jnp.bfloat16),        # (L, H, 3H)
        "wo": jnp.stack(wo).astype(jnp.bfloat16),            # (L, H, H)
        "wgu": jnp.stack(wgu).astype(jnp.bfloat16),          # (L, H, 2I)
        "wd": jnp.stack(wd).astype(jnp.bfloat16),            # (L, I, H)
        "lm_head_w": w(keys[1], (HIDDEN, VOCAB)).astype(jnp.bfloat16),
        "lm_head_b": w(keys[2], (VOCAB,)),                   # nn.Linear has a bias
    }


# --------------------------------- forward ------------------------------------
def my_llama_forward(params, X):
    # TODO(synk): attention_mask / past_key_values *inputs* (cache continuation,
    # padding masks) are not implemented; only the None path (full-prefill causal).
    B, S = X.shape
    M = B * S
    h0 = jnp.take(params["embed"], X.reshape(-1), axis=0)    # (M, H) embedding gather (XLA)
    cos, sin = rope_tables(S)                                # (S, D) f32

    kern = functools.partial(_llama_kernel, scale=1.0 / (HEAD_DIM ** 0.5))
    logits, kc, vc = pl.pallas_call(
        kern,
        out_shape=(
            jax.ShapeDtypeStruct((M, VOCAB), jnp.float32),
            jax.ShapeDtypeStruct((N_LAYERS, B, N_HEADS, S, HEAD_DIM), jnp.float32),
            jax.ShapeDtypeStruct((N_LAYERS, B, N_HEADS, S, HEAD_DIM), jnp.float32),
        ),
        grid=(B,),
        in_specs=[
            pl.BlockSpec((S, HIDDEN), lambda b: (b, 0)),                          # h0 rows of batch b
            pl.BlockSpec((S, HEAD_DIM), lambda b: (0, 0)),                        # cos
            pl.BlockSpec((S, HEAD_DIM), lambda b: (0, 0)),                        # sin
            pl.BlockSpec((N_LAYERS, HIDDEN), lambda b: (0, 0)),                   # attention norms
            pl.BlockSpec((N_LAYERS, HIDDEN, 3 * HIDDEN), lambda b: (0, 0, 0)),    # Wq|Wk|Wv (bf16)
            pl.BlockSpec((N_LAYERS, HIDDEN, HIDDEN), lambda b: (0, 0, 0)),        # Wo (bf16)
            pl.BlockSpec((N_LAYERS, HIDDEN), lambda b: (0, 0)),                   # MLP norms
            pl.BlockSpec((N_LAYERS, HIDDEN, 2 * INTERMEDIATE), lambda b: (0, 0, 0)),  # Wg|Wu (bf16)
            pl.BlockSpec((N_LAYERS, INTERMEDIATE, HIDDEN), lambda b: (0, 0, 0)),      # Wd (bf16)
            pl.BlockSpec((1, HIDDEN), lambda b: (0, 0)),                          # final norm
            pl.BlockSpec((HIDDEN, VOCAB), lambda b: (0, 0)),                      # LM head W (bf16)
            pl.BlockSpec((1, VOCAB), lambda b: (0, 0)),                           # LM head bias
        ],
        out_specs=(
            pl.BlockSpec((S, VOCAB), lambda b: (b, 0)),                                   # logits
            pl.BlockSpec((N_LAYERS, 1, N_HEADS, S, HEAD_DIM), lambda b: (0, b, 0, 0, 0)),  # K cache
            pl.BlockSpec((N_LAYERS, 1, N_HEADS, S, HEAD_DIM), lambda b: (0, b, 0, 0, 0)),  # V cache
        ),
        compiler_params=pltpu.CompilerParams(
            dimension_semantics=("parallel",),
            vmem_limit_bytes=_VMEM_LIMIT),
    )(h0, cos, sin,
      params["attn_norm"], params["wqkv"], params["wo"],
      params["mlp_norm"], params["wgu"], params["wd"],
      params["final_norm"].reshape(1, HIDDEN),
      params["lm_head_w"], params["lm_head_b"].reshape(1, VOCAB))

    # HF-style past_key_values: per layer (B, n_heads, S, head_dim) — already in layout
    past = tuple((kc[l], vc[l]) for l in range(N_LAYERS))
    return logits.reshape(B, S, VOCAB), past


# ----------------------------------- main --------------------------------------
if __name__ == "__main__":
    key = jax.random.PRNGKey(0)
    pkey, xkey = jax.random.split(key)
    params = init_params(pkey)

    B, S = 2, 8
    X = jax.random.randint(xkey, (B, S), 0, VOCAB, dtype=jnp.int32)

    logits, past_key_values = jax.jit(my_llama_forward)(params, X)
    jax.block_until_ready(logits)
    jax.block_until_ready(past_key_values)

    assert logits.shape == (B, S, VOCAB)
    assert len(past_key_values) == N_LAYERS
    assert past_key_values[0][0].shape == (B, N_HEADS, S, HEAD_DIM)
    print("KERNEL_OK")
</pallas_src>

<mosaic_0001>
module attributes {stable_mosaic.version = 11 : i64} {
  func.func @_llama_kernel(%arg0: i32, %arg1: memref<8x128xf32, #tpu.memory_space<vmem>>, %arg2: memref<8x32xf32, #tpu.memory_space<vmem>>, %arg3: memref<8x32xf32, #tpu.memory_space<vmem>>, %arg4: memref<2x128xf32, #tpu.memory_space<vmem>>, %arg5: memref<2x128x384xbf16, #tpu.memory_space<vmem>>, %arg6: memref<2x128x128xbf16, #tpu.memory_space<vmem>>, %arg7: memref<2x128xf32, #tpu.memory_space<vmem>>, %arg8: memref<2x128x512xbf16, #tpu.memory_space<vmem>>, %arg9: memref<2x256x128xbf16, #tpu.memory_space<vmem>>, %arg10: memref<1x128xf32, #tpu.memory_space<vmem>>, %arg11: memref<128x512xbf16, #tpu.memory_space<vmem>>, %arg12: memref<1x512xf32, #tpu.memory_space<vmem>>, %arg13: memref<8x512xf32, #tpu.memory_space<vmem>>, %arg14: memref<2x1x4x8x32xf32, #tpu.memory_space<vmem>>, %arg15: memref<2x1x4x8x32xf32, #tpu.memory_space<vmem>>) attributes {dimension_semantics = [#tpu.dimension_semantics<parallel>], iteration_bounds = array<i64: 2>, scalar_prefetch = 0 : i64, scratch_operands = 0 : i64, tpu.core_type = #tpu.core_type<tc>, window_params = [{transform_indices = @transform_0, window_bounds = array<i64: 8, 128>}, {pipeline_mode = #tpu.pipeline_mode<synchronous>, transform_indices = @transform_1, window_bounds = array<i64: 8, 32>}, {pipeline_mode = #tpu.pipeline_mode<synchronous>, transform_indices = @transform_2, window_bounds = array<i64: 8, 32>}, {pipeline_mode = #tpu.pipeline_mode<synchronous>, transform_indices = @transform_3, window_bounds = array<i64: 2, 128>}, {pipeline_mode = #tpu.pipeline_mode<synchronous>, transform_indices = @transform_4, window_bounds = array<i64: 2, 128, 384>}, {pipeline_mode = #tpu.pipeline_mode<synchronous>, transform_indices = @transform_5, window_bounds = array<i64: 2, 128, 128>}, {pipeline_mode = #tpu.pipeline_mode<synchronous>, transform_indices = @transform_6, window_bounds = array<i64: 2, 128>}, {pipeline_mode = #tpu.pipeline_mode<synchronous>, transform_indices = @transform_7, window_bounds = array<i64: 2, 128, 512>}, {pipeline_mode = #tpu.pipeline_mode<synchronous>, transform_indices = @transform_8, window_bounds = array<i64: 2, 256, 128>}, {pipeline_mode = #tpu.pipeline_mode<synchronous>, transform_indices = @transform_9, window_bounds = array<i64: 1, 128>}, {pipeline_mode = #tpu.pipeline_mode<synchronous>, transform_indices = @transform_10, window_bounds = array<i64: 128, 512>}, {pipeline_mode = #tpu.pipeline_mode<synchronous>, transform_indices = @transform_11, window_bounds = array<i64: 1, 512>}, {transform_indices = @transform_12, window_bounds = array<i64: 8, 512>}, {transform_indices = @transform_13, window_bounds = array<i64: 2, 1, 4, 8, 32>}, {transform_indices = @transform_14, window_bounds = array<i64: 2, 1, 4, 8, 32>}]} {
    %c0 = arith.constant 0 : index
    %c0_0 = arith.constant 0 : index
    %0 = vector.load %arg1[%c0, %c0_0] : memref<8x128xf32, #tpu.memory_space<vmem>>, vector<8x128xf32>
    %c0_1 = arith.constant 0 : index
    %c0_2 = arith.constant 0 : index
    %1 = vector.load %arg2[%c0_1, %c0_2] : memref<8x32xf32, #tpu.memory_space<vmem>>, vector<8x32xf32>
    %c0_3 = arith.constant 0 : index
    %c0_4 = arith.constant 0 : index
    %2 = vector.load %arg3[%c0_3, %c0_4] : memref<8x32xf32, #tpu.memory_space<vmem>>, vector<8x32xf32>
    %3 = tpu.iota {dimensions = array<i32: 1>} : vector<4x8x8xi32>
    %4 = tpu.iota {dimensions = array<i32: 2>} : vector<4x8x8xi32>
    %5 = arith.cmpi sge, %3, %4 : vector<4x8x8xi32>
    %c0_5 = arith.constant 0 : index
    %c0_6 = arith.constant 0 : index
    %6 = vector.load %arg4[%c0_5, %c0_6] : memref<2x128xf32, #tpu.memory_space<vmem>>, vector<1x128xf32>
    %7 = vector.shape_cast %6 : vector<1x128xf32> to vector<128xf32>
    %8 = arith.mulf %0, %0 : vector<8x128xf32>
    %cst = arith.constant dense<0.000000e+00> : vector<8xf32>
    %9 = vector.multi_reduction <add>, %8, %cst [1] : vector<8x128xf32> to vector<8xf32>
    %10 = vector.shape_cast %9 : vector<8xf32> to vector<8x1xf32>
    %cst_7 = arith.constant 1.280000e+02 : f32
    %11 = vector.broadcast %cst_7 : f32 to vector<8x1xf32>
    %12 = arith.divf %10, %11 : vector<8x1xf32>
    %cst_8 = arith.constant 9.99999997E-7 : f32
    %13 = vector.broadcast %cst_8 : f32 to vector<8x1xf32>
    %14 = arith.addf %12, %13 : vector<8x1xf32>
    %15 = math.rsqrt %14 : vector<8x1xf32>
    %16 = vector.broadcast %15 : vector<8x1xf32> to vector<8x128xf32>
    %17 = arith.mulf %0, %16 : vector<8x128xf32>
    %18 = vector.shape_cast %7 : vector<128xf32> to vector<1x128xf32>
    %19 = vector.broadcast %18 : vector<1x128xf32> to vector<8x128xf32>
    %20 = arith.mulf %17, %19 : vector<8x128xf32>
    %21 = arith.truncf %20 : vector<8x128xf32> to vector<8x128xbf16>
    %c0_9 = arith.constant 0 : index
    %c0_10 = arith.constant 0 : index
    %c0_11 = arith.constant 0 : index
    %22 = vector.load %arg5[%c0_9, %c0_10, %c0_11] : memref<2x128x384xbf16, #tpu.memory_space<vmem>>, vector<1x128x384xbf16>
    %23 = vector.shape_cast %22 : vector<1x128x384xbf16> to vector<128x384xbf16>
    %cst_12 = arith.constant dense<0.000000e+00> : vector<8x384xf32>
    %24 = tpu.matmul %21, %23, %cst_12 {dimension_numbers = #tpu.dot_dimension_numbers<[1], [0], [0], [1], [0, 0, 1, 1], [], []>} : vector<8x128xbf16>, vector<128x384xbf16>, vector<8x384xf32> -> vector<8x384xf32>
    %25 = vector.extract_strided_slice %24 {offsets = [0, 0], sizes = [8, 32], strides = [1, 1]} : vector<8x384xf32> to vector<8x32xf32>
    %26 = vector.extract_strided_slice %24 {offsets = [0, 32], sizes = [8, 32], strides = [1, 1]} : vector<8x384xf32> to vector<8x32xf32>
    %27 = vector.extract_strided_slice %24 {offsets = [0, 64], sizes = [8, 32], strides = [1, 1]} : vector<8x384xf32> to vector<8x32xf32>
    %28 = vector.extract_strided_slice %24 {offsets = [0, 96], sizes = [8, 32], strides = [1, 1]} : vector<8x384xf32> to vector<8x32xf32>
    %29 = vector.shape_cast %25 : vector<8x32xf32> to vector<1x8x32xf32>
    %30 = vector.shape_cast %26 : vector<8x32xf32> to vector<1x8x32xf32>
    %31 = vector.shape_cast %27 : vector<8x32xf32> to vector<1x8x32xf32>
    %32 = vector.shape_cast %28 : vector<8x32xf32> to vector<1x8x32xf32>
    %33 = tpu.concatenate %29, %30, %31, %32 in 0 : vector<1x8x32xf32>, vector<1x8x32xf32>, vector<1x8x32xf32>, vector<1x8x32xf32> -> vector<4x8x32xf32>
    %34 = vector.extract_strided_slice %33 {offsets = [0, 0, 16], sizes = [4, 8, 16], strides = [1, 1, 1]} : vector<4x8x32xf32> to vector<4x8x16xf32>
    %cst_13 = arith.constant 0.000000e+00 : f32
    %35 = vector.broadcast %cst_13 : f32 to vector<4x8x16xf32>
    %36 = arith.subf %35, %34 : vector<4x8x16xf32>
    %37 = vector.extract_strided_slice %33 {offsets = [0, 0, 0], sizes = [4, 8, 16], strides = [1, 1, 1]} : vector<4x8x32xf32> to vector<4x8x16xf32>
    %38 = tpu.concatenate %36, %37 in 2 : vector<4x8x16xf32>, vector<4x8x16xf32> -> vector<4x8x32xf32>
    %39 = vector.shape_cast %1 : vector<8x32xf32> to vector<1x8x32xf32>
    %40 = vector.broadcast %39 : vector<1x8x32xf32> to vector<4x8x32xf32>
    %41 = arith.mulf %33, %40 : vector<4x8x32xf32>
    %42 = vector.shape_cast %2 : vector<8x32xf32> to vector<1x8x32xf32>
    %43 = vector.broadcast %42 : vector<1x8x32xf32> to vector<4x8x32xf32>
    %44 = arith.mulf %38, %43 : vector<4x8x32xf32>
    %45 = arith.addf %41, %44 : vector<4x8x32xf32>
    %46 = vector.extract_strided_slice %24 {offsets = [0, 128], sizes = [8, 32], strides = [1, 1]} : vector<8x384xf32> to vector<8x32xf32>
    %47 = vector.extract_strided_slice %24 {offsets = [0, 160], sizes = [8, 32], strides = [1, 1]} : vector<8x384xf32> to vector<8x32xf32>
    %48 = vector.extract_strided_slice %24 {offsets = [0, 192], sizes = [8, 32], strides = [1, 1]} : vector<8x384xf32> to vector<8x32xf32>
    %49 = vector.extract_strided_slice %24 {offsets = [0, 224], sizes = [8, 32], strides = [1, 1]} : vector<8x384xf32> to vector<8x32xf32>
    %50 = vector.shape_cast %46 : vector<8x32xf32> to vector<1x8x32xf32>
    %51 = vector.shape_cast %47 : vector<8x32xf32> to vector<1x8x32xf32>
    %52 = vector.shape_cast %48 : vector<8x32xf32> to vector<1x8x32xf32>
    %53 = vector.shape_cast %49 : vector<8x32xf32> to vector<1x8x32xf32>
    %54 = tpu.concatenate %50, %51, %52, %53 in 0 : vector<1x8x32xf32>, vector<1x8x32xf32>, vector<1x8x32xf32>, vector<1x8x32xf32> -> vector<4x8x32xf32>
    %55 = vector.extract_strided_slice %54 {offsets = [0, 0, 16], sizes = [4, 8, 16], strides = [1, 1, 1]} : vector<4x8x32xf32> to vector<4x8x16xf32>
    %cst_14 = arith.constant 0.000000e+00 : f32
    %56 = vector.broadcast %cst_14 : f32 to vector<4x8x16xf32>
    %57 = arith.subf %56, %55 : vector<4x8x16xf32>
    %58 = vector.extract_strided_slice %54 {offsets = [0, 0, 0], sizes = [4, 8, 16], strides = [1, 1, 1]} : vector<4x8x32xf32> to vector<4x8x16xf32>
    %59 = tpu.concatenate %57, %58 in 2 : vector<4x8x16xf32>, vector<4x8x16xf32> -> vector<4x8x32xf32>
    %60 = vector.shape_cast %1 : vector<8x32xf32> to vector<1x8x32xf32>
    %61 = vector.broadcast %60 : vector<1x8x32xf32> to vector<4x8x32xf32>
    %62 = arith.mulf %54, %61 : vector<4x8x32xf32>
    %63 = vector.shape_cast %2 : vector<8x32xf32> to vector<1x8x32xf32>
    %64 = vector.broadcast %63 : vector<1x8x32xf32> to vector<4x8x32xf32>
    %65 = arith.mulf %59, %64 : vector<4x8x32xf32>
    %66 = arith.addf %62, %65 : vector<4x8x32xf32>
    %67 = vector.extract_strided_slice %24 {offsets = [0, 256], sizes = [8, 32], strides = [1, 1]} : vector<8x384xf32> to vector<8x32xf32>
    %68 = vector.extract_strided_slice %24 {offsets = [0, 288], sizes = [8, 32], strides = [1, 1]} : vector<8x384xf32> to vector<8x32xf32>
    %69 = vector.extract_strided_slice %24 {offsets = [0, 320], sizes = [8, 32], strides = [1, 1]} : vector<8x384xf32> to vector<8x32xf32>
    %70 = vector.extract_strided_slice %24 {offsets = [0, 352], sizes = [8, 32], strides = [1, 1]} : vector<8x384xf32> to vector<8x32xf32>
    %71 = vector.shape_cast %67 : vector<8x32xf32> to vector<1x8x32xf32>
    %72 = vector.shape_cast %68 : vector<8x32xf32> to vector<1x8x32xf32>
    %73 = vector.shape_cast %69 : vector<8x32xf32> to vector<1x8x32xf32>
    %74 = vector.shape_cast %70 : vector<8x32xf32> to vector<1x8x32xf32>
    %75 = tpu.concatenate %71, %72, %73, %74 in 0 : vector<1x8x32xf32>, vector<1x8x32xf32>, vector<1x8x32xf32>, vector<1x8x32xf32> -> vector<4x8x32xf32>
    %c0_15 = arith.constant 0 : index
    %c0_16 = arith.constant 0 : index
    %c0_17 = arith.constant 0 : index
    %c0_18 = arith.constant 0 : index
    %c0_19 = arith.constant 0 : index
    %76 = vector.load %arg14[%c0_15, %c0_16, %c0_17, %c0_18, %c0_19] : memref<2x1x4x8x32xf32, #tpu.memory_space<vmem>>, vector<1x1x4x8x32xf32>
    %77 = vector.shape_cast %76 : vector<1x1x4x8x32xf32> to vector<4x8x32xf32>
    %78 = vector.shape_cast %66 : vector<4x8x32xf32> to vector<1x1x4x8x32xf32>
    tpu.vector_store %arg14[%c0_15, %c0_16, %c0_17, %c0_18, %c0_19], %78 {strides = array<i32>} : memref<2x1x4x8x32xf32, #tpu.memory_space<vmem>>, vector<1x1x4x8x32xf32>,
    %c0_20 = arith.constant 0 : index
    %c0_21 = arith.constant 0 : index
    %c0_22 = arith.constant 0 : index
    %c0_23 = arith.constant 0 : index
    %c0_24 = arith.constant 0 : index
    %79 = vector.load %arg15[%c0_20, %c0_21, %c0_22, %c0_23, %c0_24] : memref<2x1x4x8x32xf32, #tpu.memory_space<vmem>>, vector<1x1x4x8x32xf32>
    %80 = vector.shape_cast %79 : vector<1x1x4x8x32xf32> to vector<4x8x32xf32>
    %81 = vector.shape_cast %75 : vector<4x8x32xf32> to vector<1x1x4x8x32xf32>
    tpu.vector_store %arg15[%c0_20, %c0_21, %c0_22, %c0_23, %c0_24], %81 {strides = array<i32>} : memref<2x1x4x8x32xf32, #tpu.memory_space<vmem>>, vector<1x1x4x8x32xf32>,
    %82 = arith.truncf %45 : vector<4x8x32xf32> to vector<4x8x32xbf16>
    %83 = arith.truncf %66 : vector<4x8x32xf32> to vector<4x8x32xbf16>
    "tpu.trace_start"() <{level = 10 : i32, message = "hqd,hkd->hqk"}> : () -> ()
    %cst_25 = arith.constant dense<0.000000e+00> : vector<4x8x8xf32>
    %84 = tpu.matmul %82, %83, %cst_25 {dimension_numbers = #tpu.dot_dimension_numbers<[2], [2], [1], [1], [0, 0, 0, 1, 1, 1], [0], [0]>} : vector<4x8x32xbf16>, vector<4x8x32xbf16>, vector<4x8x8xf32> -> vector<4x8x8xf32>
    "tpu.trace_stop"() : () -> ()
    %cst_26 = arith.constant 0.176776692 : f32
    %85 = vector.broadcast %cst_26 : f32 to vector<4x8x8xf32>
    %86 = arith.mulf %84, %85 : vector<4x8x8xf32>
    %cst_27 = arith.constant -1.000000e+30 : f32
    %87 = vector.broadcast %cst_27 : f32 to vector<4x8x8xf32>
    %88 = arith.select %5, %86, %87 : vector<4x8x8xi1>, vector<4x8x8xf32>
    %cst_28 = arith.constant dense<0xFF800000> : vector<4x8xf32>
    %89 = vector.multi_reduction <maximumf>, %88, %cst_28 [2] : vector<4x8x8xf32> to vector<4x8xf32>
    %90 = vector.shape_cast %89 : vector<4x8xf32> to vector<4x8x1xf32>
    %91 = vector.broadcast %90 : vector<4x8x1xf32> to vector<4x8x8xf32>
    %92 = arith.subf %88, %91 : vector<4x8x8xf32>
    %93 = math.exp %92 : vector<4x8x8xf32>
    %cst_29 = arith.constant dense<0.000000e+00> : vector<4x8xf32>
    %94 = vector.multi_reduction <add>, %93, %cst_29 [2] : vector<4x8x8xf32> to vector<4x8xf32>
    %95 = vector.shape_cast %94 : vector<4x8xf32> to vector<4x8x1xf32>
    %96 = vector.broadcast %95 : vector<4x8x1xf32> to vector<4x8x8xf32>
    %97 = arith.divf %93, %96 : vector<4x8x8xf32>
    %98 = arith.truncf %97 : vector<4x8x8xf32> to vector<4x8x8xbf16>
    %99 = arith.truncf %75 : vector<4x8x32xf32> to vector<4x8x32xbf16>
    "tpu.trace_start"() <{level = 10 : i32, message = "hqk,hkd->hqd"}> : () -> ()
    %cst_30 = arith.constant dense<0.000000e+00> : vector<4x8x32xf32>
    %100 = tpu.matmul %98, %99, %cst_30 {dimension_numbers = #tpu.dot_dimension_numbers<[2], [1], [1], [2], [0, 0, 0, 1, 1, 2], [0], [0]>} : vector<4x8x8xbf16>, vector<4x8x32xbf16>, vector<4x8x32xf32> -> vector<4x8x32xf32>
    "tpu.trace_stop"() : () -> ()
    %101 = vector.extract_strided_slice %100 {offsets = [0, 0, 0], sizes = [1, 8, 32], strides = [1, 1, 1]} : vector<4x8x32xf32> to vector<1x8x32xf32>
    %102 = vector.shape_cast %101 : vector<1x8x32xf32> to vector<8x32xf32>
    %103 = vector.extract_strided_slice %100 {offsets = [1, 0, 0], sizes = [1, 8, 32], strides = [1, 1, 1]} : vector<4x8x32xf32> to vector<1x8x32xf32>
    %104 = vector.shape_cast %103 : vector<1x8x32xf32> to vector<8x32xf32>
    %105 = vector.extract_strided_slice %100 {offsets = [2, 0, 0], sizes = [1, 8, 32], strides = [1, 1, 1]} : vector<4x8x32xf32> to vector<1x8x32xf32>
    %106 = vector.shape_cast %105 : vector<1x8x32xf32> to vector<8x32xf32>
    %107 = vector.extract_strided_slice %100 {offsets = [3, 0, 0], sizes = [1, 8, 32], strides = [1, 1, 1]} : vector<4x8x32xf32> to vector<1x8x32xf32>
    %108 = vector.shape_cast %107 : vector<1x8x32xf32> to vector<8x32xf32>
    %109 = tpu.concatenate %102, %104, %106, %108 in 1 : vector<8x32xf32>, vector<8x32xf32>, vector<8x32xf32>, vector<8x32xf32> -> vector<8x128xf32>
    %110 = arith.truncf %109 : vector<8x128xf32> to vector<8x128xbf16>
    %c0_31 = arith.constant 0 : index
    %c0_32 = arith.constant 0 : index
    %c0_33 = arith.constant 0 : index
    %111 = vector.load %arg6[%c0_31, %c0_32, %c0_33] : memref<2x128x128xbf16, #tpu.memory_space<vmem>>, vector<1x128x128xbf16>
    %112 = vector.shape_cast %111 : vector<1x128x128xbf16> to vector<128x128xbf16>
    %cst_34 = arith.constant dense<0.000000e+00> : vector<8x128xf32>
    %113 = tpu.matmul %110, %112, %cst_34 {dimension_numbers = #tpu.dot_dimension_numbers<[1], [0], [0], [1], [0, 0, 1, 1], [], []>} : vector<8x128xbf16>, vector<128x128xbf16>, vector<8x128xf32> -> vector<8x128xf32>
    %114 = arith.addf %0, %113 : vector<8x128xf32>
    %c0_35 = arith.constant 0 : index
    %c0_36 = arith.constant 0 : index
    %115 = vector.load %arg7[%c0_35, %c0_36] : memref<2x128xf32, #tpu.memory_space<vmem>>, vector<1x128xf32>
    %116 = vector.shape_cast %115 : vector<1x128xf32> to vector<128xf32>
    %117 = arith.mulf %114, %114 : vector<8x128xf32>
    %cst_37 = arith.constant dense<0.000000e+00> : vector<8xf32>
    %118 = vector.multi_reduction <add>, %117, %cst_37 [1] : vector<8x128xf32> to vector<8xf32>
    %119 = vector.shape_cast %118 : vector<8xf32> to vector<8x1xf32>
    %cst_38 = arith.constant 1.280000e+02 : f32
    %120 = vector.broadcast %cst_38 : f32 to vector<8x1xf32>
    %121 = arith.divf %119, %120 : vector<8x1xf32>
    %cst_39 = arith.constant 9.99999997E-7 : f32
    %122 = vector.broadcast %cst_39 : f32 to vector<8x1xf32>
    %123 = arith.addf %121, %122 : vector<8x1xf32>
    %124 = math.rsqrt %123 : vector<8x1xf32>
    %125 = vector.broadcast %124 : vector<8x1xf32> to vector<8x128xf32>
    %126 = arith.mulf %114, %125 : vector<8x128xf32>
    %127 = vector.shape_cast %116 : vector<128xf32> to vector<1x128xf32>
    %128 = vector.broadcast %127 : vector<1x128xf32> to vector<8x128xf32>
    %129 = arith.mulf %126, %128 : vector<8x128xf32>
    %130 = arith.truncf %129 : vector<8x128xf32> to vector<8x128xbf16>
    %c0_40 = arith.constant 0 : index
    %c0_41 = arith.constant 0 : index
    %c0_42 = arith.constant 0 : index
    %131 = vector.load %arg8[%c0_40, %c0_41, %c0_42] : memref<2x128x512xbf16, #tpu.memory_space<vmem>>, vector<1x128x512xbf16>
    %132 = vector.shape_cast %131 : vector<1x128x512xbf16> to vector<128x512xbf16>
    %cst_43 = arith.constant dense<0.000000e+00> : vector<8x512xf32>
    %133 = tpu.matmul %130, %132, %cst_43 {dimension_numbers = #tpu.dot_dimension_numbers<[1], [0], [0], [1], [0, 0, 1, 1], [], []>} : vector<8x128xbf16>, vector<128x512xbf16>, vector<8x512xf32> -> vector<8x512xf32>
    %134 = vector.extract_strided_slice %133 {offsets = [0, 0], sizes = [8, 256], strides = [1, 1]} : vector<8x512xf32> to vector<8x256xf32>
    %135 = vector.extract_strided_slice %133 {offsets = [0, 256], sizes = [8, 256], strides = [1, 1]} : vector<8x512xf32> to vector<8x256xf32>
    %136 = arith.negf %134 : vector<8x256xf32>
    %137 = math.exp %136 : vector<8x256xf32>
    %cst_44 = arith.constant 1.000000e+00 : f32
    %138 = vector.broadcast %cst_44 : f32 to vector<8x256xf32>
    %139 = arith.addf %138, %137 : vector<8x256xf32>
    %140 = arith.divf %138, %139 : vector<8x256xf32>
    %141 = arith.mulf %134, %140 : vector<8x256xf32>
    %142 = arith.mulf %141, %135 : vector<8x256xf32>
    %143 = arith.truncf %142 : vector<8x256xf32> to vector<8x256xbf16>
    %c0_45 = arith.constant 0 : index
    %c0_46 = arith.constant 0 : index
    %c0_47 = arith.constant 0 : index
    %144 = vector.load %arg9[%c0_45, %c0_46, %c0_47] : memref<2x256x128xbf16, #tpu.memory_space<vmem>>, vector<1x256x128xbf16>
    %145 = vector.shape_cast %144 : vector<1x256x128xbf16> to vector<256x128xbf16>
    %cst_48 = arith.constant dense<0.000000e+00> : vector<8x128xf32>
    %146 = tpu.matmul %143, %145, %cst_48 {dimension_numbers = #tpu.dot_dimension_numbers<[1], [0], [0], [1], [0, 0, 1, 1], [], []>} : vector<8x256xbf16>, vector<256x128xbf16>, vector<8x128xf32> -> vector<8x128xf32>
    %147 = arith.addf %114, %146 : vector<8x128xf32>
    %c1 = arith.constant 1 : index
    %c0_49 = arith.constant 0 : index
    %148 = vector.load %arg4[%c1, %c0_49] : memref<2x128xf32, #tpu.memory_space<vmem>>, vector<1x128xf32>
    %149 = vector.shape_cast %148 : vector<1x128xf32> to vector<128xf32>
    %150 = arith.mulf %147, %147 : vector<8x128xf32>
    %cst_50 = arith.constant dense<0.000000e+00> : vector<8xf32>
    %151 = vector.multi_reduction <add>, %150, %cst_50 [1] : vector<8x128xf32> to vector<8xf32>
    %152 = vector.shape_cast %151 : vector<8xf32> to vector<8x1xf32>
    %cst_51 = arith.constant 1.280000e+02 : f32
    %153 = vector.broadcast %cst_51 : f32 to vector<8x1xf32>
    %154 = arith.divf %152, %153 : vector<8x1xf32>
    %cst_52 = arith.constant 9.99999997E-7 : f32
    %155 = vector.broadcast %cst_52 : f32 to vector<8x1xf32>
    %156 = arith.addf %154, %155 : vector<8x1xf32>
    %157 = math.rsqrt %156 : vector<8x1xf32>
    %158 = vector.broadcast %157 : vector<8x1xf32> to vector<8x128xf32>
    %159 = arith.mulf %147, %158 : vector<8x128xf32>
    %160 = vector.shape_cast %149 : vector<128xf32> to vector<1x128xf32>
    %161 = vector.broadcast %160 : vector<1x128xf32> to vector<8x128xf32>
    %162 = arith.mulf %159, %161 : vector<8x128xf32>
    %163 = arith.truncf %162 : vector<8x128xf32> to vector<8x128xbf16>
    %c1_53 = arith.constant 1 : index
    %c0_54 = arith.constant 0 : index
    %c0_55 = arith.constant 0 : index
    %164 = vector.load %arg5[%c1_53, %c0_54, %c0_55] : memref<2x128x384xbf16, #tpu.memory_space<vmem>>, vector<1x128x384xbf16>
    %165 = vector.shape_cast %164 : vector<1x128x384xbf16> to vector<128x384xbf16>
    %cst_56 = arith.constant dense<0.000000e+00> : vector<8x384xf32>
    %166 = tpu.matmul %163, %165, %cst_56 {dimension_numbers = #tpu.dot_dimension_numbers<[1], [0], [0], [1], [0, 0, 1, 1], [], []>} : vector<8x128xbf16>, vector<128x384xbf16>, vector<8x384xf32> -> vector<8x384xf32>
    %167 = vector.extract_strided_slice %166 {offsets = [0, 0], sizes = [8, 32], strides = [1, 1]} : vector<8x384xf32> to vector<8x32xf32>
    %168 = vector.extract_strided_slice %166 {offsets = [0, 32], sizes = [8, 32], strides = [1, 1]} : vector<8x384xf32> to vector<8x32xf32>
    %169 = vector.extract_strided_slice %166 {offsets = [0, 64], sizes = [8, 32], strides = [1, 1]} : vector<8x384xf32> to vector<8x32xf32>
    %170 = vector.extract_strided_slice %166 {offsets = [0, 96], sizes = [8, 32], strides = [1, 1]} : vector<8x384xf32> to vector<8x32xf32>
    %171 = vector.shape_cast %167 : vector<8x32xf32> to vector<1x8x32xf32>
    %172 = vector.shape_cast %168 : vector<8x32xf32> to vector<1x8x32xf32>
    %173 = vector.shape_cast %169 : vector<8x32xf32> to vector<1x8x32xf32>
    %174 = vector.shape_cast %170 : vector<8x32xf32> to vector<1x8x32xf32>
    %175 = tpu.concatenate %171, %172, %173, %174 in 0 : vector<1x8x32xf32>, vector<1x8x32xf32>, vector<1x8x32xf32>, vector<1x8x32xf32> -> vector<4x8x32xf32>
    %176 = vector.extract_strided_slice %175 {offsets = [0, 0, 16], sizes = [4, 8, 16], strides = [1, 1, 1]} : vector<4x8x32xf32> to vector<4x8x16xf32>
    %cst_57 = arith.constant 0.000000e+00 : f32
    %177 = vector.broadcast %cst_57 : f32 to vector<4x8x16xf32>
    %178 = arith.subf %177, %176 : vector<4x8x16xf32>
    %179 = vector.extract_strided_slice %175 {offsets = [0, 0, 0], sizes = [4, 8, 16], strides = [1, 1, 1]} : vector<4x8x32xf32> to vector<4x8x16xf32>
    %180 = tpu.concatenate %178, %179 in 2 : vector<4x8x16xf32>, vector<4x8x16xf32> -> vector<4x8x32xf32>
    %181 = vector.shape_cast %1 : vector<8x32xf32> to vector<1x8x32xf32>
    %182 = vector.broadcast %181 : vector<1x8x32xf32> to vector<4x8x32xf32>
    %183 = arith.mulf %175, %182 : vector<4x8x32xf32>
    %184 = vector.shape_cast %2 : vector<8x32xf32> to vector<1x8x32xf32>
    %185 = vector.broadcast %184 : vector<1x8x32xf32> to vector<4x8x32xf32>
    %186 = arith.mulf %180, %185 : vector<4x8x32xf32>
    %187 = arith.addf %183, %186 : vector<4x8x32xf32>
    %188 = vector.extract_strided_slice %166 {offsets = [0, 128], sizes = [8, 32], strides = [1, 1]} : vector<8x384xf32> to vector<8x32xf32>
    %189 = vector.extract_strided_slice %166 {offsets = [0, 160], sizes = [8, 32], strides = [1, 1]} : vector<8x384xf32> to vector<8x32xf32>
    %190 = vector.extract_strided_slice %166 {offsets = [0, 192], sizes = [8, 32], strides = [1, 1]} : vector<8x384xf32> to vector<8x32xf32>
    %191 = vector.extract_strided_slice %166 {offsets = [0, 224], sizes = [8, 32], strides = [1, 1]} : vector<8x384xf32> to vector<8x32xf32>
    %192 = vector.shape_cast %188 : vector<8x32xf32> to vector<1x8x32xf32>
    %193 = vector.shape_cast %189 : vector<8x32xf32> to vector<1x8x32xf32>
    %194 = vector.shape_cast %190 : vector<8x32xf32> to vector<1x8x32xf32>
    %195 = vector.shape_cast %191 : vector<8x32xf32> to vector<1x8x32xf32>
    %196 = tpu.concatenate %192, %193, %194, %195 in 0 : vector<1x8x32xf32>, vector<1x8x32xf32>, vector<1x8x32xf32>, vector<1x8x32xf32> -> vector<4x8x32xf32>
    %197 = vector.extract_strided_slice %196 {offsets = [0, 0, 16], sizes = [4, 8, 16], strides = [1, 1, 1]} : vector<4x8x32xf32> to vector<4x8x16xf32>
    %cst_58 = arith.constant 0.000000e+00 : f32
    %198 = vector.broadcast %cst_58 : f32 to vector<4x8x16xf32>
    %199 = arith.subf %198, %197 : vector<4x8x16xf32>
    %200 = vector.extract_strided_slice %196 {offsets = [0, 0, 0], sizes = [4, 8, 16], strides = [1, 1, 1]} : vector<4x8x32xf32> to vector<4x8x16xf32>
    %201 = tpu.concatenate %199, %200 in 2 : vector<4x8x16xf32>, vector<4x8x16xf32> -> vector<4x8x32xf32>
    %202 = vector.shape_cast %1 : vector<8x32xf32> to vector<1x8x32xf32>
    %203 = vector.broadcast %202 : vector<1x8x32xf32> to vector<4x8x32xf32>
    %204 = arith.mulf %196, %203 : vector<4x8x32xf32>
    %205 = vector.shape_cast %2 : vector<8x32xf32> to vector<1x8x32xf32>
    %206 = vector.broadcast %205 : vector<1x8x32xf32> to vector<4x8x32xf32>
    %207 = arith.mulf %201, %206 : vector<4x8x32xf32>
    %208 = arith.addf %204, %207 : vector<4x8x32xf32>
    %209 = vector.extract_strided_slice %166 {offsets = [0, 256], sizes = [8, 32], strides = [1, 1]} : vector<8x384xf32> to vector<8x32xf32>
    %210 = vector.extract_strided_slice %166 {offsets = [0, 288], sizes = [8, 32], strides = [1, 1]} : vector<8x384xf32> to vector<8x32xf32>
    %211 = vector.extract_strided_slice %166 {offsets = [0, 320], sizes = [8, 32], strides = [1, 1]} : vector<8x384xf32> to vector<8x32xf32>
    %212 = vector.extract_strided_slice %166 {offsets = [0, 352], sizes = [8, 32], strides = [1, 1]} : vector<8x384xf32> to vector<8x32xf32>
    %213 = vector.shape_cast %209 : vector<8x32xf32> to vector<1x8x32xf32>
    %214 = vector.shape_cast %210 : vector<8x32xf32> to vector<1x8x32xf32>
    %215 = vector.shape_cast %211 : vector<8x32xf32> to vector<1x8x32xf32>
    %216 = vector.shape_cast %212 : vector<8x32xf32> to vector<1x8x32xf32>
    %217 = tpu.concatenate %213, %214, %215, %216 in 0 : vector<1x8x32xf32>, vector<1x8x32xf32>, vector<1x8x32xf32>, vector<1x8x32xf32> -> vector<4x8x32xf32>
    %c1_59 = arith.constant 1 : index
    %c0_60 = arith.constant 0 : index
    %c0_61 = arith.constant 0 : index
    %c0_62 = arith.constant 0 : index
    %c0_63 = arith.constant 0 : index
    %218 = vector.load %arg14[%c1_59, %c0_60, %c0_61, %c0_62, %c0_63] : memref<2x1x4x8x32xf32, #tpu.memory_space<vmem>>, vector<1x1x4x8x32xf32>
    %219 = vector.shape_cast %218 : vector<1x1x4x8x32xf32> to vector<4x8x32xf32>
    %220 = vector.shape_cast %208 : vector<4x8x32xf32> to vector<1x1x4x8x32xf32>
    tpu.vector_store %arg14[%c1_59, %c0_60, %c0_61, %c0_62, %c0_63], %220 {strides = array<i32>} : memref<2x1x4x8x32xf32, #tpu.memory_space<vmem>>, vector<1x1x4x8x32xf32>,
    %c1_64 = arith.constant 1 : index
    %c0_65 = arith.constant 0 : index
    %c0_66 = arith.constant 0 : index
    %c0_67 = arith.constant 0 : index
    %c0_68 = arith.constant 0 : index
    %221 = vector.load %arg15[%c1_64, %c0_65, %c0_66, %c0_67, %c0_68] : memref<2x1x4x8x32xf32, #tpu.memory_space<vmem>>, vector<1x1x4x8x32xf32>
    %222 = vector.shape_cast %221 : vector<1x1x4x8x32xf32> to vector<4x8x32xf32>
    %223 = vector.shape_cast %217 : vector<4x8x32xf32> to vector<1x1x4x8x32xf32>
    tpu.vector_store %arg15[%c1_64, %c0_65, %c0_66, %c0_67, %c0_68], %223 {strides = array<i32>} : memref<2x1x4x8x32xf32, #tpu.memory_space<vmem>>, vector<1x1x4x8x32xf32>,
    %224 = arith.truncf %187 : vector<4x8x32xf32> to vector<4x8x32xbf16>
    %225 = arith.truncf %208 : vector<4x8x32xf32> to vector<4x8x32xbf16>
    "tpu.trace_start"() <{level = 10 : i32, message = "hqd,hkd->hqk"}> : () -> ()
    %cst_69 = arith.constant dense<0.000000e+00> : vector<4x8x8xf32>
    %226 = tpu.matmul %224, %225, %cst_69 {dimension_numbers = #tpu.dot_dimension_numbers<[2], [2], [1], [1], [0, 0, 0, 1, 1, 1], [0], [0]>} : vector<4x8x32xbf16>, vector<4x8x32xbf16>, vector<4x8x8xf32> -> vector<4x8x8xf32>
    "tpu.trace_stop"() : () -> ()
    %cst_70 = arith.constant 0.176776692 : f32
    %227 = vector.broadcast %cst_70 : f32 to vector<4x8x8xf32>
    %228 = arith.mulf %226, %227 : vector<4x8x8xf32>
    %cst_71 = arith.constant -1.000000e+30 : f32
    %229 = vector.broadcast %cst_71 : f32 to vector<4x8x8xf32>
    %230 = arith.select %5, %228, %229 : vector<4x8x8xi1>, vector<4x8x8xf32>
    %cst_72 = arith.constant dense<0xFF800000> : vector<4x8xf32>
    %231 = vector.multi_reduction <maximumf>, %230, %cst_72 [2] : vector<4x8x8xf32> to vector<4x8xf32>
    %232 = vector.shape_cast %231 : vector<4x8xf32> to vector<4x8x1xf32>
    %233 = vector.broadcast %232 : vector<4x8x1xf32> to vector<4x8x8xf32>
    %234 = arith.subf %230, %233 : vector<4x8x8xf32>
    %235 = math.exp %234 : vector<4x8x8xf32>
    %cst_73 = arith.constant dense<0.000000e+00> : vector<4x8xf32>
    %236 = vector.multi_reduction <add>, %235, %cst_73 [2] : vector<4x8x8xf32> to vector<4x8xf32>
    %237 = vector.shape_cast %236 : vector<4x8xf32> to vector<4x8x1xf32>
    %238 = vector.broadcast %237 : vector<4x8x1xf32> to vector<4x8x8xf32>
    %239 = arith.divf %235, %238 : vector<4x8x8xf32>
    %240 = arith.truncf %239 : vector<4x8x8xf32> to vector<4x8x8xbf16>
    %241 = arith.truncf %217 : vector<4x8x32xf32> to vector<4x8x32xbf16>
    "tpu.trace_start"() <{level = 10 : i32, message = "hqk,hkd->hqd"}> : () -> ()
    %cst_74 = arith.constant dense<0.000000e+00> : vector<4x8x32xf32>
    %242 = tpu.matmul %240, %241, %cst_74 {dimension_numbers = #tpu.dot_dimension_numbers<[2], [1], [1], [2], [0, 0, 0, 1, 1, 2], [0], [0]>} : vector<4x8x8xbf16>, vector<4x8x32xbf16>, vector<4x8x32xf32> -> vector<4x8x32xf32>
    "tpu.trace_stop"() : () -> ()
    %243 = vector.extract_strided_slice %242 {offsets = [0, 0, 0], sizes = [1, 8, 32], strides = [1, 1, 1]} : vector<4x8x32xf32> to vector<1x8x32xf32>
    %244 = vector.shape_cast %243 : vector<1x8x32xf32> to vector<8x32xf32>
    %245 = vector.extract_strided_slice %242 {offsets = [1, 0, 0], sizes = [1, 8, 32], strides = [1, 1, 1]} : vector<4x8x32xf32> to vector<1x8x32xf32>
    %246 = vector.shape_cast %245 : vector<1x8x32xf32> to vector<8x32xf32>
    %247 = vector.extract_strided_slice %242 {offsets = [2, 0, 0], sizes = [1, 8, 32], strides = [1, 1, 1]} : vector<4x8x32xf32> to vector<1x8x32xf32>
    %248 = vector.shape_cast %247 : vector<1x8x32xf32> to vector<8x32xf32>
    %249 = vector.extract_strided_slice %242 {offsets = [3, 0, 0], sizes = [1, 8, 32], strides = [1, 1, 1]} : vector<4x8x32xf32> to vector<1x8x32xf32>
    %250 = vector.shape_cast %249 : vector<1x8x32xf32> to vector<8x32xf32>
    %251 = tpu.concatenate %244, %246, %248, %250 in 1 : vector<8x32xf32>, vector<8x32xf32>, vector<8x32xf32>, vector<8x32xf32> -> vector<8x128xf32>
    %252 = arith.truncf %251 : vector<8x128xf32> to vector<8x128xbf16>
    %c1_75 = arith.constant 1 : index
    %c0_76 = arith.constant 0 : index
    %c0_77 = arith.constant 0 : index
    %253 = vector.load %arg6[%c1_75, %c0_76, %c0_77] : memref<2x128x128xbf16, #tpu.memory_space<vmem>>, vector<1x128x128xbf16>
    %254 = vector.shape_cast %253 : vector<1x128x128xbf16> to vector<128x128xbf16>
    %cst_78 = arith.constant dense<0.000000e+00> : vector<8x128xf32>
    %255 = tpu.matmul %252, %254, %cst_78 {dimension_numbers = #tpu.dot_dimension_numbers<[1], [0], [0], [1], [0, 0, 1, 1], [], []>} : vector<8x128xbf16>, vector<128x128xbf16>, vector<8x128xf32> -> vector<8x128xf32>
    %256 = arith.addf %147, %255 : vector<8x128xf32>
    %c1_79 = arith.constant 1 : index
    %c0_80 = arith.constant 0 : index
    %257 = vector.load %arg7[%c1_79, %c0_80] : memref<2x128xf32, #tpu.memory_space<vmem>>, vector<1x128xf32>
    %258 = vector.shape_cast %257 : vector<1x128xf32> to vector<128xf32>
    %259 = arith.mulf %256, %256 : vector<8x128xf32>
    %cst_81 = arith.constant dense<0.000000e+00> : vector<8xf32>
    %260 = vector.multi_reduction <add>, %259, %cst_81 [1] : vector<8x128xf32> to vector<8xf32>
    %261 = vector.shape_cast %260 : vector<8xf32> to vector<8x1xf32>
    %cst_82 = arith.constant 1.280000e+02 : f32
    %262 = vector.broadcast %cst_82 : f32 to vector<8x1xf32>
    %263 = arith.divf %261, %262 : vector<8x1xf32>
    %cst_83 = arith.constant 9.99999997E-7 : f32
    %264 = vector.broadcast %cst_83 : f32 to vector<8x1xf32>
    %265 = arith.addf %263, %264 : vector<8x1xf32>
    %266 = math.rsqrt %265 : vector<8x1xf32>
    %267 = vector.broadcast %266 : vector<8x1xf32> to vector<8x128xf32>
    %268 = arith.mulf %256, %267 : vector<8x128xf32>
    %269 = vector.shape_cast %258 : vector<128xf32> to vector<1x128xf32>
    %270 = vector.broadcast %269 : vector<1x128xf32> to vector<8x128xf32>
    %271 = arith.mulf %268, %270 : vector<8x128xf32>
    %272 = arith.truncf %271 : vector<8x128xf32> to vector<8x128xbf16>
    %c1_84 = arith.constant 1 : index
    %c0_85 = arith.constant 0 : index
    %c0_86 = arith.constant 0 : index
    %273 = vector.load %arg8[%c1_84, %c0_85, %c0_86] : memref<2x128x512xbf16, #tpu.memory_space<vmem>>, vector<1x128x512xbf16>
    %274 = vector.shape_cast %273 : vector<1x128x512xbf16> to vector<128x512xbf16>
    %cst_87 = arith.constant dense<0.000000e+00> : vector<8x512xf32>
    %275 = tpu.matmul %272, %274, %cst_87 {dimension_numbers = #tpu.dot_dimension_numbers<[1], [0], [0], [1], [0, 0, 1, 1], [], []>} : vector<8x128xbf16>, vector<128x512xbf16>, vector<8x512xf32> -> vector<8x512xf32>
    %276 = vector.extract_strided_slice %275 {offsets = [0, 0], sizes = [8, 256], strides = [1, 1]} : vector<8x512xf32> to vector<8x256xf32>
    %277 = vector.extract_strided_slice %275 {offsets = [0, 256], sizes = [8, 256], strides = [1, 1]} : vector<8x512xf32> to vector<8x256xf32>
    %278 = arith.negf %276 : vector<8x256xf32>
    %279 = math.exp %278 : vector<8x256xf32>
    %cst_88 = arith.constant 1.000000e+00 : f32
    %280 = vector.broadcast %cst_88 : f32 to vector<8x256xf32>
    %281 = arith.addf %280, %279 : vector<8x256xf32>
    %282 = arith.divf %280, %281 : vector<8x256xf32>
    %283 = arith.mulf %276, %282 : vector<8x256xf32>
    %284 = arith.mulf %283, %277 : vector<8x256xf32>
    %285 = arith.truncf %284 : vector<8x256xf32> to vector<8x256xbf16>
    %c1_89 = arith.constant 1 : index
    %c0_90 = arith.constant 0 : index
    %c0_91 = arith.constant 0 : index
    %286 = vector.load %arg9[%c1_89, %c0_90, %c0_91] : memref<2x256x128xbf16, #tpu.memory_space<vmem>>, vector<1x256x128xbf16>
    %287 = vector.shape_cast %286 : vector<1x256x128xbf16> to vector<256x128xbf16>
    %cst_92 = arith.constant dense<0.000000e+00> : vector<8x128xf32>
    %288 = tpu.matmul %285, %287, %cst_92 {dimension_numbers = #tpu.dot_dimension_numbers<[1], [0], [0], [1], [0, 0, 1, 1], [], []>} : vector<8x256xbf16>, vector<256x128xbf16>, vector<8x128xf32> -> vector<8x128xf32>
    %289 = arith.addf %256, %288 : vector<8x128xf32>
    %c0_93 = arith.constant 0 : index
    %c0_94 = arith.constant 0 : index
    %290 = vector.load %arg10[%c0_93, %c0_94] : memref<1x128xf32, #tpu.memory_space<vmem>>, vector<1x128xf32>
    %291 = arith.mulf %289, %289 : vector<8x128xf32>
    %cst_95 = arith.constant dense<0.000000e+00> : vector<8xf32>
    %292 = vector.multi_reduction <add>, %291, %cst_95 [1] : vector<8x128xf32> to vector<8xf32>
    %293 = vector.shape_cast %292 : vector<8xf32> to vector<8x1xf32>
    %cst_96 = arith.constant 1.280000e+02 : f32
    %294 = vector.broadcast %cst_96 : f32 to vector<8x1xf32>
    %295 = arith.divf %293, %294 : vector<8x1xf32>
    %cst_97 = arith.constant 9.99999997E-7 : f32
    %296 = vector.broadcast %cst_97 : f32 to vector<8x1xf32>
    %297 = arith.addf %295, %296 : vector<8x1xf32>
    %298 = math.rsqrt %297 : vector<8x1xf32>
    %299 = vector.broadcast %298 : vector<8x1xf32> to vector<8x128xf32>
    %300 = arith.mulf %289, %299 : vector<8x128xf32>
    %301 = vector.broadcast %290 : vector<1x128xf32> to vector<8x128xf32>
    %302 = arith.mulf %300, %301 : vector<8x128xf32>
    %303 = arith.truncf %302 : vector<8x128xf32> to vector<8x128xbf16>
    %c0_98 = arith.constant 0 : index
    %c0_99 = arith.constant 0 : index
    %304 = vector.load %arg11[%c0_98, %c0_99] : memref<128x512xbf16, #tpu.memory_space<vmem>>, vector<128x512xbf16>
    %cst_100 = arith.constant dense<0.000000e+00> : vector<8x512xf32>
    %305 = tpu.matmul %303, %304, %cst_100 {dimension_numbers = #tpu.dot_dimension_numbers<[1], [0], [0], [1], [0, 0, 1, 1], [], []>} : vector<8x128xbf16>, vector<128x512xbf16>, vector<8x512xf32> -> vector<8x512xf32>
    %c0_101 = arith.constant 0 : index
    %c0_102 = arith.constant 0 : index
    %306 = vector.load %arg12[%c0_101, %c0_102] : memref<1x512xf32, #tpu.memory_space<vmem>>, vector<1x512xf32>
    %307 = vector.broadcast %306 : vector<1x512xf32> to vector<8x512xf32>
    %308 = arith.addf %305, %307 : vector<8x512xf32>
    %c0_103 = arith.constant 0 : index
    %c0_104 = arith.constant 0 : index
    %309 = vector.load %arg13[%c0_103, %c0_104] : memref<8x512xf32, #tpu.memory_space<vmem>>, vector<8x512xf32>
    tpu.vector_store %arg13[%c0_103, %c0_104], %308 {strides = array<i32>} : memref<8x512xf32, #tpu.memory_space<vmem>>, vector<8x512xf32>,
    return
  }
  func.func @transform_0(%arg0: i32) -> (i32, i32) {
    %c0_i32 = arith.constant 0 : i32
    %c0_i32_0 = arith.constant 0 : i32
    return %arg0, %c0_i32 : i32, i32
  }
  func.func @transform_1(%arg0: i32) -> (i32, i32) {
    %c0_i32 = arith.constant 0 : i32
    %c0_i32_0 = arith.constant 0 : i32
    %c0_i32_1 = arith.constant 0 : i32
    return %c0_i32, %c0_i32_0 : i32, i32
  }
  func.func @transform_2(%arg0: i32) -> (i32, i32) {
    %c0_i32 = arith.constant 0 : i32
    %c0_i32_0 = arith.constant 0 : i32
    %c0_i32_1 = arith.constant 0 : i32
    return %c0_i32, %c0_i32_0 : i32, i32
  }
  func.func @transform_3(%arg0: i32) -> (i32, i32) {
    %c0_i32 = arith.constant 0 : i32
    %c0_i32_0 = arith.constant 0 : i32
    %c0_i32_1 = arith.constant 0 : i32
    return %c0_i32, %c0_i32_0 : i32, i32
  }
  func.func @transform_4(%arg0: i32) -> (i32, i32, i32) {
    %c0_i32 = arith.constant 0 : i32
    %c0_i32_0 = arith.constant 0 : i32
    %c0_i32_1 = arith.constant 0 : i32
    %c0_i32_2 = arith.constant 0 : i32
    return %c0_i32, %c0_i32_0, %c0_i32_1 : i32, i32, i32
  }
  func.func @transform_5(%arg0: i32) -> (i32, i32, i32) {
    %c0_i32 = arith.constant 0 : i32
    %c0_i32_0 = arith.constant 0 : i32
    %c0_i32_1 = arith.constant 0 : i32
    %c0_i32_2 = arith.constant 0 : i32
    return %c0_i32, %c0_i32_0, %c0_i32_1 : i32, i32, i32
  }
  func.func @transform_6(%arg0: i32) -> (i32, i32) {
    %c0_i32 = arith.constant 0 : i32
    %c0_i32_0 = arith.constant 0 : i32
    %c0_i32_1 = arith.constant 0 : i32
    return %c0_i32, %c0_i32_0 : i32, i32
  }
  func.func @transform_7(%arg0: i32) -> (i32, i32, i32) {
    %c0_i32 = arith.constant 0 : i32
    %c0_i32_0 = arith.constant 0 : i32
    %c0_i32_1 = arith.constant 0 : i32
    %c0_i32_2 = arith.constant 0 : i32
    return %c0_i32, %c0_i32_0, %c0_i32_1 : i32, i32, i32
  }
  func.func @transform_8(%arg0: i32) -> (i32, i32, i32) {
    %c0_i32 = arith.constant 0 : i32
    %c0_i32_0 = arith.constant 0 : i32
    %c0_i32_1 = arith.constant 0 : i32
    %c0_i32_2 = arith.constant 0 : i32
    return %c0_i32, %c0_i32_0, %c0_i32_1 : i32, i32, i32
  }
  func.func @transform_9(%arg0: i32) -> (i32, i32) {
    %c0_i32 = arith.constant 0 : i32
    %c0_i32_0 = arith.constant 0 : i32
    %c0_i32_1 = arith.constant 0 : i32
    return %c0_i32, %c0_i32_0 : i32, i32
  }
  func.func @transform_10(%arg0: i32) -> (i32, i32) {
    %c0_i32 = arith.constant 0 : i32
    %c0_i32_0 = arith.constant 0 : i32
    %c0_i32_1 = arith.constant 0 : i32
    return %c0_i32, %c0_i32_0 : i32, i32
  }
  func.func @transform_11(%arg0: i32) -> (i32, i32) {
    %c0_i32 = arith.constant 0 : i32
    %c0_i32_0 = arith.constant 0 : i32
    %c0_i32_1 = arith.constant 0 : i32
    return %c0_i32, %c0_i32_0 : i32, i32
  }
  func.func @transform_12(%arg0: i32) -> (i32, i32) {
    %c0_i32 = arith.constant 0 : i32
    %c0_i32_0 = arith.constant 0 : i32
    return %arg0, %c0_i32 : i32, i32
  }
  func.func @transform_13(%arg0: i32) -> (i32, i32, i32, i32, i32) {
    %c0_i32 = arith.constant 0 : i32
    %c0_i32_0 = arith.constant 0 : i32
    %c0_i32_1 = arith.constant 0 : i32
    %c0_i32_2 = arith.constant 0 : i32
    %c0_i32_3 = arith.constant 0 : i32
    return %c0_i32, %arg0, %c0_i32_0, %c0_i32_1, %c0_i32_2 : i32, i32, i32, i32, i32
  }
  func.func @transform_14(%arg0: i32) -> (i32, i32, i32, i32, i32) {
    %c0_i32 = arith.constant 0 : i32
    %c0_i32_0 = arith.constant 0 : i32
    %c0_i32_1 = arith.constant 0 : i32
    %c0_i32_2 = arith.constant 0 : i32
    %c0_i32_3 = arith.constant 0 : i32
    return %c0_i32, %arg0, %c0_i32_0, %c0_i32_1, %c0_i32_2 : i32, i32, i32, i32, i32
  }
}

</mosaic_0001>

<bundles_post_ra>
// kernel: my_llama_forward.1
= control target key start
LH: loop header
LB: loop body
LE: loop exit
PB: predicated region body
PF: predicated region fallthrough
CT: control target
= control target key end

     0   :  { %s6080_s0 = inlined_call_operand.vmem [shape: f32[16,128], index: 0, kind: input, shape index: {}]   ;;  %s6081_s1 = inlined_call_operand.vmem [shape: f32[8,32], index: 1, kind: input, shape index: {}]   ;;  %s6082_s2 = inlined_call_operand.vmem [shape: f32[8,32], index: 2, kind: input, shape index: {}]   ;;  %s6083_s3 = inlined_call_operand.vmem [shape: f32[2,128], index: 3, kind: input, shape index: {}]   ;;  %s6084_s4 = inlined_call_operand.hbm [shape: bf16[2,128,384], index: 4, kind: input, shape index: {}]   ;;  %s6085_s5 = inlined_call_operand.hbm [shape: bf16[2,128,128], index: 5, kind: input, shape index: {}]   ;;  %s6086_s6 = inlined_call_operand.vmem [shape: f32[2,128], index: 6, kind: input, shape index: {}]   ;;  %s6087_s7 = inlined_call_operand.hbm [shape: bf16[2,128,512], index: 7, kind: input, shape index: {}]   ;;  %s6088_s8 = inlined_call_operand.vmem [shape: bf16[2,256,128], index: 8, kind: input, shape index: {}]   ;;  %s6089_s9 = inlined_call_operand.vmem [shape: f32[1,128], index: 9, kind: input, shape index: {}]   ;;  %s6090_s10 = inlined_call_operand.hbm [shape: bf16[128,512], index: 10, kind: input, shape index: {}]   ;;  %s6091_s11 = inlined_call_operand.vmem [shape: f32[1,512], index: 11, kind: input, shape index: {}]   ;;  %s6092_s12 = inlined_call_operand.hbm [shape: f32[16,512], index: 12, kind: output, shape index: {0}]   ;;  %s6093_s13 = inlined_call_operand.vmem [shape: f32[2,2,4,8,32], index: 13, kind: output, shape index: {1}]   ;;  %s6094_s14 = inlined_call_operand.vmem [shape: f32[2,2,4,8,32], index: 14, kind: output, shape index: {2}]  }
   0x1   :  { %6107 = sst [smem:[#allocation23_spill]] %s6085_s5 }
   0x2   :  { %6108 = sst [smem:[#allocation24_spill]] %s6092_s12 }
   0x3   :  { %6109 = sst [smem:[#allocation25_spill]] %s6093_s13 }
   0x4   :  { %6110 = sst [smem:[#allocation26_spill]] %s6094_s14 }
   0x5   :  { %20 = vsyncpa [#allocation3], 0 }
   0x6   :  { %21 = vsyncpa [#allocation6], 0 }
   0x7   :  { %22 = vsyncpa [#allocation9], 0 }
   0x8   :  { %23 = vsyncpa [#allocation4], 0 }
   0x9   :  { %25 = vsyncpa [#allocation4 + $0x1], 0  ;;  %s5294_s29 = smov 0   ;;  %s5296_s30 = smov 0  }
   0xa   :  { %s5298_s15 = smov 0   ;;  %s5300_s16 = smov 0  }
   0xb LB: > { %6111 = sst [smem:[#allocation17_spill]] %s5186_s29  ;;  %s5315_s17 = sadd.s32 4294967295, %s5198_s16   ;;  %s5198_s16 = sphi %s5300_s16, %s6142_s16   ;;  %s5194_s15 = sphi %s5298_s15, %s6144_s15   ;;  %s5190_s30 = sphi %s5296_s30, %s6146_s30   ;;  %s5186_s29 = sphi %s5294_s29, %s6145_s29  }
   0xc   : > { %6112 = sst [smem:[#allocation18_spill]] %s5194_s15  ;;  %s4026_s18 = sadd.s32 4294967294, %s5198_s16  }
   0xd   : > { %6113 = sst [smem:[#allocation19_spill]] %s5198_s16  ;;  %s5319_s19 = sadd.s32 1, %s5198_s16  }
   0xe   : > { %6114 = sst [smem:[#allocation20_spill]] %s5319_s19  ;;  %s295_s20 = sadd.s32 1, %s5194_s15 }
   0xf   : > { %s292_s21 = ssub.s32 %s5198_s16, %s5319_s19  ;;  %p305_p0 = scmp.ne.s32.totalorder %s5194_s15, %s5190_s30 }
  0x10   : > { %p293_p1 = scmp.eq.s32.totalorder %s292_s21, 0  ;;  %p306_p2 = scmp.eq.s32.totalorder %s5315_s17, 1 }
  0x11   : > { %p311_p3 = scmp.ne.s32.totalorder %s5190_s30, %s5186_s29  ;;  %p312_p4 = scmp.eq.s32.totalorder %s4026_s18, 1 }
  0x12   : > { %s5330_s22 = scalar_select %p293_p1, %s5194_s15, %s295_s20  }
  0x13   : > { %p5332_p5 = por %p306_p2, %p305_p0  ;;  %p5336_p6 = por %p312_p4, %p311_p3 }
  0x14   : > { %6115 = sst [smem:[#allocation21_spill]] %s5330_s22  ;;  %p4027_p7 = scmp.ge.s32.totalorder %s5198_s16, 1 }
  0x15   : > { %s6116_s23 = scalar_select %p5332_p5, 1, 0 }
  0x16   : > { %s6117_s24 = scalar_select %p5336_p6, 1, 0 }
  0x17   : > { %p371_p8 = scmp.lt.s32.totalorder %s5198_s16, 3  ;;  %p6100_p9 = scmp.eq.s32.totalorder %s5315_s17, 0 }
  0x18   : > { %6118 = sst [smem:[#allocation22_spill]] %s6117_s24  ;;  %s5200_s26 = smov [#allocation5]  }
  0x19   : > { %p5343_p10 = pnand %p4027_p7, %p371_p8  ;;  %s405_s27 = sshll.u32 %s5200_s26, 4  ;;  %s406_s27 = int_to_ptr.vmem [resolvable:$true] %s405_s27 }
  0x1a   : > { %s5201_s18 = smov [#allocation2]   ;;  %s6121_s5 = sld [smem:[#allocation23_spill]] }
  0x1b   : > { %s6119_s25 = scalar_select %p5343_p10, 1, 0 }
  0x1c   : > { %p4619_p11 = pneg %p5343_p10  ;;  %s392_s20 = sshll.u32 %s5201_s18, 4  ;;  %s5355_s20 = int_to_ptr.vmem [resolvable:$true] %s392_s20 }
  0x1e   : > { %p5351_p12 = pnand %p6100_p9, %p4619_p11 }
  0x20   : > { %s5012_s15 = scalar_lea.hbm %s6121_s5, 2048  ;;  %p5365_p0 = pneg %p5351_p12 }
  0x21   : > { %p5013_p13 = scmp.ne.s32.totalorder %s6121_s5, %s5012_s15  ;;  %p5019_p3 = scmp.lt.u32.totalorder %s5012_s15, %s6121_s5 }
  0x23   : > { %p5015_p1 = pnand %p5365_p0, %p5013_p13 }
  0x25   : > { %p5016_p2 = pneg %p5015_p1 }
  0x27   : > { %p5021_p4 = pnand %p5019_p3, %p5016_p2 }
  0x29   : > { %5024 = shalt.err (!%p5021_p4)
}
  0x2a   : > { %s5025_s22 = scalar_lea.vmem %s406_s27, 2048  ;;  %p5033_p9 = scmp.lt.s32.totalorder %s406_s27, %s406_s27 }
  0x2b   : > { %p5026_p7 = scmp.ne.s32.totalorder %s406_s27, %s5025_s22  ;;  %p5034_p6 = scmp.lt.s32.totalorder %s5025_s22, %s5025_s22 }
  0x2d   : > { %p5028_p8 = pnand %p5026_p7, %p5365_p0  ;;  %p5035_p5 = por %p5034_p6, %p5033_p9 }
  0x2f   : > { %p5029_p11 = pneg %p5028_p8 }
  0x31   : > { %p5036_p10 = pnand %p5035_p5, %p5029_p11 }
  0x33   : > { %5039 = shalt.err (!%p5036_p10)
}
  0x34   : > { %s5202_s19 = smov 64   ;;  %s5203_s24 = smov 4  }
  0x35   : > { %4625 = dma.hbm_to_vmem [thread:$0]  (!%p5351_p12), %s6121_s5, 2048, %s406_s27, [#allocation6], %s5202_s19, %s5202_s19, %s5203_s24  }
  0x36   : > { %s5040_s16 = scalar_lea.hbm %s6084_s4, 6144 }
  0x37   : > { %p5041_p13 = scmp.ne.s32.totalorder %s6084_s4, %s5040_s16  ;;  %p5047_p9 = scmp.lt.u32.totalorder %s5040_s16, %s6084_s4 }
  0x39   : > { %p5043_p5 = pnand %p5041_p13, %p5365_p0 }
  0x3b   : > { %p5044_p6 = pneg %p5043_p5 }
  0x3d   : > { %p5049_p10 = pnand %p5047_p9, %p5044_p6 }
  0x3f   : > { %5052 = shalt.err (!%p5049_p10)
}
  0x40   : > { %s5053_s27 = scalar_lea.vmem %s5355_s20, 6144  ;;  %p5061_p4 = scmp.lt.s32.totalorder %s5355_s20, %s5355_s20 }
  0x41   : > { %p5054_p1 = scmp.ne.s32.totalorder %s5355_s20, %s5053_s27  ;;  %p5062_p7 = scmp.lt.s32.totalorder %s5053_s27, %s5053_s27 }
  0x43   : > { %p5056_p2 = pnand %p5054_p1, %p5365_p0  ;;  %p5063_p8 = por %p5062_p7, %p5061_p4 }
  0x45   : > { %p5057_p3 = pneg %p5056_p2 }
  0x47   : > { %p5064_p11 = pnand %p5063_p8, %p5057_p3 }
  0x49   : > { %5067 = shalt.err (!%p5064_p11)
}
  0x4a   : > { %s5204_s13 = smov 192   ;;  %s5205_s12 = smov 12  }
  0x4b   : > { %4622 = dma.hbm_to_vmem [thread:$0]  (!%p5351_p12), %s6084_s4, 6144, %s5355_s20, [#allocation3], %s5204_s13, %s5204_s13, %s5205_s12  }
  0x4c   : > { %s5206_s19 = smov [#allocation7]   ;;  %s5068_s21 = scalar_lea.hbm %s6087_s7, 8192 }
  0x4d   : > { %s421_s24 = sshll.u32 %s5206_s19, 4  ;;  %p5069_p13 = scmp.ne.s32.totalorder %s6087_s7, %s5068_s21  ;;  %s422_s24 = int_to_ptr.vmem [resolvable:$true] %s421_s24 }
  0x4e   : > { %p5075_p9 = scmp.lt.u32.totalorder %s5068_s21, %s6087_s7 }
  0x4f   : > { %p5071_p5 = pnand %p5069_p13, %p5365_p0 }
  0x51   : > { %p5072_p6 = pneg %p5071_p5 }
  0x53   : > { %p5077_p10 = pnand %p5075_p9, %p5072_p6 }
  0x55   : > { %5080 = shalt.err (!%p5077_p10)
}
  0x56   : > { %s5081_s20 = scalar_lea.vmem %s422_s24, 8192  ;;  %p5089_p4 = scmp.lt.s32.totalorder %s422_s24, %s422_s24 }
  0x57   : > { %p5082_p1 = scmp.ne.s32.totalorder %s422_s24, %s5081_s20  ;;  %p5090_p7 = scmp.lt.s32.totalorder %s5081_s20, %s5081_s20 }
  0x59   : > { %p5084_p2 = pnand %p5082_p1, %p5365_p0  ;;  %p5091_p8 = por %p5090_p7, %p5089_p4 }
  0x5b   : > { %p5085_p3 = pneg %p5084_p2 }
  0x5d   : > { %p5092_p11 = pnand %p5091_p8, %p5085_p3 }
  0x5f   : > { %5095 = shalt.err (!%p5092_p11)
}
  0x60   : > { %s5207_s13 = smov 256   ;;  %s5208_s12 = smov 16  }
  0x61   : > { %4628 = dma.hbm_to_vmem [thread:$0]  (!%p5351_p12), %s6087_s7, 8192, %s422_s24, [#allocation6], %s5207_s13, %s5207_s13, %s5208_s12  }
  0x62   : > { %s5209_s16 = smov [#allocation8]   ;;  %s5096_s21 = scalar_lea.hbm %s6090_s10, 4096 }
  0x63   : > { %s440_s19 = sshll.u32 %s5209_s16, 4  ;;  %p5097_p13 = scmp.ne.s32.totalorder %s6090_s10, %s5096_s21  ;;  %s441_s19 = int_to_ptr.vmem [resolvable:$true] %s440_s19 }
  0x64   : > { %p5103_p9 = scmp.lt.u32.totalorder %s5096_s21, %s6090_s10 }
  0x65   : > { %p5099_p5 = pnand %p5097_p13, %p5365_p0 }
  0x67   : > { %p5100_p6 = pneg %p5099_p5 }
  0x69   : > { %p5105_p10 = pnand %p5103_p9, %p5100_p6 }
  0x6b   : > { %5108 = shalt.err (!%p5105_p10)
}
  0x6c   : > { %s5109_s24 = scalar_lea.vmem %s441_s19, 4096  ;;  %p5117_p4 = scmp.lt.s32.totalorder %s441_s19, %s441_s19 }
  0x6d   : > { %p5110_p1 = scmp.ne.s32.totalorder %s441_s19, %s5109_s24  ;;  %p5118_p7 = scmp.lt.s32.totalorder %s5109_s24, %s5109_s24 }
  0x6f   : > { %p5112_p2 = pnand %p5110_p1, %p5365_p0  ;;  %p5119_p8 = por %p5118_p7, %p5117_p4 }
  0x71   : > { %p5113_p3 = pneg %p5112_p2 }
  0x73   : > { %p5120_p11 = pnand %p5119_p8, %p5113_p3 }
  0x75   : > { %5123 = shalt.err (!%p5120_p11)
}
  0x76   : > { %4631 = dma.hbm_to_vmem [thread:$0]  (!%p5351_p12), %s6090_s10, 4096, %s441_s19, [#allocation9], %s5207_s13, %s5207_s13, %s5208_s12  }
  0x77   : > { %p6123_p13 = scmp.ne.s32.totalorder %s6119_s25, 0 }
  0x78   : > { %p6124_p5 = scmp.eq.s32.totalorder (!%p6123_p13), %s5315_s17, 0 }
  0x79   : > { %466 = sbr.rel (%p6123_p13) target bundleno = 5244 (0x147c), region = 68 }
  0x80   : > { %5169 = dma.done.wait (%p6124_p5), [#allocation3], 6144   ;;  %p6125_p0 = pmov %p6124_p5 }
  0x82   : > { %5171 = vsyncadd (%p6125_p0), [#allocation3], 4294961152  ;;  %p6126_p6 = pmov %p6125_p0 }
  0x83   : > { %p6127_p9 = pmov %p6125_p0 }
  0x84   : > { %5173 = dma.done.wait (%p6126_p6), [#allocation6], 10240  }
  0x85   : > { %5175 = vsyncadd (%p6127_p9), [#allocation6], 4294957056  ;;  %p6128_p10 = pmov %p6125_p0 }
  0x86   : > { %p6129_p12 = pmov %p6125_p0 }
  0x87   : > { %5177 = dma.done.wait (%p6128_p10), [#allocation9], 4096  }
  0x88   : > { %5179 = vsyncadd (%p6129_p12), [#allocation9], 4294963200  ;;  %p531_p1 = scmp.lt.s32.totalorder %s5315_s17, 1  ;;  %v5210_v0 = vmov 0.0   ;;  %v4695_v3 = vld [vmem:[#allocation2 + $0x4] ss:$12 sps:$4 sm:$0xff]  }
  0x89   : > { %4425 = vmatprep.subr.bf16.mxu1 %v5210_v0  ;;  %v4697_v4 = vld [vmem:[#allocation2] ss:$12 sps:$4 sm:$0xff]   ;;  %v4698_v5 = vld [vmem:[#allocation2 + $0x8] ss:$12 sps:$4 sm:$0xff]   ;;  %719 = vmatprep.subr.bf16.mxu0 %v4695_v3  ;;  %v4701_v7 = vld [vmem:[#allocation2 + $0x18] ss:$12 sps:$4 sm:$0xff]  }
  0x8a   : > { %s532_s25 = scalar_select %p531_p1, %s5315_s17, 1  ;;  %v4699_v6 = vld [vmem:[#allocation2 + $0x1c] ss:$12 sps:$4 sm:$0xff]   ;;  %720 = vmatpush1.bf16.msra.mxu0 %v4697_v4  ;;  %4426 = vmatpush3.bf16.msra.mxu1 %v4698_v5  ;;  %v4702_v8 = vld [vmem:[#allocation2 + $0x20] ss:$12 sps:$4 sm:$0xff]   ;;  %v5211_v24 = vmov 0  }
  0x8b   : > { %721 = vmatprep.subr.bf16.mxu0 %v4699_v6  ;;  %4427 = vmatprep.subr.bf16.mxu1 %v5210_v0  ;;  %v4703_v9 = vld [vmem:[#allocation2 + $0x34] ss:$12 sps:$4 sm:$0xff]   ;;  %v4705_v10 = vld [vmem:[#allocation2 + $0x30] ss:$12 sps:$4 sm:$0xff]   ;;  %v4706_v11 = vld [vmem:[#allocation2 + $0x38] ss:$12 sps:$4 sm:$0xff]  }
  0x8c   : > { %s4041_s28 = sshll.u32 %s532_s25, 3  ;;  %v4707_v12 = vld [vmem:[#allocation2 + $0x4c] ss:$12 sps:$4 sm:$0xff]   ;;  %v4709_v13 = vld [vmem:[#allocation2 + $0x48] ss:$12 sps:$4 sm:$0xff]   ;;  %751 = vmatprep.mubr.bf16.mxu0 %v5211_v24  ;;  %vm5212_vm0 = vmmov 0  }
  0x8d   : > { %s5460_s12 = scalar_lea.vmem %s6080_s0, %s4041_s28  ;;  %v4710_v14 = vld [vmem:[#allocation2 + $0x50] ss:$12 sps:$4 sm:$0xff]   ;;  %v4713_v16 = vld [vmem:[#allocation2 + $0x60] ss:$12 sps:$4 sm:$0xff]   ;;  %v4714_v17 = vld [vmem:[#allocation2 + $0x68] ss:$12 sps:$4 sm:$0xff]   ;;  %4441 = vmatprep.mubr.msk.bf16.mxu1 %vm5212_vm0, %v5210_v0 }
  0x8e   : > { %v5463_v1 = vld [vmem:[%s5460_s12] sm:$0xff]  ;;  %722 = vmatpush1.bf16.msra.mxu0 %v4701_v7  ;;  %4428 = vmatpush3.bf16.msra.mxu1 %v4702_v8  ;;  %v4715_v18 = vld [vmem:[#allocation2 + $0x7c] ss:$12 sps:$4 sm:$0xff]   ;;  %v4723_v25 = vld [vmem:[#allocation2 + $0xac] ss:$12 sps:$4 sm:$0xff]   ;;  %s5488_s29 = sand.u32 1, %s5190_s30  }
  0x8f   : > { %v545_v2 = vmul.f32 %v5463_v1, %v5463_v1  ;;  %723 = vmatprep.subr.bf16.mxu0 %v4703_v9  ;;  %4429 = vmatprep.subr.bf16.mxu1 %v5210_v0  ;;  %v4711_v15 = vld [vmem:[#allocation2 + $0x64] ss:$12 sps:$4 sm:$0xff]   ;;  %v4718_v20 = vld [vmem:[#allocation2 + $0x80] ss:$12 sps:$4 sm:$0xff]   ;;  %v4725_v26 = vld [vmem:[#allocation2 + $0xa8] ss:$12 sps:$4 sm:$0xff]  }
  0x90   : > { %v4717_v19 = vld [vmem:[#allocation2 + $0x78] ss:$12 sps:$4 sm:$0xff]   ;;  %v4719_v21 = vld [vmem:[#allocation2 + $0x94] ss:$12 sps:$4 sm:$0xff]   ;;  %v4721_v22 = vld [vmem:[#allocation2 + $0x90] ss:$12 sps:$4 sm:$0xff]  }
  0x91   : > { %546 = vadd.xlane.f32.xlu0 %v545_v2  ;;  %v4722_v23 = vld [vmem:[#allocation2 + $0x98] ss:$12 sps:$4 sm:$0xff]   ;;  %v4726_v27 = vld [vmem:[#allocation2 + $0xb0] ss:$12 sps:$4 sm:$0xff]   ;;  %v4042_v32 = vld [vmem:[%s6083_s3] ss:$0 sm:$0xff] }
  0x92   : > { %724 = vmatpush1.bf16.msra.mxu0 %v4705_v10  ;;  %4430 = vmatpush3.bf16.msra.mxu1 %v4706_v11  ;;  %s4039_s15 = sshll.u32 %s5488_s29, 6  ;;  %vm927_vm1 = vcmask 261120   ;;  %s5213_s18 = smov 96   ;;  %v5548_v60 = vld [vmem:[%s6081_s1] sm:$0xff]  ;;  %vm842_vm2 = vcmask 130048   ;;  %vm1192_vm3 = vcmask 1043456  }
  0x93   : > { %4431 = vmatprep.subr.bf16.mxu1 %v5210_v0  ;;  %725 = vmatprep.subr.bf16.mxu0 %v4707_v12  ;;  %s5497_s21 = scalar_lea.vmem [#allocation12], %s4039_s15  ;;  %s5214_s22 = smov 64   ;;  %v5553_v62 = vld [vmem:[%s6082_s2] sm:$0xff]  ;;  %vm1136_vm5 = vcmask 64512   ;;  %vm1387_vm6 = vcmask 523264   ;;  %vm1389_vm7 = vcmask 785408  }
  0x94   : > { %s6105_s27 = smov 112   ;;  %s5216_s20 = smov 32  }
  0x95   : > { %s5217_s24 = smov 16   ;;  %s5562_s26 = scalar_lea.vmem [#allocation11], %s4039_s15 }
  0x96   : > { %726 = vmatpush1.bf16.msra.mxu0 %v4709_v13  ;;  %4432 = vmatpush3.bf16.msra.mxu1 %v4710_v14  ;;  %s6132_s14 = smov 112   ;;  %s4038_s5 = sshll.u32 %s5488_s29, 5 }
  0x97   : > { %4433 = vmatprep.subr.bf16.mxu1 %v5210_v0  ;;  %727 = vmatprep.subr.bf16.mxu0 %v4711_v15  ;;  %s4310_s28 = sshll.u32 %s5315_s17, 9  ;;  %s518_s13 = scalar_lea.vmem [#allocation10], %s4038_s5 }
  0x98   : > { %p6134_p3 = scmp.ne.s32.totalorder %s6116_s23, 0  ;;  %s5218_s19 = smov [#allocation10]  }
  0x99   : > { %s5128_s15 = sshll.u32 %s5218_s19, 4  ;;  %s5129_s15 = int_to_ptr.vmem [resolvable:$false] %s5128_s15 }
  0x9a   : > { %728 = vmatpush1.bf16.msra.mxu0 %v4713_v16  ;;  %4434 = vmatpush3.bf16.msra.mxu1 %v4714_v17  ;;  %s5130_s5 = scalar_lea.vmem %s5129_s15, 1024 }
  0x9b   : > { %729 = vmatprep.subr.bf16.mxu0 %v4715_v18  ;;  %4435 = vmatprep.subr.bf16.mxu1 %v5210_v0 }
  0x9e   : > { %730 = vmatpush1.bf16.msra.mxu0 %v4717_v19  ;;  %4436 = vmatpush3.bf16.msra.mxu1 %v4718_v20 }
  0x9f   : > { %731 = vmatprep.subr.bf16.mxu0 %v4719_v21  ;;  %4437 = vmatprep.subr.bf16.mxu1 %v5210_v0 }
  0xa2   : > { %732 = vmatpush1.bf16.msra.mxu0 %v4721_v22  ;;  %4438 = vmatpush3.bf16.msra.mxu1 %v4722_v23 }
  0xa3   : > { %733 = vmatprep.subr.bf16.mxu0 %v4723_v25  ;;  %4439 = vmatprep.subr.bf16.mxu1 %v5210_v0 }
  0xa6   : > { %734 = vmatpush1.bf16.msra.mxu0 %v4725_v26  ;;  %4440 = vmatpush3.bf16.msra.mxu1 %v4726_v27 }
  0xa7   : > { %4445 = vmatprep.subr.bf16.mxu0 %v5210_v0  ;;  %4451 = vmatprep.subr.bf16.mxu1 %v5210_v0 }
 0x11e   : > { %v547_v28 = vpop.xlane.xlu0 %546 }
 0x11f   : > { %v549_v29 = vmul.f32 0.0078125, %v547_v28 }
 0x121   : > { %v550_v30 = vadd.f32 1e-06, %v549_v29 }
 0x123   : > { %4951 = vrsqrt.f32 %v550_v30 }
 0x12d   : > { %v4952_v31 = vpop.eup %4951 }
 0x12e   : > { %v552_v33 = vmul.f32 %v4952_v31, %v5463_v1 }
 0x130   : > { %v557_v34 = vmul.f32 %v4042_v32, %v552_v33 }
 0x132   : > { %v558_v35 = vpack.c.bf16 %v557_v34, %v557_v34 }
 0x134   : > { %752 = vmatmul.mubr.bf16.vlgmr.msra.gmra.mrb[0].mxu0 %v558_v35  ;;  %4442 = vmatmul.mubr.bf16.vlgmr.msra.gmra.mrb[0].mxu1 %v558_v35 }
 0x135   : > { %4447 = vmatprep.mubr.msk.bf16.mxu0 %vm5212_vm0, %v5210_v0  ;;  %4453 = vmatprep.mubr.msk.bf16.mxu1 %vm5212_vm0, %v5210_v0 }
 0x207   : > { %v5491_v36 = vpop.f32.mrb[0].mxu0  ;;  %v5493_v37 = vpop.f32.mrb[0].mxu1 }
 0x208   : > { %932 = vst.msk [vmem:[%s5497_s21] sm:$0xff] %vm927_vm1, %v5493_v37  ;;  %v4443_v38 = vpop.f32.mrb[1].mxu1  ;;  %801 = vrot.lane.b32.xlu1 %v5491_v36, %s5213_s18  ;;  %v755_v39 = vpop.f32.mrb[1].mxu0  ;;  %v810_v44 = vsub.f32 0.0, %v5491_v36  ;;  %v847_v8 = vmul.f32 %v5491_v36, %v5548_v60 }
 0x209   : > { %v797_v40 = vpop.f32.mrb[2].mxu1  ;;  %860 = vrot.lane.b32.xlu0 %v755_v39, %s5213_s18  ;;  %v757_v41 = vpop.f32.mrb[2].mxu0  ;;  %v869_v45 = vsub.f32 0.0, %v755_v39  ;;  %v905_v2 = vmul.f32 %v755_v39, %v5548_v60 }
 0x20a   : > { %v758_v42 = vpop.f32.mrb[3].mxu0  ;;  %v4444_v43 = vpop.f32.mrb[3].mxu1 }
 0x20c   : > { %863 = vrot.lane.b32.xlu1 %v755_v39, %s5214_s22 }
 0x20d   : > { %818 = vrot.lane.b32.xlu0 %v810_v44, %s6105_s27 }
 0x210   : > { %866 = vrot.lane.b32.xlu1 %v755_v39, %s5216_s20 }
 0x214   : > { %804 = vrot.lane.b32.xlu1 %v5491_v36, %s5214_s22 }
 0x218   : > { %807 = vrot.lane.b32.xlu1 %v5491_v36, %s5216_s20 }
 0x21c   : > { %830 = vrot.lane.b32.xlu1 %v5491_v36, %s5217_s24 }
 0x220   : > { %889 = vrot.lane.b32.xlu1 %v755_v39, %s5217_s24 }
 0x224   : > { %877 = vrot.lane.b32.xlu1 %v869_v45, %s6105_s27 }
 0x27a   : > { %v5517_v46 = vpop.permute.xlu1 %801 }
 0x27b   : > { %v811_v47 = vsub.f32 0.0, %v5517_v46  ;;  %832 = vrot.lane.b32.xlu1 %v5517_v46, %s5217_s24  ;;  %v861_v48 = vpop.permute.xlu0 %860  ;;  %v848_v30 = vmul.f32 %v5517_v46, %v5548_v60 }
 0x27c   : > { %v870_v50 = vsub.f32 0.0, %v861_v48  ;;  %v906_v17 = vmul.f32 %v861_v48, %v5548_v60 }
 0x27d   : > { %820 = vrot.lane.b32.xlu0 %v811_v47, %s6105_s27 }
 0x27e   : > { %v864_v49 = vpop.permute.xlu1 %863 }
 0x27f   : > { %891 = vrot.lane.b32.xlu1 %v861_v48, %s5217_s24  ;;  %v871_v52 = vsub.f32 0.0, %v864_v49  ;;  %v819_v1 = vpop.permute.xlu0 %818  ;;  %v907_v25 = vmul.f32 %v864_v49, %v5548_v60 }
 0x281   : > { %879 = vrot.lane.b32.xlu0 %v870_v50, %s6105_s27 }
 0x282   : > { %v5525_v51 = vpop.permute.xlu1 %866 }
 0x283   : > { %893 = vrot.lane.b32.xlu1 %v864_v49, %s5217_s24  ;;  %v872_v54 = vsub.f32 0.0, %v5525_v51  ;;  %v908_v35 = vmul.f32 %v5525_v51, %v5548_v60 }
 0x285   : > { %881 = vrot.lane.b32.xlu0 %v871_v52, %s6105_s27 }
 0x286   : > { %v5529_v53 = vpop.permute.xlu1 %804 }
 0x287   : > { %895 = vrot.lane.b32.xlu1 %v5525_v51, %s5217_s24  ;;  %v812_v56 = vsub.f32 0.0, %v5529_v53  ;;  %v849_v45 = vmul.f32 %v5529_v53, %v5548_v60 }
 0x289   : > { %883 = vrot.lane.b32.xlu0 %v872_v54, %s6105_s27  ;;  %v1185_v54 = vpack.c.bf16 %v5493_v37, %v5493_v37 }
 0x28a   : > { %v5535_v55 = vpop.permute.xlu1 %807 }
 0x28b   : > { %834 = vrot.lane.b32.xlu1 %v5529_v53, %s5217_s24  ;;  %v813_v58 = vsub.f32 0.0, %v5535_v55 }
 0x28d   : > { %822 = vrot.lane.b32.xlu0 %v812_v56, %s6105_s27  ;;  %v850_v56 = vmul.f32 %v5535_v55, %v5548_v60 }
 0x28e   : > { %v831_v57 = vpop.permute.xlu1 %830 }
 0x28f   : > { %836 = vrot.lane.b32.xlu1 %v5535_v55, %s5217_s24  ;;  %v843_v4 = vsel %vm842_vm2, %v819_v1, %v831_v57  ;;  %v539_v55 = vlaneseq }
 0x290   : > { %v851_v6 = vmul.f32 %v843_v4, %v5553_v62 }
 0x291   : > { %824 = vrot.lane.b32.xlu0 %v813_v58, %s6105_s27  ;;  %v5620_v60 = vshrl.u32 %v539_v55, 7  ;;  %s3738_s27 = sshll.u32 %s518_s13, 4  ;;  %s6011_s27 = int_to_ptr.vmem [resolvable:$true] %s3738_s27 }
 0x292   : > { %v890_v59 = vpop.permute.xlu1 %889  ;;  %v855_v10 = vadd.f32 %v851_v6, %v847_v8  ;;  %s5124_s16 = scalar_lea.vmem %s6011_s27, 512  ;;  %p5131_p8 = scmp.lt.s32.totalorder %s6011_s27, %s5129_s15 }
 0x293   : > { %p5125_p2 = scmp.ne.s32.totalorder %s6011_s27, %s5124_s16  ;;  %p5132_p11 = scmp.lt.s32.totalorder %s5130_s5, %s5124_s16 }
 0x294   : > { %v936_v11 = vpack.c.bf16 %v855_v10, %v855_v10 }
 0x295   : > { %p5126_p4 = pnand %p5125_p2, %p6134_p3  ;;  %p5133_p13 = por %p5132_p11, %p5131_p8 }
 0x296   : > { %v878_v61 = vpop.permute.xlu1 %877 }
 0x297   : > { %v901_v63 = vsel %vm842_vm2, %v878_v61, %v890_v59  ;;  %v1194_v61 = vsel %vm1192_vm3, %v1185_v54, 0  ;;  %p5127_p7 = pneg %p5126_p4 }
 0x298   : > { %v909_v3 = vmul.f32 %v901_v63, %v5553_v62 }
 0x299   : > { %p5134_p5 = pnand %p5133_p13, %p5127_p7 }
 0x29a   : > { %v913_v5 = vadd.f32 %v909_v3, %v905_v2 }
 0x29c   : > { %928 = vst.msk [vmem:[%s5562_s26] sm:$0xff] %vm927_vm1, %v913_v5  ;;  %v940_v7 = vpack.c.bf16 %v913_v5, %v913_v5 }
 0x29e   : > { %v948_v9 = vsel %vm927_vm1, %v940_v7, 0 }
 0x29f   : > { %4446 = vmatpush3.bf16.xpose.msra.mxu0 %v948_v9 }
 0x2a0   : > { %4457 = vmatprep.subr.bf16.mxu0 %v5210_v0 }
 0x2a6   : > { %4448 = vmatmul.mubr.msk.bf16.vlgmr.msra.gmra.mrb[4].mxu0 %vm927_vm1, %v936_v11 }
 0x2a7   : > { %4459 = vmatprep.mubr.msk.bf16.mxu0 %vm5212_vm0, %v5210_v0 }
 0x2ed   : > { %v833_v12 = vpop.permute.xlu1 %832 }
 0x2ef   : > { %v821_v13 = vpop.permute.xlu0 %820 }
 0x2f0   : > { %v844_v20 = vsel %vm842_vm2, %v821_v13, %v833_v12 }
 0x2f1   : > { %v892_v14 = vpop.permute.xlu1 %891  ;;  %v852_v26 = vmul.f32 %v844_v20, %v5553_v62 }
 0x2f3   : > { %v880_v15 = vpop.permute.xlu0 %879  ;;  %v856_v36 = vadd.f32 %v852_v26, %v848_v30 }
 0x2f4   : > { %v902_v16 = vsel %vm842_vm2, %v880_v15, %v892_v14 }
 0x2f5   : > { %v910_v18 = vmul.f32 %v902_v16, %v5553_v62  ;;  %v894_v19 = vpop.permute.xlu1 %893  ;;  %v937_v46 = vpack.c.bf16 %v856_v36, %v856_v36 }
 0x2f7   : > { %v914_v21 = vadd.f32 %v910_v18, %v906_v17  ;;  %v882_v22 = vpop.permute.xlu0 %881 }
 0x2f8   : > { %v903_v23 = vsel %vm842_vm2, %v882_v22, %v894_v19 }
 0x2f9   : > { %929 = vst.msk [vmem:[%s5562_s26 + $0x8] sm:$0xff] %vm927_vm1, %v914_v21  ;;  %v911_v27 = vmul.f32 %v903_v23, %v5553_v62  ;;  %v896_v28 = vpop.permute.xlu1 %895  ;;  %v941_v29 = vpack.c.bf16 %v914_v21, %v914_v21 }
 0x2fb   : > { %v915_v31 = vadd.f32 %v911_v27, %v907_v25  ;;  %v884_v32 = vpop.permute.xlu0 %883  ;;  %v994_v33 = vsel %vm927_vm1, %v941_v29, 0 }
 0x2fc   : > { %v904_v34 = vsel %vm842_vm2, %v884_v32, %v896_v28  ;;  %4452 = vmatpush3.bf16.xpose.msra.mxu1 %v994_v33 }
 0x2fd   : > { %930 = vst.msk [vmem:[%s5562_s26 + $0x10] sm:$0xff] %vm927_vm1, %v915_v31  ;;  %v912_v38 = vmul.f32 %v904_v34, %v5553_v62  ;;  %v835_v39 = vpop.permute.xlu1 %834  ;;  %v942_v40 = vpack.c.bf16 %v915_v31, %v915_v31  ;;  %4463 = vmatprep.subr.bf16.mxu1 %v5210_v0 }
 0x2ff   : > { %v916_v41 = vadd.f32 %v912_v38, %v908_v35  ;;  %v823_v42 = vpop.permute.xlu0 %822  ;;  %v1040_v43 = vsel %vm927_vm1, %v942_v40, 0 }
 0x300   : > { %v845_v44 = vsel %vm842_vm2, %v823_v42, %v835_v39  ;;  %4458 = vmatpush3.bf16.xpose.msra.mxu0 %v1040_v43 }
 0x301   : > { %931 = vst.msk [vmem:[%s5562_s26 + $0x18] sm:$0xff] %vm927_vm1, %v916_v41  ;;  %v853_v47 = vmul.f32 %v845_v44, %v5553_v62  ;;  %v943_v48 = vpack.c.bf16 %v916_v41, %v916_v41  ;;  %4469 = vmatprep.subr.bf16.mxu0 %v5210_v0  ;;  %v837_v50 = vpop.permute.xlu1 %836 }
 0x303   : > { %v857_v49 = vadd.f32 %v853_v47, %v849_v45  ;;  %v825_v51 = vpop.permute.xlu0 %824  ;;  %4454 = vmatmul.mubr.msk.bf16.vlgmr.msra.gmra.mrb[4].mxu1 %vm927_vm1, %v937_v46  ;;  %v1086_v52 = vsel %vm927_vm1, %v943_v48, 0 }
 0x304   : > { %v846_v53 = vsel %vm842_vm2, %v825_v51, %v837_v50  ;;  %4464 = vmatpush3.bf16.xpose.msra.mxu1 %v1086_v52  ;;  %4465 = vmatprep.mubr.msk.bf16.mxu1 %vm5212_vm0, %v5210_v0 }
 0x305   : > { %v938_v57 = vpack.c.bf16 %v857_v49, %v857_v49  ;;  %v854_v58 = vmul.f32 %v846_v53, %v5553_v62  ;;  %4475 = vmatprep.subr.bf16.mxu1 %v5210_v0  ;;  %v542_v62 = vand.u32 127, %v539_v55 }
 0x307   : > { %v858_v59 = vadd.f32 %v854_v58, %v850_v56  ;;  %4460 = vmatmul.mubr.msk.bf16.vlgmr.msra.gmra.mrb[8].mxu0 %vm927_vm1, %v938_v57  ;;  %vm5623_vm4 = vcmp.ge.s32.totalorder %v5620_v60, %v542_v62 }
 0x308   : > { %4470 = vmatpush3.bf16.msra.mxu0 %v1194_v61  ;;  %4471 = vmatprep.mubr.msk.bf16.mxu0 %vm5212_vm0, %v5210_v0 }
 0x309   : > { %v939_v63 = vpack.c.bf16 %v858_v59, %v858_v59  ;;  %4481 = vmatprep.subr.bf16.mxu0 %v5210_v0 }
 0x30b   : > { %4466 = vmatmul.mubr.msk.bf16.vlgmr.msra.gmra.mrb[8].mxu1 %vm927_vm1, %v939_v63 }
 0x30c   : > { %4477 = vmatprep.mubr.msk.bf16.mxu1 %vm5212_vm0, %v5210_v0 }
 0x379   : > { %v984_v1 = vpop.f32.mrb[4].mxu0 }
 0x37a   : > { %v1128_v3 = vmul.f32 0.17677669, %v984_v1  ;;  %v4449_v4 = vpop.f32.mrb[5].mxu0 }
 0x37b   : > { %v987_v5 = vpop.f32.mrb[6].mxu0 }
 0x37c   : > { %v4450_v6 = vpop.f32.mrb[7].mxu0  ;;  %v1132_v7 = vsel %vm5623_vm4, %v1128_v3, -1e+30 }
 0x37d   : > { %v1137_v8 = vsel %vm1136_vm5, %v1132_v7, -inf }
 0x37e   : > { %1138 = vmax.xlane.f32.xlu0 %v1137_v8 }
 0x3d6   : > { %v1030_v9 = vpop.f32.mrb[4].mxu1 }
 0x3d7   : > { %v1129_v10 = vmul.f32 0.17677669, %v1030_v9  ;;  %v4455_v11 = vpop.f32.mrb[5].mxu1 }
 0x3d8   : > { %v1033_v12 = vpop.f32.mrb[6].mxu1 }
 0x3d9   : > { %v4456_v13 = vpop.f32.mrb[7].mxu1  ;;  %v1133_v14 = vsel %vm5623_vm4, %v1129_v10, -1e+30 }
 0x3da   : > { %v1076_v15 = vpop.f32.mrb[8].mxu0  ;;  %v1140_v16 = vsel %vm1136_vm5, %v1133_v14, -inf }
 0x3db   : > { %v1130_v17 = vmul.f32 0.17677669, %v1076_v15  ;;  %1141 = vmax.xlane.f32.xlu1 %v1140_v16  ;;  %v4461_v18 = vpop.f32.mrb[9].mxu0  ;;  %v4727_v15 = vld [vmem:[#allocation5] sm:$0xff]   ;;  %v4728_v16 = vld [vmem:[#allocation5 + $0x8] sm:$0xff]  }
 0x3dc   : > { %v1079_v19 = vpop.f32.mrb[10].mxu0  ;;  %v4730_v18 = vld [vmem:[#allocation5 + $0x18] sm:$0xff]  }
 0x3dd   : > { %v4462_v20 = vpop.f32.mrb[11].mxu0  ;;  %v1134_v21 = vsel %vm5623_vm4, %v1130_v17, -1e+30  ;;  %v4729_v17 = vld [vmem:[#allocation5 + $0x10] sm:$0xff]   ;;  %v4731_v19 = vld [vmem:[#allocation5 + $0x20] sm:$0xff]  }
 0x3de   : > { %v1122_v22 = vpop.f32.mrb[8].mxu1  ;;  %v1143_v23 = vsel %vm1136_vm5, %v1134_v21, -inf }
 0x3df   : > { %v1131_v25 = vmul.f32 0.17677669, %v1122_v22  ;;  %v4467_v26 = vpop.f32.mrb[9].mxu1  ;;  %1144 = vmax.xlane.f32.xlu0 %v1143_v23 }
 0x3e0   : > { %v1125_v27 = vpop.f32.mrb[10].mxu1  ;;  %v4733_v26 = vld [vmem:[#allocation5 + $0x30] sm:$0xff]  }
 0x3e1   : > { %v4468_v28 = vpop.f32.mrb[11].mxu1  ;;  %v1135_v29 = vsel %vm5623_vm4, %v1131_v25, -1e+30  ;;  %v4732_v25 = vld [vmem:[#allocation5 + $0x28] sm:$0xff]   ;;  %v4734_v27 = vld [vmem:[#allocation5 + $0x38] sm:$0xff]  }
 0x3e2   : > { %v1146_v30 = vsel %vm1136_vm5, %v1135_v29, -inf }
 0x3e3   : > { %1147 = vmax.xlane.f32.xlu0 %v1146_v30 }
 0x3ec   : > { %918 = vrot.lane.b32.xlu1 %v5493_v37, %s5213_s18 }
 0x40b   : > { %v1139_v31 = vpop.xlane.xlu0 %1138 }
 0x40c   : > { %v1149_v32 = vsub.f32 %v1132_v7, %v1139_v31 }
 0x40e   : > { %v1153_v33 = vmul.f32 1.442695, %v1149_v32 }
 0x410   : > { %4953 = vpow2.f32 %v1153_v33 }
 0x41a   : > { %v4954_v34 = vpop.eup %4953 }
 0x41b   : > { %v1161_v35 = vsel %vm1136_vm5, %v4954_v34, 0.0 }
 0x41c   : > { %1162 = vadd.xlane.f32.xlu1 %v1161_v35 }
 0x468   : > { %v1142_v36 = vpop.xlane.xlu1 %1141 }
 0x469   : > { %v1150_v38 = vsub.f32 %v1133_v14, %v1142_v36 }
 0x46b   : > { %v1155_v39 = vmul.f32 1.442695, %v1150_v38 }
 0x46c   : > { %v919_v40 = vpop.permute.xlu1 %918  ;;  %v1145_v41 = vpop.xlane.xlu0 %1144 }
 0x46d   : > { %4955 = vpow2.f32 %v1155_v39  ;;  %933 = vst.msk [vmem:[%s5497_s21 + $0x8] sm:$0xff] %vm927_vm1, %v919_v40  ;;  %v1186_v42 = vpack.c.bf16 %v919_v40, %v919_v40  ;;  %v1151_v43 = vsub.f32 %v1134_v21, %v1145_v41 }
 0x46f   : > { %v1157_v44 = vmul.f32 1.442695, %v1151_v43  ;;  %v1240_v45 = vsel %vm1192_vm3, %v1186_v42, 0 }
 0x470   : > { %4476 = vmatpush3.bf16.msra.mxu1 %v1240_v45  ;;  %v1148_v46 = vpop.xlane.xlu0 %1147 }
 0x471   : > { %4957 = vpow2.f32 %v1157_v44  ;;  %v1152_v47 = vsub.f32 %v1135_v29, %v1148_v46  ;;  %4487 = vmatprep.subr.bf16.mxu1 %v5210_v0 }
 0x473   : > { %v1159_v48 = vmul.f32 1.442695, %v1152_v47 }
 0x475   : > { %4959 = vpow2.f32 %v1159_v48  ;;  %v4735_v48 = vld [vmem:[#allocation7] ss:$16 sps:$4 sm:$0xff]  }
 0x477   : > { %v4956_v49 = vpop.eup %4955 }
 0x478   : > { %v1164_v50 = vsel %vm1136_vm5, %v4956_v49, 0.0 }
 0x479   : > { %1165 = vadd.xlane.f32.xlu0 %v1164_v50  ;;  %v4738_v50 = vld [vmem:[#allocation7 + $0x8] ss:$16 sps:$4 sm:$0xff]  }
 0x47b   : > { %v4958_v51 = vpop.eup %4957 }
 0x47c   : > { %v1167_v52 = vsel %vm1136_vm5, %v4958_v51, 0.0 }
 0x47d   : > { %1168 = vadd.xlane.f32.xlu1 %v1167_v52  ;;  %v4743_v52 = vld [vmem:[#allocation7 + $0x24] ss:$16 sps:$4 sm:$0xff]  }
 0x47f   : > { %v4960_v54 = vpop.eup %4959 }
 0x480   : > { %v1170_v53 = vsel %vm1136_vm5, %v4960_v54, 0.0 }
 0x481   : > { %1171 = vadd.xlane.f32.xlu0 %v1170_v53  ;;  %v4741_v53 = vld [vmem:[#allocation7 + $0x20] ss:$16 sps:$4 sm:$0xff]  }
 0x48e   : > { %924 = vrot.lane.b32.xlu1 %v5493_v37, %s5216_s20 }
 0x497   : > { %921 = vrot.lane.b32.xlu0 %v5493_v37, %s5214_s22 }
 0x4a9   : > { %v1163_v56 = vpop.xlane.xlu1 %1162 }
 0x4aa   : > { %4961 = vrcp.f32 %v1163_v56  ;;  %v4744_v56 = vld [vmem:[#allocation7 + $0x28] ss:$16 sps:$4 sm:$0xff]  }
 0x4b4   : > { %v4962_v57 = vpop.eup %4961 }
 0x4b5   : > { %v1174_v58 = vmul.f32 %v4962_v57, %v4954_v34  ;;  %v4749_v57 = vld [vmem:[#allocation7 + $0x44] ss:$16 sps:$4 sm:$0xff]  }
 0x4b7   : > { %v1181_v59 = vpack.c.bf16 %v1174_v58, %v1174_v58  ;;  %v4752_v58 = vld [vmem:[#allocation7 + $0x4c] ss:$16 sps:$4 sm:$0xff]  }
 0x4b9   : > { %4472 = vmatmul.mubr.msk.bf16.vlgmr.msra.gmra.mrb[12].mxu0 %vm1136_vm5, %v1181_v59  ;;  %v4747_v59 = vld [vmem:[#allocation7 + $0x40] ss:$16 sps:$4 sm:$0xff]  }
 0x4ba   : > { %4483 = vmatprep.mubr.msk.bf16.mxu0 %vm5212_vm0, %v5210_v0 }
 0x506   : > { %v1166_v61 = vpop.xlane.xlu0 %1165 }
 0x507   : > { %4963 = vrcp.f32 %v1166_v61  ;;  %v4750_v61 = vld [vmem:[#allocation7 + $0x48] ss:$16 sps:$4 sm:$0xff]  }
 0x50a   : > { %v1169_v63 = vpop.xlane.xlu1 %1168 }
 0x50b   : > { %4965 = vrcp.f32 %v1169_v63 }
 0x50e   : > { %v925_v55 = vpop.permute.xlu1 %924  ;;  %v1172_v62 = vpop.xlane.xlu0 %1171 }
 0x50f   : > { %935 = vst.msk [vmem:[%s5497_s21 + $0x18] sm:$0xff] %vm927_vm1, %v925_v55  ;;  %4967 = vrcp.f32 %v1172_v62  ;;  %v1188_v3 = vpack.c.bf16 %v925_v55, %v925_v55  ;;  %v5009_v55 = vld [vmem:[%s5460_s12] sm:$0xff]  ;;  %s3716_s12 = scalar_lea.sflag [#allocation4], %s5488_s29 }
 0x511   : > { %v4964_v37 = vpop.eup %4963  ;;  %v1332_v10 = vsel %vm1192_vm3, %v1188_v3, 0 }
 0x512   : > { %v1176_v1 = vmul.f32 %v4964_v37, %v4956_v49  ;;  %v922_v4 = vpop.permute.xlu0 %921  ;;  %v4737_v49 = vld [vmem:[#allocation7 + $0x4] ss:$16 sps:$4 sm:$0xff]  }
 0x513   : > { %934 = vst.msk [vmem:[%s5497_s21 + $0x10] sm:$0xff] %vm927_vm1, %v922_v4  ;;  %v1187_v5 = vpack.c.bf16 %v922_v4, %v922_v4 }
 0x514   : > { %v1182_v6 = vpack.c.bf16 %v1176_v1, %v1176_v1 }
 0x515   : > { %v4966_v7 = vpop.eup %4965  ;;  %v1286_v8 = vsel %vm1192_vm3, %v1187_v5, 0  ;;  %v4755_v5 = vld [vmem:[#allocation7 + $0x64] ss:$16 sps:$4 sm:$0xff]  }
 0x516   : > { %v1178_v9 = vmul.f32 %v4966_v7, %v4958_v51  ;;  %4478 = vmatmul.mubr.msk.bf16.vlgmr.msra.gmra.mrb[12].mxu1 %vm1136_vm5, %v1182_v6  ;;  %4482 = vmatpush3.bf16.msra.mxu0 %v1286_v8  ;;  %v4740_v51 = vld [vmem:[#allocation7 + $0xc] ss:$16 sps:$4 sm:$0xff]   ;;  %v4753_v7 = vld [vmem:[#allocation7 + $0x60] ss:$16 sps:$4 sm:$0xff]   ;;  %v4756_v8 = vld [vmem:[#allocation7 + $0x68] ss:$16 sps:$4 sm:$0xff]  }
 0x517   : > { %4488 = vmatpush3.bf16.msra.mxu1 %v1332_v10  ;;  %4489 = vmatprep.mubr.msk.bf16.mxu1 %vm5212_vm0, %v5210_v0  ;;  %v4758_v6 = vld [vmem:[#allocation7 + $0x6c] ss:$16 sps:$4 sm:$0xff]   ;;  %v4761_v10 = vld [vmem:[#allocation7 + $0x84] ss:$16 sps:$4 sm:$0xff]  }
 0x518   : > { %v1183_v11 = vpack.c.bf16 %v1178_v9, %v1178_v9  ;;  %4493 = vmatprep.subr.bf16.mxu0 %v5210_v0  ;;  %1703 = vmatprep.subr.bf16.mxu1 %v4737_v49  ;;  %v4759_v9 = vld [vmem:[#allocation7 + $0x80] ss:$16 sps:$4 sm:$0xff]   ;;  %v4797_v49 = vld [vmem:[%s6088_s8 + $0x78] sm:$0xff]  }
 0x519   : > { %v4968_v12 = vpop.eup %4967 }
 0x51a   : > { %v1180_v13 = vmul.f32 %v4968_v12, %v4960_v54  ;;  %4484 = vmatmul.mubr.msk.bf16.vlgmr.msra.gmra.mrb[16].mxu0 %vm1136_vm5, %v1183_v11  ;;  %v4746_v54 = vld [vmem:[#allocation7 + $0x2c] ss:$16 sps:$4 sm:$0xff]   ;;  %v4762_v11 = vld [vmem:[#allocation7 + $0x88] ss:$16 sps:$4 sm:$0xff]  }
 0x51b   : > { %4509 = vmatprep.mubr.msk.bf16.mxu0 %vm5212_vm0, %v5210_v0  ;;  %4494 = vmatpush3.bf16.msra.mxu0 %v4727_v15  ;;  %v4764_v12 = vld [vmem:[#allocation7 + $0x8c] ss:$16 sps:$4 sm:$0xff]   ;;  %v4765_v15 = vld [vmem:[#allocation7 + $0xa0] ss:$16 sps:$4 sm:$0xff]  }
 0x51c   : > { %v1184_v14 = vpack.c.bf16 %v1180_v13, %v1180_v13  ;;  %4495 = vmatprep.subr.bf16.mxu0 %v5210_v0  ;;  %v4767_v13 = vld [vmem:[#allocation7 + $0xa4] ss:$16 sps:$4 sm:$0xff]  }
 0x51e   : > { %4490 = vmatmul.mubr.msk.bf16.vlgmr.msra.gmra.mrb[16].mxu1 %vm1136_vm5, %v1184_v14  ;;  %v4770_v14 = vld [vmem:[#allocation7 + $0xac] ss:$16 sps:$4 sm:$0xff]  }
 0x51f   : > { %1735 = vmatprep.mubr.bf16.mxu1 %v5211_v24  ;;  %4496 = vmatpush3.bf16.msra.mxu0 %v4728_v16  ;;  %v4768_v16 = vld [vmem:[#allocation7 + $0xa8] ss:$16 sps:$4 sm:$0xff]  }
 0x520   : > { %4497 = vmatprep.subr.bf16.mxu0 %v5210_v0  ;;  %1704 = vmatpush1.bf16.msra.mxu1 %v4735_v48  ;;  %v4796_v48 = vld [vmem:[%s6088_s8 + $0x30] sm:$0xff]  }
 0x521   : > { %1705 = vmatprep.subr.bf16.mxu1 %v4743_v52 }
 0x523   : > { %4498 = vmatpush3.bf16.msra.mxu0 %v4729_v17  ;;  %v4773_v17 = vld [vmem:[#allocation7 + $0xc4] ss:$16 sps:$4 sm:$0xff]  }
 0x524   : > { %4499 = vmatprep.subr.bf16.mxu0 %v5210_v0  ;;  %1706 = vmatpush1.bf16.msra.mxu1 %v4741_v53 }
 0x525   : > { %1707 = vmatprep.subr.bf16.mxu1 %v4749_v57 }
 0x527   : > { %4500 = vmatpush3.bf16.msra.mxu0 %v4730_v18  ;;  %v4776_v18 = vld [vmem:[#allocation7 + $0xcc] ss:$16 sps:$4 sm:$0xff]  }
 0x528   : > { %4501 = vmatprep.subr.bf16.mxu0 %v5210_v0  ;;  %1708 = vmatpush1.bf16.msra.mxu1 %v4747_v59 }
 0x529   : > { %1709 = vmatprep.subr.bf16.mxu1 %v4755_v5 }
 0x52b   : > { %4502 = vmatpush3.bf16.msra.mxu0 %v4731_v19  ;;  %v4771_v19 = vld [vmem:[#allocation7 + $0xc0] ss:$16 sps:$4 sm:$0xff]  }
 0x52c   : > { %4503 = vmatprep.subr.bf16.mxu0 %v5210_v0  ;;  %1710 = vmatpush1.bf16.msra.mxu1 %v4753_v7 }
 0x52d   : > { %1711 = vmatprep.subr.bf16.mxu1 %v4761_v10 }
 0x52f   : > { %4504 = vmatpush3.bf16.msra.mxu0 %v4732_v25  ;;  %v4780_v25 = vld [vmem:[#allocation7 + $0xe8] ss:$16 sps:$4 sm:$0xff]  }
 0x530   : > { %4505 = vmatprep.subr.bf16.mxu0 %v5210_v0  ;;  %1712 = vmatpush1.bf16.msra.mxu1 %v4759_v9 }
 0x531   : > { %1713 = vmatprep.subr.bf16.mxu1 %v4767_v13  ;;  %v4801_v13 = vld [vmem:[#allocation2 + $0xc4] ss:$12 sps:$4 sm:$0xff]  }
 0x533   : > { %4506 = vmatpush3.bf16.msra.mxu0 %v4733_v26 }
 0x534   : > { %4507 = vmatprep.subr.bf16.mxu0 %v5210_v0  ;;  %1714 = vmatpush1.bf16.msra.mxu1 %v4765_v15  ;;  %v4805_v15 = vld [vmem:[#allocation2 + $0xdc] ss:$12 sps:$4 sm:$0xff]  }
 0x535   : > { %1715 = vmatprep.subr.bf16.mxu1 %v4773_v17  ;;  %v4803_v17 = vld [vmem:[#allocation2 + $0xd8] ss:$12 sps:$4 sm:$0xff]  }
 0x537   : > { %4508 = vmatpush3.bf16.msra.mxu0 %v4734_v27 }
 0x538   : > { %1744 = vmatprep.subr.bf16.mxu0 %v4740_v51  ;;  %1716 = vmatpush1.bf16.msra.mxu1 %v4771_v19  ;;  %v4810_v19 = vld [vmem:[#allocation2 + $0xf8] ss:$12 sps:$4 sm:$0xff]  }
 0x58c   : > { %v1230_v20 = vpop.f32.mrb[12].mxu0 }
 0x58d   : > { %v4473_v21 = vpop.f32.mrb[13].mxu0 }
 0x58e   : > { %v1233_v22 = vpop.f32.mrb[14].mxu0  ;;  %v4779_v21 = vld [vmem:[#allocation7 + $0xe4] ss:$16 sps:$4 sm:$0xff]  }
 0x58f   : > { %v4474_v23 = vpop.f32.mrb[15].mxu0  ;;  %v4782_v22 = vld [vmem:[#allocation7 + $0xec] ss:$16 sps:$4 sm:$0xff]   ;;  %1717 = vmatprep.subr.bf16.mxu1 %v4779_v21 }
 0x590   : > { %v4777_v23 = vld [vmem:[#allocation7 + $0xe0] ss:$16 sps:$4 sm:$0xff]  }
 0x591   : > { %1718 = vmatpush1.bf16.msra.mxu1 %v4777_v23 }
 0x5e9   : > { %v1276_v28 = vpop.f32.mrb[12].mxu1 }
 0x5ea   : > { %1375 = vrot.lane.b32.xlu1 %v1276_v28, %s5216_s20  ;;  %v4479_v29 = vpop.f32.mrb[13].mxu1 }
 0x5eb   : > { %v1279_v30 = vpop.f32.mrb[14].mxu1 }
 0x5ec   : > { %v4480_v31 = vpop.f32.mrb[15].mxu1  ;;  %v4083_v30 = vld [vmem:[%s6086_s6] ss:$0 sm:$0xff] }
 0x5ed   : > { %v1322_v32 = vpop.f32.mrb[16].mxu0 }
 0x5ee   : > { %1379 = vrot.lane.b32.xlu0 %v1322_v32, %s5214_s22  ;;  %v4485_v33 = vpop.f32.mrb[17].mxu0 }
 0x5ef   : > { %v1325_v34 = vpop.f32.mrb[18].mxu0 }
 0x5f0   : > { %v4486_v35 = vpop.f32.mrb[19].mxu0  ;;  %v4783_v34 = vld [vmem:[%s6088_s8 + $0x40] sm:$0xff]  }
 0x5f1   : > { %v1368_v36 = vpop.f32.mrb[16].mxu1  ;;  %v4784_v35 = vld [vmem:[%s6088_s8] sm:$0xff]   ;;  %4347 = vmatprep.subr.bf16.mxu1 %v4783_v34  ;;  %v4818_v34 = vld [vmem:[#allocation2 + $0x128] ss:$12 sps:$4 sm:$0xff]  }
 0x5f2   : > { %1383 = vrot.lane.b32.xlu1 %v1368_v36, %s5213_s18  ;;  %v4491_v38 = vpop.f32.mrb[17].mxu1  ;;  %v4785_v36 = vld [vmem:[%s6088_s8 + $0x48] sm:$0xff]  }
 0x5f3   : > { %v1371_v39 = vpop.f32.mrb[18].mxu1  ;;  %v4786_v38 = vld [vmem:[%s6088_s8 + $0x8] sm:$0xff]  }
 0x5f4   : > { %v4492_v40 = vpop.f32.mrb[19].mxu1  ;;  %v4787_v39 = vld [vmem:[%s6088_s8 + $0x50] sm:$0xff]  }
 0x5f5   : > { %v4788_v40 = vld [vmem:[%s6088_s8 + $0x10] sm:$0xff]  }
 0x65c   : > { %v1376_v41 = vpop.permute.xlu1 %1375 }
 0x65d   : > { %v1386_v43 = vsel %vm927_vm1, %v1230_v20, %v1376_v41  ;;  %v4774_v20 = vld [vmem:[#allocation7 + $0xc8] ss:$16 sps:$4 sm:$0xff]  }
 0x65e   : > { %v4789_v41 = vld [vmem:[%s6088_s8 + $0x58] sm:$0xff]  }
 0x660   : > { %v1380_v42 = vpop.permute.xlu0 %1379 }
 0x661   : > { %v1388_v44 = vsel %vm1387_vm6, %v1386_v43, %v1380_v42  ;;  %v4790_v42 = vld [vmem:[%s6088_s8 + $0x18] sm:$0xff]   ;;  %v4791_v43 = vld [vmem:[%s6088_s8 + $0x60] sm:$0xff]  }
 0x664   : > { %v1384_v45 = vpop.permute.xlu1 %1383 }
 0x665   : > { %v1390_v46 = vsel %vm1389_vm7, %v1388_v44, %v1384_v45  ;;  %v4792_v44 = vld [vmem:[%s6088_s8 + $0x20] sm:$0xff]   ;;  %v4793_v45 = vld [vmem:[%s6088_s8 + $0x68] sm:$0xff]  }
 0x666   : > { %v1391_v47 = vpack.c.bf16 %v1390_v46, %v1390_v46  ;;  %v4794_v46 = vld [vmem:[%s6088_s8 + $0x28] sm:$0xff]  }
 0x668   : > { %4510 = vmatmul.mubr.bf16.vlgmr.msra.gmra.mrb[20].mxu0 %v1391_v47  ;;  %v4795_v47 = vld [vmem:[%s6088_s8 + $0x70] sm:$0xff]  }
 0x669   : > { %1776 = vmatprep.mubr.bf16.mxu0 %v5211_v24  ;;  %1745 = vmatpush1.bf16.msra.mxu0 %v4738_v50  ;;  %v4798_v50 = vld [vmem:[%s6088_s8 + $0x38] sm:$0xff]  }
 0x66a   : > { %1746 = vmatprep.subr.bf16.mxu0 %v4746_v54 }
 0x66d   : > { %1747 = vmatpush1.bf16.msra.mxu0 %v4744_v56 }
 0x66e   : > { %1748 = vmatprep.subr.bf16.mxu0 %v4752_v58 }
 0x671   : > { %1749 = vmatpush1.bf16.msra.mxu0 %v4750_v61 }
 0x672   : > { %1750 = vmatprep.subr.bf16.mxu0 %v4758_v6 }
 0x675   : > { %1751 = vmatpush1.bf16.msra.mxu0 %v4756_v8 }
 0x676   : > { %1752 = vmatprep.subr.bf16.mxu0 %v4764_v12  ;;  %v4799_v12 = vld [vmem:[#allocation2 + $0xc0] ss:$12 sps:$4 sm:$0xff]  }
 0x679   : > { %1753 = vmatpush1.bf16.msra.mxu0 %v4762_v11 }
 0x67a   : > { %1754 = vmatprep.subr.bf16.mxu0 %v4770_v14  ;;  %v4802_v14 = vld [vmem:[#allocation2 + $0xc8] ss:$12 sps:$4 sm:$0xff]  }
 0x67d   : > { %1755 = vmatpush1.bf16.msra.mxu0 %v4768_v16  ;;  %v4806_v16 = vld [vmem:[#allocation2 + $0xe0] ss:$12 sps:$4 sm:$0xff]  }
 0x67e   : > { %1756 = vmatprep.subr.bf16.mxu0 %v4776_v18  ;;  %v4809_v18 = vld [vmem:[#allocation2 + $0xf4] ss:$12 sps:$4 sm:$0xff]  }
 0x681   : > { %1757 = vmatpush1.bf16.msra.mxu0 %v4774_v20  ;;  %v4807_v20 = vld [vmem:[#allocation2 + $0xf0] ss:$12 sps:$4 sm:$0xff]  }
 0x682   : > { %1758 = vmatprep.subr.bf16.mxu0 %v4782_v22 }
 0x685   : > { %1759 = vmatpush1.bf16.msra.mxu0 %v4780_v25 }
 0x686   : > { %2147 = vmatprep.subr.bf16.mxu0 %v4801_v13 }
 0x73b   : > { %v1490_v63 = vpop.f32.mrb[20].mxu0 }
 0x73c   : > { %v5686_v62 = vadd.f32 %v5009_v55, %v1490_v63  ;;  %v4511_v37 = vpop.f32.mrb[21].mxu0 }
 0x73d   : > { %v1493_v1 = vpop.f32.mrb[22].mxu0 }
 0x73e   : > { %v4512_v3 = vpop.f32.mrb[23].mxu0  ;;  %v1498_v4 = vmul.f32 %v5686_v62, %v5686_v62 }
 0x740   : > { %1499 = vadd.xlane.f32.xlu0 %v1498_v4 }
 0x7cd   : > { %v1500_v26 = vpop.xlane.xlu0 %1499 }
 0x7ce   : > { %v1501_v27 = vmul.f32 0.0078125, %v1500_v26 }
 0x7d0   : > { %v1502_v28 = vadd.f32 1e-06, %v1501_v27 }
 0x7d2   : > { %4969 = vrsqrt.f32 %v1502_v28 }
 0x7dc   : > { %v4970_v29 = vpop.eup %4969 }
 0x7dd   : > { %v1504_v31 = vmul.f32 %v4970_v29, %v5686_v62  ;;  %v4813_v29 = vld [vmem:[#allocation2 + $0x10c] ss:$12 sps:$4 sm:$0xff]  }
 0x7df   : > { %v1509_v32 = vmul.f32 %v4083_v30, %v1504_v31  ;;  %v4811_v30 = vld [vmem:[#allocation2 + $0x108] ss:$12 sps:$4 sm:$0xff]   ;;  %v4814_v31 = vld [vmem:[#allocation2 + $0x110] ss:$12 sps:$4 sm:$0xff]  }
 0x7e1   : > { %v1510_v33 = vpack.c.bf16 %v1509_v32, %v1509_v32  ;;  %v4815_v32 = vld [vmem:[#allocation2 + $0x120] ss:$12 sps:$4 sm:$0xff]  }
 0x7e3   : > { %1736 = vmatmul.mubr.bf16.vlgmr.msra.gmra.mrb[20].mxu1 %v1510_v33  ;;  %1777 = vmatmul.mubr.bf16.vlgmr.msra.gmra.mrb[24].mxu0 %v1510_v33  ;;  %v4817_v33 = vld [vmem:[#allocation2 + $0x124] ss:$12 sps:$4 sm:$0xff]  }
 0x7e4   : > { %2179 = vmatprep.mubr.bf16.mxu0 %v5211_v24  ;;  %4348 = vmatpush3.bf16.msra.mxu1 %v4784_v35  ;;  %v4821_v35 = vld [vmem:[#allocation2 + $0x13c] ss:$12 sps:$4 sm:$0xff]  }
 0x7e5   : > { %4349 = vmatprep.subr.bf16.mxu1 %v4785_v36  ;;  %2148 = vmatpush1.bf16.msra.mxu0 %v4799_v12  ;;  %v4822_v36 = vld [vmem:[#allocation2 + $0x140] ss:$12 sps:$4 sm:$0xff]  }
 0x7e6   : > { %2149 = vmatprep.subr.bf16.mxu0 %v4805_v15 }
 0x7e8   : > { %4350 = vmatpush3.bf16.msra.mxu1 %v4786_v38  ;;  %v4825_v38 = vld [vmem:[#allocation2 + $0x154] ss:$12 sps:$4 sm:$0xff]  }
 0x7e9   : > { %4351 = vmatprep.subr.bf16.mxu1 %v4787_v39  ;;  %2150 = vmatpush1.bf16.msra.mxu0 %v4803_v17  ;;  %v4823_v39 = vld [vmem:[#allocation2 + $0x150] ss:$12 sps:$4 sm:$0xff]  }
 0x7ea   : > { %2151 = vmatprep.subr.bf16.mxu0 %v4809_v18  ;;  %v5808_v18 = vld [vmem:[%s6082_s2] sm:$0xff] }
 0x7ec   : > { %4352 = vmatpush3.bf16.msra.mxu1 %v4788_v40  ;;  %v4826_v40 = vld [vmem:[#allocation2 + $0x158] ss:$12 sps:$4 sm:$0xff]  }
 0x7ed   : > { %4353 = vmatprep.subr.bf16.mxu1 %v4789_v41  ;;  %2152 = vmatpush1.bf16.msra.mxu0 %v4807_v20  ;;  %v4829_v41 = vld [vmem:[#allocation2 + $0x16c] ss:$12 sps:$4 sm:$0xff]  }
 0x7ee   : > { %2153 = vmatprep.subr.bf16.mxu0 %v4813_v29 }
 0x7f0   : > { %4354 = vmatpush3.bf16.msra.mxu1 %v4790_v42  ;;  %v4827_v42 = vld [vmem:[#allocation2 + $0x168] ss:$12 sps:$4 sm:$0xff]  }
 0x7f1   : > { %4355 = vmatprep.subr.bf16.mxu1 %v4791_v43  ;;  %2154 = vmatpush1.bf16.msra.mxu0 %v4811_v30  ;;  %v4830_v43 = vld [vmem:[#allocation2 + $0x170] ss:$12 sps:$4 sm:$0xff]  }
 0x7f2   : > { %2155 = vmatprep.subr.bf16.mxu0 %v4817_v33 }
 0x7f4   : > { %4356 = vmatpush3.bf16.msra.mxu1 %v4792_v44 }
 0x7f5   : > { %4357 = vmatprep.subr.bf16.mxu1 %v4793_v45  ;;  %2156 = vmatpush1.bf16.msra.mxu0 %v4815_v32 }
 0x7f6   : > { %2157 = vmatprep.subr.bf16.mxu0 %v4821_v35 }
 0x7f8   : > { %4358 = vmatpush3.bf16.msra.mxu1 %v4794_v46 }
 0x7f9   : > { %4359 = vmatprep.subr.bf16.mxu1 %v4795_v47 }
 0x7fc   : > { %4360 = vmatpush3.bf16.msra.mxu1 %v4796_v48  ;;  %v4134_v48 = vld [vmem:[%s6083_s3 + $0x1] ss:$0 sm:$0xff] }
 0x7fd   : > { %4361 = vmatprep.subr.bf16.mxu1 %v4797_v49 }
 0x800   : > { %4362 = vmatpush3.bf16.msra.mxu1 %v4798_v50 }
 0x801   : > { %4513 = vmatprep.subr.bf16.mxu1 %v5210_v0 }
 0x8b6   : > { %v1737_v51 = vpop.f32.mrb[20].mxu1  ;;  %v1778_v52 = vpop.f32.mrb[24].mxu0 }
 0x8b7   : > { %v4116_v54 = vmul.f32 -1.442695, %v1737_v51  ;;  %v1739_v53 = vpop.f32.mrb[21].mxu1  ;;  %v1780_v56 = vpop.f32.mrb[25].mxu0 }
 0x8b8   : > { %v4117_v57 = vmul.f32 -1.442695, %v1739_v53  ;;  %v1741_v58 = vpop.f32.mrb[22].mxu1  ;;  %v1782_v59 = vpop.f32.mrb[26].mxu0 }
 0x8b9   : > { %4971 = vpow2.f32 %v4116_v54  ;;  %v1742_v61 = vpop.f32.mrb[23].mxu1  ;;  %v1783_v63 = vpop.f32.mrb[27].mxu0 }
 0x8ba   : > { %4973 = vpow2.f32 %v4117_v57 }
 0x8c3   : > { %v4972_v55 = vpop.eup %4971 }
 0x8c4   : > { %v4974_v37 = vpop.eup %4973  ;;  %v1791_v1 = vadd.f32 1.0, %v4972_v55 }
 0x8c5   : > { %v1792_v3 = vadd.f32 1.0, %v4974_v37 }
 0x8c6   : > { %4975 = vrcp.f32 %v1791_v1 }
 0x8c7   : > { %4977 = vrcp.f32 %v1792_v3 }
 0x8d0   : > { %v4976_v4 = vpop.eup %4975 }
 0x8d1   : > { %v4978_v5 = vpop.eup %4977  ;;  %v1797_v6 = vmul.f32 %v4976_v4, %v1737_v51 }
 0x8d2   : > { %v1798_v7 = vmul.f32 %v4978_v5, %v1739_v53 }
 0x8d3   : > { %v1799_v8 = vmul.f32 %v1797_v6, %v1778_v52 }
 0x8d4   : > { %v1800_v9 = vmul.f32 %v1798_v7, %v1780_v56 }
 0x8d5   : > { %v1801_v11 = vpack.c.bf16 %v1799_v8, %v1799_v8 }
 0x8d6   : > { %v1802_v10 = vpack.c.bf16 %v1800_v9, %v1800_v9 }
 0x8d8   : > { %1963 = vmatprep.mubr.bf16.mxu1 %v1802_v10 }
 0x8d9   : > { %1964 = vmatmul.mubr.bf16.vlgmr.msra.gmra.mrb[24].mxu1 %v1801_v11 }
 0x8da   : > { %4529 = vmatprep.mubr.msk.bf16.mxu1 %vm5212_vm0, %v5210_v0  ;;  %4514 = vmatpush3.bf16.msra.mxu1 %v4802_v14 }
 0x8db   : > { %4515 = vmatprep.subr.bf16.mxu1 %v5210_v0 }
 0x8de   : > { %4516 = vmatpush3.bf16.msra.mxu1 %v4806_v16  ;;  %v5802_v16 = vld [vmem:[%s6081_s1] sm:$0xff] }
 0x8df   : > { %4517 = vmatprep.subr.bf16.mxu1 %v5210_v0 }
 0x8e2   : > { %4518 = vmatpush3.bf16.msra.mxu1 %v4810_v19 }
 0x8e3   : > { %4519 = vmatprep.subr.bf16.mxu1 %v5210_v0 }
 0x8e6   : > { %4520 = vmatpush3.bf16.msra.mxu1 %v4814_v31 }
 0x8e7   : > { %4521 = vmatprep.subr.bf16.mxu1 %v5210_v0 }
 0x8ea   : > { %4522 = vmatpush3.bf16.msra.mxu1 %v4818_v34 }
 0x8eb   : > { %4523 = vmatprep.subr.bf16.mxu1 %v5210_v0 }
 0x8ee   : > { %4524 = vmatpush3.bf16.msra.mxu1 %v4822_v36 }
 0x8ef   : > { %4525 = vmatprep.subr.bf16.mxu1 %v5210_v0 }
 0x8f2   : > { %4526 = vmatpush3.bf16.msra.mxu1 %v4826_v40 }
 0x8f3   : > { %4527 = vmatprep.subr.bf16.mxu1 %v5210_v0 }
 0x8f6   : > { %4528 = vmatpush3.bf16.msra.mxu1 %v4830_v43 }
 0x8f7   : > { %4539 = vmatprep.subr.bf16.mxu1 %v5210_v0 }
 0x9ac   : > { %v4363_v21 = vpop.f32.mrb[24].mxu1 }
 0x9ad   : > { %v4364_v22 = vpop.f32.mrb[25].mxu1 }
 0x9ae   : > { %v4365_v23 = vadd.f32 %v4364_v22, %v4363_v21  ;;  %v4366_v25 = vpop.f32.mrb[26].mxu1 }
 0x9af   : > { %v4367_v26 = vpop.f32.mrb[27].mxu1 }
 0x9b0   : > { %v5750_v27 = vadd.f32 %v4365_v23, %v5686_v62  ;;  %v4819_v62 = vld [vmem:[#allocation2 + $0x138] ss:$12 sps:$4 sm:$0xff]  }
 0x9b1   : > { %2158 = vmatpush1.bf16.msra.mxu0 %v4819_v62 }
 0x9b2   : > { %v1973_v28 = vmul.f32 %v5750_v27, %v5750_v27  ;;  %2159 = vmatprep.subr.bf16.mxu0 %v4825_v38 }
 0x9b4   : > { %1974 = vadd.xlane.f32.xlu1 %v1973_v28 }
 0x9b5   : > { %2160 = vmatpush1.bf16.msra.mxu0 %v4823_v39 }
 0x9b6   : > { %2161 = vmatprep.subr.bf16.mxu0 %v4829_v41 }
 0x9b9   : > { %2162 = vmatpush1.bf16.msra.mxu0 %v4827_v42 }
 0x9ba   : > { %4533 = vmatprep.subr.bf16.mxu0 %v5210_v0 }
 0xa41   : > { %v1975_v44 = vpop.xlane.xlu1 %1974 }
 0xa42   : > { %v1976_v45 = vmul.f32 0.0078125, %v1975_v44 }
 0xa44   : > { %v1977_v46 = vadd.f32 1e-06, %v1976_v45 }
 0xa46   : > { %4979 = vrsqrt.f32 %v1977_v46 }
 0xa50   : > { %v4980_v47 = vpop.eup %4979 }
 0xa51   : > { %v1979_v49 = vmul.f32 %v4980_v47, %v5750_v27 }
 0xa53   : > { %v1984_v50 = vmul.f32 %v4134_v48, %v1979_v49 }
 0xa55   : > { %v1985_v51 = vpack.c.bf16 %v1984_v50, %v1984_v50 }
 0xa57   : > { %2180 = vmatmul.mubr.bf16.vlgmr.msra.gmra.mrb[28].mxu0 %v1985_v51  ;;  %4530 = vmatmul.mubr.bf16.vlgmr.msra.gmra.mrb[28].mxu1 %v1985_v51 }
 0xa58   : > { %4535 = vmatprep.mubr.msk.bf16.mxu0 %vm5212_vm0, %v5210_v0  ;;  %4541 = vmatprep.mubr.msk.bf16.mxu1 %vm5212_vm0, %v5210_v0 }
 0xb2a   : > { %v2181_v52 = vpop.f32.mrb[28].mxu0  ;;  %v5768_v54 = vpop.f32.mrb[28].mxu1 }
 0xb2b   : > { %4163 = vst.msk [vmem:[%s5497_s21 + $0x20] sm:$0xff] %vm927_vm1, %v5768_v54  ;;  %v2183_v53 = vpop.f32.mrb[29].mxu0  ;;  %v4531_v56 = vpop.f32.mrb[29].mxu1  ;;  %v2238_v63 = vsub.f32 0.0, %v2181_v52  ;;  %v2274_v26 = vmul.f32 %v5802_v16, %v2181_v52 }
 0xb2c   : > { %v2225_v57 = vpop.f32.mrb[30].mxu1  ;;  %2290 = vrot.lane.b32.xlu1 %v2183_v53, %s5214_s22  ;;  %2287 = vrot.lane.b32.xlu0 %v2183_v53, %s5213_s18  ;;  %v2185_v58 = vpop.f32.mrb[30].mxu0  ;;  %v2296_v55 = vsub.f32 0.0, %v2183_v53  ;;  %v2332_v17 = vmul.f32 %v5802_v16, %v2183_v53 }
 0xb2d   : > { %v2186_v59 = vpop.f32.mrb[31].mxu0  ;;  %v4532_v61 = vpop.f32.mrb[31].mxu1 }
 0xb30   : > { %2293 = vrot.lane.b32.xlu1 %v2183_v53, %s5216_s20  ;;  %2229 = vrot.lane.b32.xlu0 %v2181_v52, %s5213_s18 }
 0xb34   : > { %2235 = vrot.lane.b32.xlu1 %v2181_v52, %s5216_s20  ;;  %2232 = vrot.lane.b32.xlu0 %v2181_v52, %s5214_s22 }
 0xb38   : > { %2258 = vrot.lane.b32.xlu1 %v2181_v52, %s5217_s24  ;;  %2246 = vrot.lane.b32.xlu0 %v2238_v63, %s6132_s14 }
 0xb3c   : > { %2316 = vrot.lane.b32.xlu1 %v2183_v53, %s5217_s24  ;;  %2304 = vrot.lane.b32.xlu0 %v2296_v55, %s6132_s14 }
 0xb9e   : > { %v2291_v37 = vpop.permute.xlu1 %2290  ;;  %v2288_v1 = vpop.permute.xlu0 %2287 }
 0xb9f   : > { %v2297_v8 = vsub.f32 0.0, %v2288_v1  ;;  %v2298_v11 = vsub.f32 0.0, %v2291_v37  ;;  %v2333_v36 = vmul.f32 %v5802_v16, %v2288_v1  ;;  %v2334_v44 = vmul.f32 %v5802_v16, %v2291_v37 }
 0xba2   : > { %v5783_v3 = vpop.permute.xlu1 %2293  ;;  %v2230_v4 = vpop.permute.xlu0 %2229 }
 0xba3   : > { %v2239_v5 = vsub.f32 0.0, %v2230_v4  ;;  %2260 = vrot.lane.b32.xlu1 %v2230_v4, %s5217_s24  ;;  %v2299_v14 = vsub.f32 0.0, %v5783_v3  ;;  %v2275_v49 = vmul.f32 %v5802_v16, %v2230_v4  ;;  %v2335_v56 = vmul.f32 %v5802_v16, %v5783_v3 }
 0xba5   : > { %2248 = vrot.lane.b32.xlu0 %v2239_v5, %s6132_s14 }
 0xba6   : > { %v5787_v6 = vpop.permute.xlu1 %2235  ;;  %v5789_v7 = vpop.permute.xlu0 %2232 }
 0xba7   : > { %2318 = vrot.lane.b32.xlu1 %v2288_v1, %s5217_s24  ;;  %v2240_v22 = vsub.f32 0.0, %v5789_v7  ;;  %v2241_v29 = vsub.f32 0.0, %v5787_v6  ;;  %v2276_v4 = vmul.f32 %v5802_v16, %v5789_v7 }
 0xba9   : > { %2306 = vrot.lane.b32.xlu0 %v2297_v8, %s6132_s14 }
 0xbaa   : > { %v2259_v9 = vpop.permute.xlu1 %2258  ;;  %v2247_v10 = vpop.permute.xlu0 %2246 }
 0xbab   : > { %2320 = vrot.lane.b32.xlu1 %v2291_v37, %s5217_s24  ;;  %v2270_v20 = vsel %vm842_vm2, %v2247_v10, %v2259_v9 }
 0xbac   : > { %v2278_v23 = vmul.f32 %v5808_v18, %v2270_v20 }
 0xbad   : > { %2308 = vrot.lane.b32.xlu0 %v2298_v11, %s6132_s14 }
 0xbae   : > { %v2317_v12 = vpop.permute.xlu1 %2316  ;;  %v2305_v13 = vpop.permute.xlu0 %2304  ;;  %v2282_v30 = vadd.f32 %v2278_v23, %v2274_v26 }
 0xbaf   : > { %v2328_v15 = vsel %vm842_vm2, %v2305_v13, %v2317_v12  ;;  %2322 = vrot.lane.b32.xlu1 %v5783_v3, %s5217_s24  ;;  %v2612_v13 = vpack.c.bf16 %v5768_v54, %v5768_v54 }
 0xbb0   : > { %v2336_v19 = vmul.f32 %v5808_v18, %v2328_v15  ;;  %v2364_v31 = vpack.c.bf16 %v2282_v30, %v2282_v30 }
 0xbb1   : > { %2310 = vrot.lane.b32.xlu0 %v2299_v14, %s6132_s14  ;;  %v2277_v14 = vmul.f32 %v5802_v16, %v5787_v6  ;;  %v2620_v20 = vsel %vm1192_vm3, %v2612_v13, 0 }
 0xbb2   : > { %v2340_v21 = vadd.f32 %v2336_v19, %v2332_v17 }
 0xbb3   : > { %2262 = vrot.lane.b32.xlu1 %v5789_v7, %s5217_s24 }
 0xbb4   : > { %4159 = vst.msk [vmem:[%s5562_s26 + $0x20] sm:$0xff] %vm927_vm1, %v2340_v21  ;;  %v2368_v25 = vpack.c.bf16 %v2340_v21, %v2340_v21 }
 0xbb5   : > { %2250 = vrot.lane.b32.xlu0 %v2240_v22, %s6132_s14 }
 0xbb6   : > { %v2376_v28 = vsel %vm927_vm1, %v2368_v25, 0 }
 0xbb7   : > { %2264 = vrot.lane.b32.xlu1 %v5787_v6, %s5217_s24  ;;  %4534 = vmatpush3.bf16.xpose.msra.mxu0 %v2376_v28 }
 0xbb8   : > { %4545 = vmatprep.subr.bf16.mxu0 %v5210_v0 }
 0xbb9   : > { %2252 = vrot.lane.b32.xlu0 %v2241_v29, %s6132_s14 }
 0xbbe   : > { %4536 = vmatmul.mubr.msk.bf16.vlgmr.msra.gmra.mrb[32].mxu0 %vm927_vm1, %v2364_v31 }
 0xbbf   : > { %4547 = vmatprep.mubr.msk.bf16.mxu0 %vm5212_vm0, %v5210_v0 }
 0xc15   : > { %v2261_v32 = vpop.permute.xlu1 %2260 }
 0xc17   : > { %v2249_v33 = vpop.permute.xlu0 %2248 }
 0xc18   : > { %v2271_v40 = vsel %vm842_vm2, %v2249_v33, %v2261_v32 }
 0xc19   : > { %v2319_v34 = vpop.permute.xlu1 %2318  ;;  %v2279_v45 = vmul.f32 %v5808_v18, %v2271_v40 }
 0xc1b   : > { %v2307_v35 = vpop.permute.xlu0 %2306  ;;  %v2283_v57 = vadd.f32 %v2279_v45, %v2275_v49 }
 0xc1c   : > { %v2329_v62 = vsel %vm842_vm2, %v2307_v35, %v2319_v34 }
 0xc1d   : > { %v2337_v38 = vmul.f32 %v5808_v18, %v2329_v62  ;;  %v2321_v39 = vpop.permute.xlu1 %2320  ;;  %v2365_v3 = vpack.c.bf16 %v2283_v57, %v2283_v57 }
 0xc1f   : > { %v2341_v41 = vadd.f32 %v2337_v38, %v2333_v36  ;;  %v2309_v42 = vpop.permute.xlu0 %2308 }
 0xc20   : > { %v2330_v43 = vsel %vm842_vm2, %v2309_v42, %v2321_v39 }
 0xc21   : > { %4160 = vst.msk [vmem:[%s5562_s26 + $0x28] sm:$0xff] %vm927_vm1, %v2341_v41  ;;  %v2338_v46 = vmul.f32 %v5808_v18, %v2330_v43  ;;  %v2323_v47 = vpop.permute.xlu1 %2322  ;;  %v2369_v48 = vpack.c.bf16 %v2341_v41, %v2341_v41 }
 0xc23   : > { %v2342_v50 = vadd.f32 %v2338_v46, %v2334_v44  ;;  %v2311_v51 = vpop.permute.xlu0 %2310  ;;  %v2422_v52 = vsel %vm927_vm1, %v2369_v48, 0 }
 0xc24   : > { %v2331_v53 = vsel %vm842_vm2, %v2311_v51, %v2323_v47  ;;  %4540 = vmatpush3.bf16.xpose.msra.mxu1 %v2422_v52 }
 0xc25   : > { %4161 = vst.msk [vmem:[%s5562_s26 + $0x30] sm:$0xff] %vm927_vm1, %v2342_v50  ;;  %v2339_v58 = vmul.f32 %v5808_v18, %v2331_v53  ;;  %v2263_v59 = vpop.permute.xlu1 %2262  ;;  %v2370_v61 = vpack.c.bf16 %v2342_v50, %v2342_v50  ;;  %4551 = vmatprep.subr.bf16.mxu1 %v5210_v0 }
 0xc27   : > { %v2343_v63 = vadd.f32 %v2339_v58, %v2335_v56  ;;  %v2251_v55 = vpop.permute.xlu0 %2250  ;;  %v2468_v37 = vsel %vm927_vm1, %v2370_v61, 0 }
 0xc28   : > { %v2272_v1 = vsel %vm842_vm2, %v2251_v55, %v2263_v59  ;;  %4546 = vmatpush3.bf16.xpose.msra.mxu0 %v2468_v37 }
 0xc29   : > { %4162 = vst.msk [vmem:[%s5562_s26 + $0x38] sm:$0xff] %vm927_vm1, %v2343_v63  ;;  %v2280_v5 = vmul.f32 %v5808_v18, %v2272_v1  ;;  %v2371_v8 = vpack.c.bf16 %v2343_v63, %v2343_v63  ;;  %4557 = vmatprep.subr.bf16.mxu0 %v5210_v0  ;;  %v2265_v10 = vpop.permute.xlu1 %2264 }
 0xc2b   : > { %v2284_v9 = vadd.f32 %v2280_v5, %v2276_v4  ;;  %4542 = vmatmul.mubr.msk.bf16.vlgmr.msra.gmra.mrb[32].mxu1 %vm927_vm1, %v2365_v3  ;;  %v2253_v11 = vpop.permute.xlu0 %2252  ;;  %v2514_v12 = vsel %vm927_vm1, %v2371_v8, 0 }
 0xc2c   : > { %v2273_v7 = vsel %vm842_vm2, %v2253_v11, %v2265_v10  ;;  %4552 = vmatpush3.bf16.xpose.msra.mxu1 %v2514_v12  ;;  %4553 = vmatprep.mubr.msk.bf16.mxu1 %vm5212_vm0, %v5210_v0 }
 0xc2d   : > { %v2366_v15 = vpack.c.bf16 %v2284_v9, %v2284_v9  ;;  %v2281_v17 = vmul.f32 %v5808_v18, %v2273_v7  ;;  %4563 = vmatprep.subr.bf16.mxu1 %v5210_v0 }
 0xc2f   : > { %v2285_v19 = vadd.f32 %v2281_v17, %v2277_v14  ;;  %4548 = vmatmul.mubr.msk.bf16.vlgmr.msra.gmra.mrb[36].mxu0 %vm927_vm1, %v2366_v15 }
 0xc30   : > { %4558 = vmatpush3.bf16.msra.mxu0 %v2620_v20  ;;  %4559 = vmatprep.mubr.msk.bf16.mxu0 %vm5212_vm0, %v5210_v0 }
 0xc31   : > { %v2367_v21 = vpack.c.bf16 %v2285_v19, %v2285_v19  ;;  %4569 = vmatprep.subr.bf16.mxu0 %v5210_v0 }
 0xc33   : > { %4554 = vmatmul.mubr.msk.bf16.vlgmr.msra.gmra.mrb[36].mxu1 %vm927_vm1, %v2367_v21 }
 0xc34   : > { %4565 = vmatprep.mubr.msk.bf16.mxu1 %vm5212_vm0, %v5210_v0 }
 0xc91   : > { %v2412_v6 = vpop.f32.mrb[32].mxu0 }
 0xc92   : > { %v2556_v16 = vmul.f32 0.17677669, %v2412_v6  ;;  %v4537_v18 = vpop.f32.mrb[33].mxu0 }
 0xc93   : > { %v2415_v22 = vpop.f32.mrb[34].mxu0 }
 0xc94   : > { %v4538_v23 = vpop.f32.mrb[35].mxu0  ;;  %v2560_v25 = vsel %vm5623_vm4, %v2556_v16, -1e+30 }
 0xc95   : > { %v2564_v26 = vsel %vm1136_vm5, %v2560_v25, -inf }
 0xc96   : > { %2565 = vmax.xlane.f32.xlu0 %v2564_v26 }
 0xcfe   : > { %v2458_v28 = vpop.f32.mrb[32].mxu1 }
 0xcff   : > { %v2557_v29 = vmul.f32 0.17677669, %v2458_v28  ;;  %v4543_v30 = vpop.f32.mrb[33].mxu1 }
 0xd00   : > { %v2461_v31 = vpop.f32.mrb[34].mxu1 }
 0xd01   : > { %v4544_v32 = vpop.f32.mrb[35].mxu1  ;;  %v2561_v33 = vsel %vm5623_vm4, %v2557_v29, -1e+30 }
 0xd02   : > { %v2504_v34 = vpop.f32.mrb[36].mxu0  ;;  %v2567_v35 = vsel %vm1136_vm5, %v2561_v33, -inf }
 0xd03   : > { %v2558_v62 = vmul.f32 0.17677669, %v2504_v34  ;;  %2568 = vmax.xlane.f32.xlu1 %v2567_v35  ;;  %v4549_v36 = vpop.f32.mrb[37].mxu0  ;;  %v4831_v34 = vld [vmem:[#allocation5 + $0x40] sm:$0xff]   ;;  %v4832_v35 = vld [vmem:[#allocation5 + $0x48] sm:$0xff]  }
 0xd04   : > { %v2507_v38 = vpop.f32.mrb[38].mxu0  ;;  %v4834_v36 = vld [vmem:[#allocation5 + $0x58] sm:$0xff]  }
 0xd05   : > { %v4550_v39 = vpop.f32.mrb[39].mxu0  ;;  %v2562_v40 = vsel %vm5623_vm4, %v2558_v62, -1e+30  ;;  %v4833_v62 = vld [vmem:[#allocation5 + $0x50] sm:$0xff]  }
 0xd06   : > { %v2550_v41 = vpop.f32.mrb[36].mxu1  ;;  %v2570_v42 = vsel %vm1136_vm5, %v2562_v40, -inf }
 0xd07   : > { %v2559_v43 = vmul.f32 0.17677669, %v2550_v41  ;;  %v4555_v44 = vpop.f32.mrb[37].mxu1  ;;  %2571 = vmax.xlane.f32.xlu0 %v2570_v42  ;;  %v4835_v41 = vld [vmem:[#allocation5 + $0x60] sm:$0xff]  }
 0xd08   : > { %v2553_v45 = vpop.f32.mrb[38].mxu1  ;;  %v4837_v44 = vld [vmem:[#allocation5 + $0x70] sm:$0xff]  }
 0xd09   : > { %v4556_v46 = vpop.f32.mrb[39].mxu1  ;;  %v2563_v47 = vsel %vm5623_vm4, %v2559_v43, -1e+30  ;;  %v4836_v43 = vld [vmem:[#allocation5 + $0x68] sm:$0xff]   ;;  %v4838_v45 = vld [vmem:[#allocation5 + $0x78] sm:$0xff]  }
 0xd0a   : > { %v2573_v48 = vsel %vm1136_vm5, %v2563_v47, -inf }
 0xd0b   : > { %2574 = vmax.xlane.f32.xlu0 %v2573_v48 }
 0xd14   : > { %2345 = vrot.lane.b32.xlu1 %v5768_v54, %s5213_s18 }
 0xd23   : > { %v2566_v49 = vpop.xlane.xlu0 %2565 }
 0xd24   : > { %v2576_v50 = vsub.f32 %v2560_v25, %v2566_v49 }
 0xd26   : > { %v2580_v51 = vmul.f32 1.442695, %v2576_v50 }
 0xd28   : > { %4981 = vpow2.f32 %v2580_v51 }
 0xd32   : > { %v4982_v52 = vpop.eup %4981 }
 0xd33   : > { %v2588_v53 = vsel %vm1136_vm5, %v4982_v52, 0.0 }
 0xd38   : > { %2589 = vadd.xlane.f32.xlu1 %v2588_v53 }
 0xd90   : > { %v2569_v56 = vpop.xlane.xlu1 %2568 }
 0xd91   : > { %v2577_v57 = vsub.f32 %v2561_v33, %v2569_v56 }
 0xd93   : > { %v2582_v58 = vmul.f32 1.442695, %v2577_v57 }
 0xd94   : > { %v2346_v2 = vpop.permute.xlu1 %2345  ;;  %v2572_v59 = vpop.xlane.xlu0 %2571 }
 0xd95   : > { %4983 = vpow2.f32 %v2582_v58  ;;  %4164 = vst.msk [vmem:[%s5497_s21 + $0x28] sm:$0xff] %vm927_vm1, %v2346_v2  ;;  %v2613_v61 = vpack.c.bf16 %v2346_v2, %v2346_v2  ;;  %v2578_v63 = vsub.f32 %v2562_v40, %v2572_v59 }
 0xd97   : > { %v2584_v55 = vmul.f32 1.442695, %v2578_v63  ;;  %v2666_v37 = vsel %vm1192_vm3, %v2613_v61, 0 }
 0xd98   : > { %4564 = vmatpush3.bf16.msra.mxu1 %v2666_v37  ;;  %v2575_v1 = vpop.xlane.xlu0 %2574 }
 0xd99   : > { %4985 = vpow2.f32 %v2584_v55  ;;  %v2579_v4 = vsub.f32 %v2563_v47, %v2575_v1  ;;  %4575 = vmatprep.subr.bf16.mxu1 %v5210_v0 }
 0xd9b   : > { %v2586_v3 = vmul.f32 1.442695, %v2579_v4  ;;  %v4839_v4 = vld [vmem:[#allocation7 + $0x100] ss:$16 sps:$4 sm:$0xff]  }
 0xd9d   : > { %4987 = vpow2.f32 %v2586_v3  ;;  %v4841_v3 = vld [vmem:[#allocation7 + $0x104] ss:$16 sps:$4 sm:$0xff]  }
 0xd9f   : > { %v4984_v5 = vpop.eup %4983 }
 0xda0   : > { %v2591_v8 = vsel %vm1136_vm5, %v4984_v5, 0.0 }
 0xda1   : > { %2592 = vadd.xlane.f32.xlu0 %v2591_v8  ;;  %v4844_v8 = vld [vmem:[#allocation7 + $0x10c] ss:$16 sps:$4 sm:$0xff]  }
 0xda3   : > { %v4986_v9 = vpop.eup %4985 }
 0xda4   : > { %v2594_v10 = vsel %vm1136_vm5, %v4986_v9, 0.0 }
 0xda5   : > { %2595 = vadd.xlane.f32.xlu1 %v2594_v10  ;;  %v4850_v10 = vld [vmem:[#allocation7 + $0x12c] ss:$16 sps:$4 sm:$0xff]  }
 0xda7   : > { %v4988_v11 = vpop.eup %4987 }
 0xda8   : > { %v2597_v12 = vsel %vm1136_vm5, %v4988_v11, 0.0 }
 0xda9   : > { %2598 = vadd.xlane.f32.xlu0 %v2597_v12  ;;  %v4848_v12 = vld [vmem:[#allocation7 + $0x128] ss:$16 sps:$4 sm:$0xff]  }
 0xdb6   : > { %2351 = vrot.lane.b32.xlu1 %v5768_v54, %s5216_s20 }
 0xdbf   : > { %2348 = vrot.lane.b32.xlu0 %v5768_v54, %s5214_s22 }
 0xdc5   : > { %v2590_v13 = vpop.xlane.xlu1 %2589 }
 0xdc6   : > { %4989 = vrcp.f32 %v2590_v13  ;;  %v4853_v13 = vld [vmem:[#allocation7 + $0x144] ss:$16 sps:$4 sm:$0xff]  }
 0xdd0   : > { %v4990_v7 = vpop.eup %4989 }
 0xdd1   : > { %v2601_v14 = vmul.f32 %v4990_v7, %v4982_v52  ;;  %v4856_v7 = vld [vmem:[#allocation7 + $0x14c] ss:$16 sps:$4 sm:$0xff]  }
 0xdd3   : > { %v2608_v15 = vpack.c.bf16 %v2601_v14, %v2601_v14  ;;  %v4851_v14 = vld [vmem:[#allocation7 + $0x140] ss:$16 sps:$4 sm:$0xff]  }
 0xdd5   : > { %4560 = vmatmul.mubr.msk.bf16.vlgmr.msra.gmra.mrb[40].mxu0 %vm1136_vm5, %v2608_v15  ;;  %v4854_v15 = vld [vmem:[#allocation7 + $0x148] ss:$16 sps:$4 sm:$0xff]  }
 0xdd6   : > { %4571 = vmatprep.mubr.msk.bf16.mxu0 %vm5212_vm0, %v5210_v0 }
 0xe2e   : > { %v2593_v17 = vpop.xlane.xlu0 %2592 }
 0xe2f   : > { %4991 = vrcp.f32 %v2593_v17 }
 0xe32   : > { %v2596_v19 = vpop.xlane.xlu1 %2595 }
 0xe33   : > { %4993 = vrcp.f32 %v2596_v19 }
 0xe36   : > { %v2352_v20 = vpop.permute.xlu1 %2351  ;;  %v2599_v21 = vpop.xlane.xlu0 %2598 }
 0xe37   : > { %4166 = vst.msk [vmem:[%s5497_s21 + $0x38] sm:$0xff] %vm927_vm1, %v2352_v20  ;;  %4995 = vrcp.f32 %v2599_v21  ;;  %v2615_v16 = vpack.c.bf16 %v2352_v20, %v2352_v20 }
 0xe39   : > { %v4992_v54 = vpop.eup %4991  ;;  %v2758_v29 = vsel %vm1192_vm3, %v2615_v16, 0  ;;  %v4859_v16 = vld [vmem:[#allocation7 + $0x164] ss:$16 sps:$4 sm:$0xff]  }
 0xe3a   : > { %v2603_v6 = vmul.f32 %v4992_v54, %v4984_v5  ;;  %v2349_v18 = vpop.permute.xlu0 %2348  ;;  %v4842_v5 = vld [vmem:[#allocation7 + $0x108] ss:$16 sps:$4 sm:$0xff]  }
 0xe3b   : > { %4165 = vst.msk [vmem:[%s5497_s21 + $0x30] sm:$0xff] %vm927_vm1, %v2349_v18  ;;  %v2614_v22 = vpack.c.bf16 %v2349_v18, %v2349_v18  ;;  %v4862_v18 = vld [vmem:[#allocation7 + $0x16c] ss:$16 sps:$4 sm:$0xff]  }
 0xe3c   : > { %v2609_v23 = vpack.c.bf16 %v2603_v6, %v2603_v6 }
 0xe3d   : > { %v4994_v25 = vpop.eup %4993  ;;  %v2712_v26 = vsel %vm1192_vm3, %v2614_v22, 0  ;;  %v4857_v22 = vld [vmem:[#allocation7 + $0x160] ss:$16 sps:$4 sm:$0xff]  }
 0xe3e   : > { %v2605_v28 = vmul.f32 %v4994_v25, %v4986_v9  ;;  %4566 = vmatmul.mubr.msk.bf16.vlgmr.msra.gmra.mrb[40].mxu1 %vm1136_vm5, %v2609_v23  ;;  %4570 = vmatpush3.bf16.msra.mxu0 %v2712_v26  ;;  %v4847_v9 = vld [vmem:[#allocation7 + $0x124] ss:$16 sps:$4 sm:$0xff]   ;;  %v4860_v23 = vld [vmem:[#allocation7 + $0x168] ss:$16 sps:$4 sm:$0xff]   ;;  %v4863_v25 = vld [vmem:[#allocation7 + $0x180] ss:$16 sps:$4 sm:$0xff]  }
 0xe3f   : > { %4576 = vmatpush3.bf16.msra.mxu1 %v2758_v29  ;;  %4577 = vmatprep.mubr.msk.bf16.mxu1 %vm5212_vm0, %v5210_v0  ;;  %v4865_v26 = vld [vmem:[#allocation7 + $0x184] ss:$16 sps:$4 sm:$0xff]  }
 0xe40   : > { %v2610_v30 = vpack.c.bf16 %v2605_v28, %v2605_v28  ;;  %4581 = vmatprep.subr.bf16.mxu0 %v5210_v0  ;;  %3129 = vmatprep.subr.bf16.mxu1 %v4841_v3  ;;  %v4866_v28 = vld [vmem:[#allocation7 + $0x188] ss:$16 sps:$4 sm:$0xff]   ;;  %v4871_v29 = vld [vmem:[#allocation7 + $0x1a4] ss:$16 sps:$4 sm:$0xff]  }
 0xe41   : > { %v4996_v31 = vpop.eup %4995 }
 0xe42   : > { %v2607_v32 = vmul.f32 %v4996_v31, %v4988_v11  ;;  %4572 = vmatmul.mubr.msk.bf16.vlgmr.msra.gmra.mrb[44].mxu0 %vm1136_vm5, %v2610_v30  ;;  %v4845_v11 = vld [vmem:[#allocation7 + $0x120] ss:$16 sps:$4 sm:$0xff]   ;;  %v4874_v30 = vld [vmem:[#allocation7 + $0x1ac] ss:$16 sps:$4 sm:$0xff]  }
 0xe43   : > { %4597 = vmatprep.mubr.msk.bf16.mxu0 %vm5212_vm0, %v5210_v0  ;;  %4582 = vmatpush3.bf16.msra.mxu0 %v4831_v34  ;;  %v4869_v31 = vld [vmem:[#allocation7 + $0x1a0] ss:$16 sps:$4 sm:$0xff]   ;;  %v4880_v34 = vld [vmem:[#allocation7 + $0x1cc] ss:$16 sps:$4 sm:$0xff]  }
 0xe44   : > { %v2611_v33 = vpack.c.bf16 %v2607_v32, %v2607_v32  ;;  %4583 = vmatprep.subr.bf16.mxu0 %v5210_v0  ;;  %v4872_v32 = vld [vmem:[#allocation7 + $0x1a8] ss:$16 sps:$4 sm:$0xff]  }
 0xe46   : > { %4578 = vmatmul.mubr.msk.bf16.vlgmr.msra.gmra.mrb[44].mxu1 %vm1136_vm5, %v2611_v33  ;;  %v4877_v33 = vld [vmem:[#allocation7 + $0x1c4] ss:$16 sps:$4 sm:$0xff]  }
 0xe47   : > { %3161 = vmatprep.mubr.bf16.mxu1 %v5211_v24  ;;  %4584 = vmatpush3.bf16.msra.mxu0 %v4832_v35  ;;  %v4875_v35 = vld [vmem:[#allocation7 + $0x1c0] ss:$16 sps:$4 sm:$0xff]  }
 0xe48   : > { %4585 = vmatprep.subr.bf16.mxu0 %v5210_v0  ;;  %3130 = vmatpush1.bf16.msra.mxu1 %v4839_v4 }
 0xe49   : > { %3131 = vmatprep.subr.bf16.mxu1 %v4847_v9 }
 0xe4b   : > { %4586 = vmatpush3.bf16.msra.mxu0 %v4833_v62  ;;  %v4878_v62 = vld [vmem:[#allocation7 + $0x1c8] ss:$16 sps:$4 sm:$0xff]  }
 0xe4c   : > { %4587 = vmatprep.subr.bf16.mxu0 %v5210_v0  ;;  %3132 = vmatpush1.bf16.msra.mxu1 %v4845_v11 }
 0xe4d   : > { %3133 = vmatprep.subr.bf16.mxu1 %v4853_v13 }
 0xe4f   : > { %4588 = vmatpush3.bf16.msra.mxu0 %v4834_v36  ;;  %v4883_v36 = vld [vmem:[#allocation7 + $0x1e4] ss:$16 sps:$4 sm:$0xff]  }
 0xe50   : > { %4589 = vmatprep.subr.bf16.mxu0 %v5210_v0  ;;  %3134 = vmatpush1.bf16.msra.mxu1 %v4851_v14 }
 0xe51   : > { %3135 = vmatprep.subr.bf16.mxu1 %v4859_v16 }
 0xe53   : > { %4590 = vmatpush3.bf16.msra.mxu0 %v4835_v41 }
 0xe54   : > { %4591 = vmatprep.subr.bf16.mxu0 %v5210_v0  ;;  %3136 = vmatpush1.bf16.msra.mxu1 %v4857_v22 }
 0xe55   : > { %3137 = vmatprep.subr.bf16.mxu1 %v4865_v26  ;;  %v4903_v26 = vld [vmem:[#allocation8] ss:$16 sps:$4 sm:$0xff]  }
 0xe57   : > { %4592 = vmatpush3.bf16.msra.mxu0 %v4836_v43 }
 0xe58   : > { %4593 = vmatprep.subr.bf16.mxu0 %v5210_v0  ;;  %3138 = vmatpush1.bf16.msra.mxu1 %v4863_v25 }
 0xe59   : > { %3139 = vmatprep.subr.bf16.mxu1 %v4871_v29  ;;  %v4908_v29 = vld [vmem:[#allocation8 + $0xc] ss:$16 sps:$4 sm:$0xff]  }
 0xe5b   : > { %4594 = vmatpush3.bf16.msra.mxu0 %v4837_v44 }
 0xe5c   : > { %4595 = vmatprep.subr.bf16.mxu0 %v5210_v0  ;;  %3140 = vmatpush1.bf16.msra.mxu1 %v4869_v31  ;;  %v4914_v31 = vld [vmem:[#allocation8 + $0x2c] ss:$16 sps:$4 sm:$0xff]  }
 0xe5d   : > { %3141 = vmatprep.subr.bf16.mxu1 %v4877_v33  ;;  %v4912_v33 = vld [vmem:[#allocation8 + $0x28] ss:$16 sps:$4 sm:$0xff]  }
 0xe5f   : > { %4596 = vmatpush3.bf16.msra.mxu0 %v4838_v45  ;;  %v4183_v45 = vld [vmem:[%s6086_s6 + $0x1] ss:$0 sm:$0xff] }
 0xe60   : > { %3170 = vmatprep.subr.bf16.mxu0 %v4844_v8  ;;  %3142 = vmatpush1.bf16.msra.mxu1 %v4875_v35  ;;  %v4920_v35 = vld [vmem:[#allocation8 + $0x4c] ss:$16 sps:$4 sm:$0xff]  }
 0xe61   : > { %3143 = vmatprep.subr.bf16.mxu1 %v4883_v36 }
 0xea8   : > { %v2656_v38 = vpop.f32.mrb[40].mxu0 }
 0xea9   : > { %v4561_v39 = vpop.f32.mrb[41].mxu0 }
 0xeaa   : > { %v2659_v40 = vpop.f32.mrb[42].mxu0  ;;  %v4881_v39 = vld [vmem:[#allocation7 + $0x1e0] ss:$16 sps:$4 sm:$0xff]  }
 0xeab   : > { %v4562_v42 = vpop.f32.mrb[43].mxu0  ;;  %v4884_v40 = vld [vmem:[#allocation7 + $0x1e8] ss:$16 sps:$4 sm:$0xff]   ;;  %3144 = vmatpush1.bf16.msra.mxu1 %v4881_v39 }
 0xf11   : > { %v2702_v46 = vpop.f32.mrb[40].mxu1 }
 0xf12   : > { %2801 = vrot.lane.b32.xlu1 %v2702_v46, %s5216_s20  ;;  %v4567_v47 = vpop.f32.mrb[41].mxu1  ;;  %s6133_s20 = sld [smem:[#allocation24_spill]] }
 0xf13   : > { %v2705_v48 = vpop.f32.mrb[42].mxu1 }
 0xf14   : > { %v4568_v49 = vpop.f32.mrb[43].mxu1 }
 0xf15   : > { %v2748_v50 = vpop.f32.mrb[44].mxu0  ;;  %v4887_v49 = vld [vmem:[%s6088_s8 + $0xc0] sm:$0xff]  }
 0xf16   : > { %2805 = vrot.lane.b32.xlu0 %v2748_v50, %s5214_s22  ;;  %v4573_v51 = vpop.f32.mrb[45].mxu0  ;;  %v4888_v50 = vld [vmem:[%s6088_s8 + $0x80] sm:$0xff]   ;;  %4403 = vmatprep.subr.bf16.mxu1 %v4887_v49 }
 0xf17   : > { %v2751_v52 = vpop.f32.mrb[46].mxu0  ;;  %v4889_v51 = vld [vmem:[%s6088_s8 + $0xc8] sm:$0xff]   ;;  %v4929_v49 = vld [vmem:[#allocation8 + $0x84] ss:$16 sps:$4 sm:$0xff]  }
 0xf18   : > { %v4574_v53 = vpop.f32.mrb[47].mxu0  ;;  %v4890_v52 = vld [vmem:[%s6088_s8 + $0x88] sm:$0xff]   ;;  %s6009_s24 = scalar_lea.hbm %s6133_s20, %s4310_s28 }
 0xf19   : > { %v2794_v56 = vpop.f32.mrb[44].mxu1  ;;  %v4891_v53 = vld [vmem:[%s6088_s8 + $0xd0] sm:$0xff]  }
 0xf1a   : > { %2809 = vrot.lane.b32.xlu1 %v2794_v56, %s5213_s18  ;;  %v4579_v57 = vpop.f32.mrb[45].mxu1  ;;  %v4892_v56 = vld [vmem:[%s6088_s8 + $0x90] sm:$0xff]  }
 0xf1b   : > { %v2797_v58 = vpop.f32.mrb[46].mxu1  ;;  %v4893_v57 = vld [vmem:[%s6088_s8 + $0xd8] sm:$0xff]  }
 0xf1c   : > { %v4580_v0 = vpop.f32.mrb[47].mxu1  ;;  %v4894_v58 = vld [vmem:[%s6088_s8 + $0x98] sm:$0xff]  }
 0xf1d   : > { %v4895_v0 = vld [vmem:[%s6088_s8 + $0xe0] sm:$0xff]  }
 0xf84   : > { %v2802_v2 = vpop.permute.xlu1 %2801 }
 0xf85   : > { %v2812_v61 = vsel %vm927_vm1, %v2656_v38, %v2802_v2  ;;  %v4886_v38 = vld [vmem:[#allocation7 + $0x1ec] ss:$16 sps:$4 sm:$0xff]   ;;  %v4896_v2 = vld [vmem:[%s6088_s8 + $0xa0] sm:$0xff]  }
 0xf88   : > { %v2806_v59 = vpop.permute.xlu0 %2805 }
 0xf89   : > { %v2813_v63 = vsel %vm1387_vm6, %v2812_v61, %v2806_v59  ;;  %v4897_v59 = vld [vmem:[%s6088_s8 + $0xe8] sm:$0xff]  }
 0xf8a   : > { %v4898_v61 = vld [vmem:[%s6088_s8 + $0xa8] sm:$0xff]  }
 0xf8c   : > { %v2810_v55 = vpop.permute.xlu1 %2809 }
 0xf8d   : > { %v2814_v37 = vsel %vm1389_vm7, %v2813_v63, %v2810_v55  ;;  %v4899_v63 = vld [vmem:[%s6088_s8 + $0xf0] sm:$0xff]  }
 0xf8e   : > { %v2815_v1 = vpack.c.bf16 %v2814_v37, %v2814_v37  ;;  %v4900_v55 = vld [vmem:[%s6088_s8 + $0xb0] sm:$0xff]   ;;  %v4901_v37 = vld [vmem:[%s6088_s8 + $0xf8] sm:$0xff]  }
 0xf90   : > { %4598 = vmatmul.mubr.bf16.vlgmr.msra.gmra.mrb[48].mxu0 %v2815_v1  ;;  %v4902_v1 = vld [vmem:[%s6088_s8 + $0xb8] sm:$0xff]  }
 0xf91   : > { %3202 = vmatprep.mubr.bf16.mxu0 %v5211_v24  ;;  %3171 = vmatpush1.bf16.msra.mxu0 %v4842_v5 }
 0xf92   : > { %3172 = vmatprep.subr.bf16.mxu0 %v4850_v10 }
 0xf95   : > { %3173 = vmatpush1.bf16.msra.mxu0 %v4848_v12 }
 0xf96   : > { %3174 = vmatprep.subr.bf16.mxu0 %v4856_v7 }
 0xf99   : > { %3175 = vmatpush1.bf16.msra.mxu0 %v4854_v15 }
 0xf9a   : > { %3176 = vmatprep.subr.bf16.mxu0 %v4862_v18 }
 0xf9d   : > { %3177 = vmatpush1.bf16.msra.mxu0 %v4860_v23 }
0x1063   : > { %v2915_v17 = vpop.f32.mrb[48].mxu0 }
0x1064   : > { %v5935_v19 = vadd.f32 %v2915_v17, %v5750_v27  ;;  %v4599_v20 = vpop.f32.mrb[49].mxu0  ;;  %v4868_v27 = vld [vmem:[#allocation7 + $0x18c] ss:$16 sps:$4 sm:$0xff]  }
0x1065   : > { %v2918_v21 = vpop.f32.mrb[50].mxu0  ;;  %3178 = vmatprep.subr.bf16.mxu0 %v4868_v27  ;;  %v4906_v27 = vld [vmem:[#allocation8 + $0x8] ss:$16 sps:$4 sm:$0xff]  }
0x1066   : > { %v4600_v54 = vpop.f32.mrb[51].mxu0  ;;  %v2923_v6 = vmul.f32 %v5935_v19, %v5935_v19  ;;  %3179 = vmatpush1.bf16.msra.mxu0 %v4866_v28  ;;  %v4905_v28 = vld [vmem:[#allocation8 + $0x4] ss:$16 sps:$4 sm:$0xff]  }
0x1067   : > { %3180 = vmatprep.subr.bf16.mxu0 %v4874_v30  ;;  %v4911_v30 = vld [vmem:[#allocation8 + $0x24] ss:$16 sps:$4 sm:$0xff]  }
0x1068   : > { %2924 = vadd.xlane.f32.xlu0 %v2923_v6 }
0x106a   : > { %3181 = vmatpush1.bf16.msra.mxu0 %v4872_v32  ;;  %v4909_v32 = vld [vmem:[#allocation8 + $0x20] ss:$16 sps:$4 sm:$0xff]  }
0x106b   : > { %3182 = vmatprep.subr.bf16.mxu0 %v4880_v34  ;;  %v4917_v34 = vld [vmem:[#allocation8 + $0x44] ss:$16 sps:$4 sm:$0xff]  }
0x106e   : > { %3183 = vmatpush1.bf16.msra.mxu0 %v4878_v62  ;;  %v4915_v62 = vld [vmem:[#allocation8 + $0x40] ss:$16 sps:$4 sm:$0xff]  }
0x106f   : > { %3184 = vmatprep.subr.bf16.mxu0 %v4886_v38 }
0x1072   : > { %3185 = vmatpush1.bf16.msra.mxu0 %v4884_v40 }
0x1073   : > { %3629 = vmatprep.subr.bf16.mxu0 %v4905_v28 }
0x10f5   : > { %v2925_v41 = vpop.xlane.xlu0 %2924 }
0x10f6   : > { %v2926_v42 = vmul.f32 0.0078125, %v2925_v41 }
0x10f8   : > { %v2927_v43 = vadd.f32 1e-06, %v2926_v42 }
0x10fa   : > { %4997 = vrsqrt.f32 %v2927_v43 }
0x1104   : > { %v4998_v44 = vpop.eup %4997 }
0x1105   : > { %v2929_v46 = vmul.f32 %v4998_v44, %v5935_v19  ;;  %v4923_v44 = vld [vmem:[#allocation8 + $0x64] ss:$16 sps:$4 sm:$0xff]  }
0x1107   : > { %v2934_v47 = vmul.f32 %v4183_v45, %v2929_v46  ;;  %v4926_v45 = vld [vmem:[#allocation8 + $0x6c] ss:$16 sps:$4 sm:$0xff]   ;;  %v4921_v46 = vld [vmem:[#allocation8 + $0x60] ss:$16 sps:$4 sm:$0xff]  }
0x1109   : > { %v2935_v48 = vpack.c.bf16 %v2934_v47, %v2934_v47  ;;  %v4924_v47 = vld [vmem:[#allocation8 + $0x68] ss:$16 sps:$4 sm:$0xff]  }
0x110b   : > { %3162 = vmatmul.mubr.bf16.vlgmr.msra.gmra.mrb[48].mxu1 %v2935_v48  ;;  %3203 = vmatmul.mubr.bf16.vlgmr.msra.gmra.mrb[52].mxu0 %v2935_v48  ;;  %v4927_v48 = vld [vmem:[#allocation8 + $0x80] ss:$16 sps:$4 sm:$0xff]  }
0x110c   : > { %3661 = vmatprep.mubr.bf16.mxu0 %v5211_v24  ;;  %4404 = vmatpush3.bf16.msra.mxu1 %v4888_v50  ;;  %v4930_v50 = vld [vmem:[#allocation8 + $0x88] ss:$16 sps:$4 sm:$0xff]  }
0x110d   : > { %4405 = vmatprep.subr.bf16.mxu1 %v4889_v51  ;;  %3630 = vmatpush1.bf16.msra.mxu0 %v4903_v26  ;;  %v4932_v51 = vld [vmem:[#allocation8 + $0x8c] ss:$16 sps:$4 sm:$0xff]  }
0x110e   : > { %3631 = vmatprep.subr.bf16.mxu0 %v4911_v30 }
0x1110   : > { %4406 = vmatpush3.bf16.msra.mxu1 %v4890_v52  ;;  %v4935_v52 = vld [vmem:[#allocation8 + $0xa4] ss:$16 sps:$4 sm:$0xff]  }
0x1111   : > { %4407 = vmatprep.subr.bf16.mxu1 %v4891_v53  ;;  %3632 = vmatpush1.bf16.msra.mxu0 %v4909_v32  ;;  %v4938_v53 = vld [vmem:[#allocation8 + $0xac] ss:$16 sps:$4 sm:$0xff]  }
0x1112   : > { %3633 = vmatprep.subr.bf16.mxu0 %v4917_v34 }
0x1114   : > { %4408 = vmatpush3.bf16.msra.mxu1 %v4892_v56  ;;  %v4936_v56 = vld [vmem:[#allocation8 + $0xa8] ss:$16 sps:$4 sm:$0xff]  }
0x1115   : > { %4409 = vmatprep.subr.bf16.mxu1 %v4893_v57  ;;  %3634 = vmatpush1.bf16.msra.mxu0 %v4915_v62  ;;  %v4941_v57 = vld [vmem:[#allocation8 + $0xc4] ss:$16 sps:$4 sm:$0xff]  }
0x1116   : > { %3635 = vmatprep.subr.bf16.mxu0 %v4923_v44 }
0x1118   : > { %4410 = vmatpush3.bf16.msra.mxu1 %v4894_v58  ;;  %v4944_v58 = vld [vmem:[#allocation8 + $0xcc] ss:$16 sps:$4 sm:$0xff]  }
0x1119   : > { %4411 = vmatprep.subr.bf16.mxu1 %v4895_v0  ;;  %3636 = vmatpush1.bf16.msra.mxu0 %v4921_v46  ;;  %v4939_v0 = vld [vmem:[#allocation8 + $0xc0] ss:$16 sps:$4 sm:$0xff]  }
0x111a   : > { %3637 = vmatprep.subr.bf16.mxu0 %v4929_v49 }
0x111c   : > { %4412 = vmatpush3.bf16.msra.mxu1 %v4896_v2  ;;  %v4942_v2 = vld [vmem:[#allocation8 + $0xc8] ss:$16 sps:$4 sm:$0xff]  }
0x111d   : > { %4413 = vmatprep.subr.bf16.mxu1 %v4897_v59  ;;  %3638 = vmatpush1.bf16.msra.mxu0 %v4927_v48  ;;  %v4947_v59 = vld [vmem:[#allocation8 + $0xe4] ss:$16 sps:$4 sm:$0xff]  }
0x111e   : > { %3639 = vmatprep.subr.bf16.mxu0 %v4935_v52 }
0x1120   : > { %4414 = vmatpush3.bf16.msra.mxu1 %v4898_v61  ;;  %v4950_v61 = vld [vmem:[#allocation8 + $0xec] ss:$16 sps:$4 sm:$0xff]  }
0x1121   : > { %4415 = vmatprep.subr.bf16.mxu1 %v4899_v63  ;;  %v4945_v63 = vld [vmem:[#allocation8 + $0xe0] ss:$16 sps:$4 sm:$0xff]  }
0x1124   : > { %4416 = vmatpush3.bf16.msra.mxu1 %v4900_v55  ;;  %v4948_v55 = vld [vmem:[#allocation8 + $0xe8] ss:$16 sps:$4 sm:$0xff]  }
0x1125   : > { %4417 = vmatprep.subr.bf16.mxu1 %v4901_v37 }
0x1128   : > { %4418 = vmatpush3.bf16.msra.mxu1 %v4902_v1 }
0x1129   : > { %3670 = vmatprep.subr.bf16.mxu1 %v4908_v29 }
0x11de   : > { %v3163_v4 = vpop.f32.mrb[48].mxu1  ;;  %v3204_v3 = vpop.f32.mrb[52].mxu0 }
0x11df   : > { %v4216_v5 = vmul.f32 -1.442695, %v3163_v4  ;;  %v3165_v8 = vpop.f32.mrb[49].mxu1  ;;  %v3206_v9 = vpop.f32.mrb[53].mxu0 }
0x11e0   : > { %v4217_v10 = vmul.f32 -1.442695, %v3165_v8  ;;  %v3167_v11 = vpop.f32.mrb[50].mxu1  ;;  %v3208_v12 = vpop.f32.mrb[54].mxu0 }
0x11e1   : > { %4999 = vpow2.f32 %v4216_v5  ;;  %v3168_v13 = vpop.f32.mrb[51].mxu1  ;;  %v3209_v7 = vpop.f32.mrb[55].mxu0  ;;  %v4266_v5 = vld [vmem:[%s6089_s9] ss:$0 sm:$0xff]  ;;  %v3451_v11 = vsub.s32 0, %v5620_v60  ;;  %v3459_v12 = vsub.s32 2, %v5620_v60 }
0x11e2   : > { %5001 = vpow2.f32 %v4217_v10  ;;  %v3447_v13 = vld [vmem:[%s6091_s11] sm:$0xf]  ;;  %v3455_v7 = vsub.s32 1, %v5620_v60 }
0x11eb   : > { %v5000_v14 = vpop.eup %4999 }
0x11ec   : > { %v5002_v15 = vpop.eup %5001  ;;  %v3217_v17 = vadd.f32 1.0, %v5000_v14  ;;  %v3463_v14 = vsub.s32 3, %v5620_v60 }
0x11ed   : > { %v3218_v20 = vadd.f32 1.0, %v5002_v15  ;;  %v3452_v15 = vrot.slane %v3447_v13, %v3451_v11 }
0x11ee   : > { %5003 = vrcp.f32 %v3217_v17  ;;  %v3460_v17 = vrot.slane %v3447_v13, %v3459_v12 }
0x11ef   : > { %5005 = vrcp.f32 %v3218_v20  ;;  %v3456_v20 = vrot.slane %v3447_v13, %v3455_v7 }
0x11f8   : > { %v5004_v21 = vpop.eup %5003 }
0x11f9   : > { %v5006_v54 = vpop.eup %5005  ;;  %v3223_v6 = vmul.f32 %v5004_v21, %v3163_v4  ;;  %v3464_v21 = vrot.slane %v3447_v13, %v3463_v14 }
0x11fa   : > { %v3224_v16 = vmul.f32 %v5006_v54, %v3165_v8 }
0x11fb   : > { %v3225_v18 = vmul.f32 %v3223_v6, %v3204_v3 }
0x11fc   : > { %v3226_v22 = vmul.f32 %v3224_v16, %v3206_v9 }
0x11fd   : > { %v3227_v25 = vpack.c.bf16 %v3225_v18, %v3225_v18 }
0x11fe   : > { %v3228_v23 = vpack.c.bf16 %v3226_v22, %v3226_v22 }
0x1200   : > { %3390 = vmatprep.mubr.bf16.mxu1 %v3228_v23 }
0x1201   : > { %3391 = vmatmul.mubr.bf16.vlgmr.msra.gmra.mrb[52].mxu1 %v3227_v25 }
0x1202   : > { %3702 = vmatprep.mubr.bf16.mxu1 %v5211_v24  ;;  %3671 = vmatpush1.bf16.msra.mxu1 %v4906_v27  ;;  %v4918_v24 = vld [vmem:[#allocation8 + $0x48] ss:$16 sps:$4 sm:$0xff]  }
0x1203   : > { %3672 = vmatprep.subr.bf16.mxu1 %v4914_v31 }
0x1206   : > { %3673 = vmatpush1.bf16.msra.mxu1 %v4912_v33 }
0x1207   : > { %3674 = vmatprep.subr.bf16.mxu1 %v4920_v35 }
0x120a   : > { %3675 = vmatpush1.bf16.msra.mxu1 %v4918_v24 }
0x120b   : > { %3676 = vmatprep.subr.bf16.mxu1 %v4926_v45 }
0x120e   : > { %3677 = vmatpush1.bf16.msra.mxu1 %v4924_v47 }
0x120f   : > { %3678 = vmatprep.subr.bf16.mxu1 %v4932_v51 }
0x1212   : > { %3679 = vmatpush1.bf16.msra.mxu1 %v4930_v50 }
0x1213   : > { %3680 = vmatprep.subr.bf16.mxu1 %v4938_v53 }
0x1216   : > { %3681 = vmatpush1.bf16.msra.mxu1 %v4936_v56 }
0x1217   : > { %3682 = vmatprep.subr.bf16.mxu1 %v4944_v58 }
0x121a   : > { %3683 = vmatpush1.bf16.msra.mxu1 %v4942_v2 }
0x121b   : > { %3684 = vmatprep.subr.bf16.mxu1 %v4950_v61 }
0x121e   : > { %3685 = vmatpush1.bf16.msra.mxu1 %v4948_v55 }
0x12d4   : > { %v4419_v36 = vpop.f32.mrb[52].mxu1 }
0x12d5   : > { %v4420_v38 = vpop.f32.mrb[53].mxu1 }
0x12d6   : > { %v4421_v39 = vadd.f32 %v4420_v38, %v4419_v36  ;;  %v4422_v40 = vpop.f32.mrb[54].mxu1 }
0x12d7   : > { %v4423_v41 = vpop.f32.mrb[55].mxu1 }
0x12d8   : > { %v3398_v42 = vadd.f32 %v4421_v39, %v5935_v19  ;;  %v4933_v19 = vld [vmem:[#allocation8 + $0xa0] ss:$16 sps:$4 sm:$0xff]  }
0x12d9   : > { %3640 = vmatpush1.bf16.msra.mxu0 %v4933_v19 }
0x12da   : > { %v3400_v43 = vmul.f32 %v3398_v42, %v3398_v42  ;;  %3641 = vmatprep.subr.bf16.mxu0 %v4941_v57 }
0x12dc   : > { %3401 = vadd.xlane.f32.xlu1 %v3400_v43 }
0x12dd   : > { %3642 = vmatpush1.bf16.msra.mxu0 %v4939_v0 }
0x12de   : > { %3643 = vmatprep.subr.bf16.mxu0 %v4947_v59 }
0x12e1   : > { %3644 = vmatpush1.bf16.msra.mxu0 %v4945_v63 }
0x1369   : > { %v3402_v37 = vpop.xlane.xlu1 %3401 }
0x136a   : > { %v3403_v1 = vmul.f32 0.0078125, %v3402_v37 }
0x136c   : > { %v3404_v4 = vadd.f32 1e-06, %v3403_v1 }
0x136e   : > { %5007 = vrsqrt.f32 %v3404_v4 }
0x1378   : > { %v5008_v3 = vpop.eup %5007 }
0x1379   : > { %v3406_v8 = vmul.f32 %v5008_v3, %v3398_v42 }
0x137b   : > { %v3413_v9 = vmul.f32 %v4266_v5, %v3406_v8 }
0x137d   : > { %v3414_v10 = vpack.c.bf16 %v3413_v9, %v3413_v9 }
0x137f   : > { %3662 = vmatmul.mubr.bf16.vlgmr.msra.gmra.mrb[56].mxu0 %v3414_v10  ;;  %3703 = vmatmul.mubr.bf16.vlgmr.msra.gmra.mrb[56].mxu1 %v3414_v10 }
0x1452   : > { %v3663_v54 = vpop.f32.mrb[56].mxu0  ;;  %v3704_v6 = vpop.f32.mrb[56].mxu1 }
0x1453   : > { %v3664_v16 = vadd.f32 %v3663_v54, %v3452_v15  ;;  %v3705_v18 = vadd.f32 %v3704_v6, %v3460_v17  ;;  %v3665_v22 = vpop.f32.mrb[57].mxu0  ;;  %v3706_v23 = vpop.f32.mrb[57].mxu1 }
0x1454   : > { %v3666_v25 = vadd.f32 %v3665_v22, %v3456_v20  ;;  %v3707_v26 = vadd.f32 %v3706_v23, %v3464_v21  ;;  %v3667_v28 = vpop.f32.mrb[58].mxu0  ;;  %v3708_v27 = vpop.f32.mrb[58].mxu1 }
0x1455   : > { %3711 = vst [vmem:[%s518_s13] sm:$0xff] %v3664_v16  ;;  %3713 = vst [vmem:[%s518_s13 + $0x10] sm:$0xff] %v3705_v18  ;;  %v3668_v60 = vpop.f32.mrb[59].mxu0  ;;  %v3709_v29 = vpop.f32.mrb[59].mxu1 }
0x1456   : > { %3712 = vst [vmem:[%s518_s13 + $0x8] sm:$0xff] %v3666_v25  ;;  %3714 = vst [vmem:[%s518_s13 + $0x18] sm:$0xff] %v3707_v26 }
0x1457   : > { %5137 = shalt.err (!%p5134_p5)
}
0x1458   : > { %s5138_s29 = scalar_lea.hbm %s6009_s24, 512  ;;  %s5142_s28 = scalar_lea.hbm %s6133_s20, 1024 }
0x1459   : > { %p5139_p0 = scmp.ne.s32.totalorder %s6009_s24, %s5138_s29  ;;  %p5143_p10 = scmp.lt.u32.totalorder %s6009_s24, %s6133_s20 }
0x145a   : > { %p5144_p12 = scmp.lt.u32.totalorder %s5142_s28, %s5138_s29  ;;  %p5146_p2 = scmp.lt.u32.totalorder %s5138_s29, %s6009_s24 }
0x145b   : > { %p5140_p6 = pnand %p5139_p0, %p6134_p3 }
0x145c   : > { %p5145_p1 = por %p5144_p12, %p5143_p10 }
0x145d   : > { %p5141_p9 = pneg %p5140_p6 }
0x145e   : > { %p5147_p4 = por %p5146_p2, %p5145_p1 }
0x1460   : > { %p5148_p7 = pnand %p5147_p4, %p5141_p9 }
0x1462   : > { %5151 = shalt.err (!%p5148_p7)
}
0x1463   : > { %4617 = dma.vmem_to_hbm [thread:$0]  (%p6134_p3), %s6011_s27, 512, %s6009_s24, %s3716_s12   ;;  %v3789_v30 = vld [vmem:[%s5562_s26] sm:$0xff] (%p6134_p3)  ;;  %v3791_v31 = vld [vmem:[%s5562_s26 + $0x8] sm:$0xff] (%p6134_p3)  ;;  %v3793_v32 = vld [vmem:[%s5562_s26 + $0x10] sm:$0xff] (%p6134_p3) }
0x1464   : > { %3744 = sbr.rel (!%p6134_p3) target bundleno = 5232 (0x1470), region = 92  ;;  %s4311_s22 = sshll.u32 (%p6134_p3), %s5315_s17, 5  ;;  %v3795_v33 = vld [vmem:[%s5562_s26 + $0x18] sm:$0xff] (%p6134_p3)  ;;  %v3797_v34 = vld [vmem:[%s5562_s26 + $0x20] sm:$0xff] (%p6134_p3)  ;;  %v3799_v35 = vld [vmem:[%s5562_s26 + $0x28] sm:$0xff] (%p6134_p3) }
0x1465   : > { %s6135_s15 = sld [smem:[#allocation25_spill]] (%p6134_p3)  ;;  %v3801_v62 = vld [vmem:[%s5562_s26 + $0x30] sm:$0xff] (%p6134_p3)  ;;  %v3803_v24 = vld [vmem:[%s5562_s26 + $0x38] sm:$0xff] (%p6134_p3) }
0x146b   : > { %s3747_s27 = scalar_lea.vmem %s6135_s15, %s4311_s22 }
0x146c   : > { %3790 = vst [vmem:[%s3747_s27] sm:$0xff] %v3789_v30  ;;  %3792 = vst [vmem:[%s3747_s27 + $0x8] sm:$0xff] %v3791_v31 }
0x146d   : > { %3794 = vst [vmem:[%s3747_s27 + $0x10] sm:$0xff] %v3793_v32  ;;  %3796 = vst [vmem:[%s3747_s27 + $0x18] sm:$0xff] %v3795_v33 }
0x146e   : > { %3798 = vst [vmem:[%s3747_s27 + $0x40] sm:$0xff] %v3797_v34  ;;  %3800 = vst [vmem:[%s3747_s27 + $0x48] sm:$0xff] %v3799_v35 }
0x146f   : > { %3802 = vst [vmem:[%s3747_s27 + $0x50] sm:$0xff] %v3801_v62  ;;  %3804 = vst [vmem:[%s3747_s27 + $0x58] sm:$0xff] %v3803_v24 }
0x1470 PF: > { %p6136_p3 = scmp.ne.s32.totalorder %s6116_s23, 0 }
0x1471   : > { %s4312_s24 = sshll.u32 (%p6136_p3), %s5315_s17, 5  ;;  %v3855_v36 = vld [vmem:[%s5497_s21] sm:$0xff] (%p6136_p3)  ;;  %v3857_v38 = vld [vmem:[%s5497_s21 + $0x8] sm:$0xff] (%p6136_p3)  ;;  %v3859_v39 = vld [vmem:[%s5497_s21 + $0x10] sm:$0xff] (%p6136_p3)  ;;  %s6137_s5 = sld [smem:[#allocation26_spill]] (%p6136_p3) }
0x1472   : > { %3810 = sbr.rel (!%p6136_p3) target bundleno = 5244 (0x147c), region = 130  ;;  %v3861_v40 = vld [vmem:[%s5497_s21 + $0x18] sm:$0xff] (%p6136_p3)  ;;  %v3863_v41 = vld [vmem:[%s5497_s21 + $0x20] sm:$0xff] (%p6136_p3)  ;;  %v3865_v42 = vld [vmem:[%s5497_s21 + $0x28] sm:$0xff] (%p6136_p3) }
0x1473   : > { %v3867_v43 = vld [vmem:[%s5497_s21 + $0x30] sm:$0xff] (%p6136_p3)  ;;  %v3869_v44 = vld [vmem:[%s5497_s21 + $0x38] sm:$0xff] (%p6136_p3) }
0x1477   : > { %s3813_s29 = scalar_lea.vmem (%p6136_p3), %s6137_s5, %s4312_s24 }
0x1478   : > { %3856 = vst [vmem:[%s3813_s29] sm:$0xff] (%p6136_p3), %v3855_v36  ;;  %3858 = vst [vmem:[%s3813_s29 + $0x8] sm:$0xff] (%p6136_p3), %v3857_v38 }
0x1479   : > { %3860 = vst [vmem:[%s3813_s29 + $0x10] sm:$0xff] %v3859_v39  ;;  %3862 = vst [vmem:[%s3813_s29 + $0x18] sm:$0xff] %v3861_v40 }
0x147a   : > { %3864 = vst [vmem:[%s3813_s29 + $0x40] sm:$0xff] %v3863_v41  ;;  %3866 = vst [vmem:[%s3813_s29 + $0x48] sm:$0xff] %v3865_v42 }
0x147b   : > { %3868 = vst [vmem:[%s3813_s29 + $0x50] sm:$0xff] %v3867_v43  ;;  %3870 = vst [vmem:[%s3813_s29 + $0x58] sm:$0xff] %v3869_v44 }
0x147c PF: > { %s6138_s17 = sld [smem:[#allocation19_spill]]  ;;  %s6139_s23 = sld [smem:[#allocation17_spill]] }
0x147d   : > { %s6140_s14 = sld [smem:[#allocation22_spill]] }
0x1482   : > { %p4644_p8 = scmp.ge.s32.totalorder %s6138_s17, 2  ;;  %s3882_s25 = sand.u32 1, %s6139_s23  }
0x1483   : > { %p6141_p11 = scmp.ne.s32.totalorder %s6140_s14, 0  ;;  %s3883_s28 = scalar_lea.sflag [#allocation4], %s3882_s25 }
0x1485   : > { %p4633_p13 = pnand %p4644_p8, %p6141_p11 }
0x1487   : > { %5181 = dma.done.wait (!%p4633_p13), %s3883_s28, 512  }
0x1488   : > { %5183 = vsyncadd (!%p4633_p13), %s3883_s28, 4294966784  ;;  %s6142_s16 = sld [smem:[#allocation20_spill]]  ;;  %s6143_s13 = sld [smem:[#allocation18_spill]] }
0x1489   : > { %s6144_s15 = sld [smem:[#allocation21_spill]]  ;;  %s6145_s29 = smov %s5190_s30 }
0x148e   : > { %p28_p5 = scmp.ge.s32.totalorder %s6142_s16, 4   ;;  %s6146_s30 = smov %s6143_s13 }
0x1490   :  { %30 = sbr.rel (!%p28_p5) target bundleno = 11 (0xb), region = 226 }
0x1497   :  { %3902 = vsyncpa [#allocation3], 1 }
0x1498   :  { %3904 = vsyncpa [#allocation3 + $0x1], 1 }
0x1499   :  { %3905 = vsyncpa [#allocation6], 1 }
0x149a   :  { %3906 = vsyncpa [#allocation9], 1 }
0x149b   :  { %3907 = vsyncpa [#allocation4], 1 }
0x149c   :  { %3909 = vsyncpa [#allocation4 + $0x1], 1 }

</bundles_post_ra>
